<compile_context>
chip_gen: v7x
topology: tpu7x:2x2x1
jax: 0.10.0
libtpu: 0.0.40
codegen_flags: <defaults>
</compile_context>

<pallas_src>
import functools

import jax
import jax.numpy as jnp
from jax.experimental import pallas as pl
from jax.experimental.pallas import tpu as pltpu

LN_EPS = 1e-5  # torch.nn.LayerNorm default


def _patch_expand_kernel(x_ref, w_ref, g_ref, b_ref, o_ref, *,
                         rows_per_tile, row_width, cd):
    """One tile = `rows_per_tile` whole image rows (tm = rows_per_tile*row_width tokens).

    x_ref: (tm, C)           input tokens (f32 or bf16)
    w_ref: (C, 2C)           expand weight (Linear, no bias), already transposed
    g_ref: (1, cd) f32       LayerNorm gamma      (cd == C // 2)
    b_ref: (1, cd) f32       LayerNorm beta
    o_ref: (tr, 2, W, 2*cd)  pixel-shuffled output:
        o_ref[r, p1, w, p2*cd + c] holds the normalized sub-token (p1, p2) of
        token (r, w) of this tile; row-major flattening of the full output is
        exactly (B, 2H, 2W, cd).
    """
    tr, W = rows_per_tile, row_width
    C = 2 * cd
    x = x_ref[...]                      # loaded once, reused by both matmuls
    gamma = g_ref[...]                  # (1, cd) f32
    beta = b_ref[...]                   # (1, cd) f32

    for p1 in range(2):                 # static unroll: matmul -> LN -> store per half
        # Hot path 1: half-width matmul on the MXU, f32 accumulation.
        # (keeps only a (tm, C) f32 intermediate live instead of (tm, 2C))
        y = jnp.dot(x, w_ref[:, p1 * C:(p1 + 1) * C],
                    preferred_element_type=jnp.float32)          # (tm, C)

        for p2 in range(2):             # static unroll
            chunk = y[:, p2 * cd:(p2 + 1) * cd]                  # (tm, cd)
            # Two-pass LayerNorm (numerically safe), fused gamma*rsqrt form.
            mean = jnp.mean(chunk, axis=-1, keepdims=True)
            var = jnp.mean(jnp.square(chunk - mean), axis=-1, keepdims=True)
            scale = gamma * jax.lax.rsqrt(var + LN_EPS)
            out = (chunk * scale + (beta - mean * scale)).astype(o_ref.dtype)
            # One large block store per (p1, p2): (tr, W, cd) slab.
            o_ref[:, p1, :, p2 * cd:(p2 + 1) * cd] = out.reshape(tr, W, cd)


def _choose_rows_per_tile(num_rows, row_width, max_tokens):
    """Pick how many whole image rows go into one tile.

    Constraints / preferences:
      * tile must divide num_rows exactly (no ragged tiles)
      * sublane dim (rows*row_width) multiple of 8 unless it spans the full array
      * tile <= max_tokens tokens (VMEM budget)
      * prefer an EVEN grid length (v7x 2-TensorCore split), then any grid >= 2
    """
    cands = []
    for d in range(1, num_rows + 1):
        if num_rows % d:
            continue
        ok_align = ((d * row_width) % 8 == 0) or (d == num_rows)
        ok_size = d * row_width <= max_tokens
        if ok_align and ok_size:
            cands.append(d)
    if not cands:
        # Forced fallback: a single image row already exceeds the token budget
        # (tiles must be whole rows for the fused pixel-shuffle layout).
        return 1
    even = [d for d in cands if (num_rows // d) % 2 == 0]
    multi = [d for d in cands if num_rows // d >= 2]
    for bucket in (even, multi, cands):
        if bucket:
            return max(bucket)
    return max(cands)


def _generation_defaults():
    """(vmem_limit_bytes, max_tokens_per_tile) based on the local TPU generation."""
    try:
        kind = jax.devices()[0].device_kind.lower()
    except Exception:
        kind = ""
    if "v5" in kind or "v6" in kind:
        # 128 MiB physical VMEM: larger scoped limit + bigger row tiles.
        return 96 * 1024 * 1024, 1024
    # v7x (64 MiB VMEM) and anything unknown: stay conservative.
    return 48 * 1024 * 1024, 512


def patch_expand_pallas(x, w_expand, ln_gamma, ln_beta, H, W, *,
                        max_tokens_per_tile=None, compute_dtype=None,
                        out_dtype=None, vmem_limit_bytes=None):
    """PatchExpand(dim_scale=2) forward: fused Linear + per-sub-token LayerNorm
    + pixel-shuffle.

    x:        (B, H*W, C)
    w_expand: (C, 2C)   Linear weight transposed (y = x @ w_expand)
    ln_gamma: (C//2,)
    ln_beta:  (C//2,)
    compute_dtype: optional (e.g. jnp.bfloat16) dtype for the matmul inputs
                   (recommended on v6e/v7x); LayerNorm math stays in f32.
    out_dtype:     output dtype (bf16 halves the dominant HBM write stream).
    returns:  (B, 4*H*W, C//2)
    """
    B, L, C = x.shape
    assert L == H * W, "input feature has wrong size"
    assert C % 2 == 0
    Cd = C // 2
    out_dtype = out_dtype or x.dtype

    gen_vmem, gen_tokens = _generation_defaults()
    vmem_limit = vmem_limit_bytes or gen_vmem
    max_tokens = max_tokens_per_tile or gen_tokens

    num_rows = B * H                     # total image rows across the batch
    tr = _choose_rows_per_tile(num_rows, W, max_tokens)
    tm = tr * W                          # tokens per tile
    grid = (num_rows // tr,)

    x2d = x.reshape(B * H * W, C)
    w = w_expand
    if compute_dtype is not None:
        x2d = x2d.astype(compute_dtype)
        w = w.astype(compute_dtype)
    g2d = ln_gamma.reshape(1, Cd).astype(jnp.float32)
    b2d = ln_beta.reshape(1, Cd).astype(jnp.float32)

    kernel = functools.partial(_patch_expand_kernel,
                               rows_per_tile=tr, row_width=W, cd=Cd)

    def make_call(single_buffer_consts):
        def const_spec(shape):
            idx = lambda i: (0,) * len(shape)
            if single_buffer_consts:
                return pl.BlockSpec(shape, idx, pipeline_mode=pl.Buffered(1))
            return pl.BlockSpec(shape, idx)

        # Output layout (B*H, 2, W, 2*Cd): index [(b*H+h), p1, w, p2*Cd + c]
        # -> row-major order is exactly (B, 2H, 2W, Cd), so the final reshape
        # below is free (no transpose, no extra HBM pass).
        return pl.pallas_call(
            kernel,
            out_shape=jax.ShapeDtypeStruct((num_rows, 2, W, 2 * Cd), out_dtype),
            grid_spec=pltpu.PrefetchScalarGridSpec(
                num_scalar_prefetch=0,
                grid=grid,
                in_specs=[
                    pl.BlockSpec((tm, C), lambda i: (i, 0)),   # x tile (whole rows)
                    const_spec((C, 2 * C)),                    # full weight, resident
                    const_spec((1, Cd)),                       # gamma
                    const_spec((1, Cd)),                       # beta
                ],
                out_specs=pl.BlockSpec((tr, 2, W, 2 * Cd), lambda i: (i, 0, 0, 0)),
            ),
            compiler_params=pltpu.CompilerParams(
                dimension_semantics=("parallel",),
                vmem_limit_bytes=vmem_limit,
            ),
        )

    if hasattr(pl, "Buffered"):
        try:
            out4d = make_call(True)(x2d, w, g2d, b2d)
        except Exception:
            # Fall back to default (double) buffering if Buffered(1) is rejected.
            out4d = make_call(False)(x2d, w, g2d, b2d)
    else:
        out4d = make_call(False)(x2d, w, g2d, b2d)

    return out4d.reshape(B, 4 * H * W, Cd)


def reference_patch_expand(x, w_expand, ln_gamma, ln_beta, H, W):
    """Pure-JAX reference matching the PyTorch PatchExpand forward."""
    B, L, C = x.shape
    Cd = C // 2
    y = x @ w_expand                                               # (B, L, 2C)
    y = y.reshape(B, H, W, 2, 2, Cd)
    y = jnp.transpose(y, (0, 1, 3, 2, 4, 5)).reshape(B, 4 * L, Cd)
    mean = jnp.mean(y, axis=-1, keepdims=True)
    var = jnp.mean((y - mean) ** 2, axis=-1, keepdims=True)
    y = (y - mean) / jnp.sqrt(var + LN_EPS)
    return y * ln_gamma + ln_beta


if __name__ == "__main__":
    # Small shapes consistent with the module: out_dim = 64, input_resolution = (8, 8)
    B, H, W, C = 2, 8, 8, 64

    key = jax.random.PRNGKey(0)
    k_x, k_w = jax.random.split(key)

    x1 = jax.random.normal(k_x, (B, H * W, C), dtype=jnp.float32)

    # Deterministic parameter init (xavier_uniform for the Linear, ones/zeros for LN).
    fan_in, fan_out = C, 2 * C
    limit = (6.0 / (fan_in + fan_out)) ** 0.5
    w_expand = jax.random.uniform(
        k_w, (C, 2 * C), minval=-limit, maxval=limit, dtype=jnp.float32
    )
    ln_gamma = jnp.ones((C // 2,), dtype=jnp.float32)
    ln_beta = jnp.zeros((C // 2,), dtype=jnp.float32)

    # f32 path. Tolerance is loose enough to be robust to XLA/MXU f32 matmul
    # precision modes (a layout/semantics bug would produce O(1) errors).
    out = patch_expand_pallas(x1, w_expand, ln_gamma, ln_beta, H, W)
    out = jax.block_until_ready(out)
    ref = reference_patch_expand(x1, w_expand, ln_gamma, ln_beta, H, W)
    assert out.shape == (B, 4 * H * W, C // 2), out.shape
    assert jnp.allclose(out, ref, atol=2e-2, rtol=2e-2), "f32 path mismatch vs reference"

    # bf16 matmul-input path (v6e/v7x recommendation); LN stays f32, output f32.
    out_bf = patch_expand_pallas(
        x1, w_expand, ln_gamma, ln_beta, H, W,
        compute_dtype=jnp.bfloat16, out_dtype=jnp.float32,
    )
    out_bf = jax.block_until_ready(out_bf)
    ref_bf = reference_patch_expand(
        x1.astype(jnp.bfloat16).astype(jnp.float32),
        w_expand.astype(jnp.bfloat16).astype(jnp.float32),
        ln_gamma, ln_beta, H, W,
    )
    assert out_bf.shape == (B, 4 * H * W, C // 2), out_bf.shape
    assert jnp.allclose(out_bf, ref_bf, atol=5e-2, rtol=5e-2), "bf16 path mismatch vs reference"

    print("KERNEL_OK")
</pallas_src>

<mosaic_0001>
module attributes {stable_mosaic.version = 11 : i64} {
  func.func @_patch_expand_kernel(%arg0: i32, %arg1: memref<64x64xf32, #tpu.memory_space<vmem>>, %arg2: memref<64x128xf32, #tpu.memory_space<vmem>>, %arg3: memref<1x32xf32, #tpu.memory_space<vmem>>, %arg4: memref<1x32xf32, #tpu.memory_space<vmem>>, %arg5: memref<8x2x8x64xf32, #tpu.memory_space<vmem>>) attributes {dimension_semantics = [#tpu.dimension_semantics<parallel>], iteration_bounds = array<i64: 2>, scalar_prefetch = 0 : i64, scratch_operands = 0 : i64, tpu.core_type = #tpu.core_type<tc>, window_params = [{transform_indices = @transform_0, window_bounds = array<i64: 64, 64>}, {pipeline_mode = #tpu.pipeline_mode<synchronous>, transform_indices = @transform_1, window_bounds = array<i64: 64, 128>}, {pipeline_mode = #tpu.pipeline_mode<synchronous>, transform_indices = @transform_2, window_bounds = array<i64: 1, 32>}, {pipeline_mode = #tpu.pipeline_mode<synchronous>, transform_indices = @transform_3, window_bounds = array<i64: 1, 32>}, {transform_indices = @transform_4, window_bounds = array<i64: 8, 2, 8, 64>}]} {
    %c0 = arith.constant 0 : index
    %c0_0 = arith.constant 0 : index
    %0 = vector.load %arg1[%c0, %c0_0] : memref<64x64xf32, #tpu.memory_space<vmem>>, vector<64x64xf32>
    %c0_1 = arith.constant 0 : index
    %c0_2 = arith.constant 0 : index
    %1 = vector.load %arg3[%c0_1, %c0_2] : memref<1x32xf32, #tpu.memory_space<vmem>>, vector<1x32xf32>
    %c0_3 = arith.constant 0 : index
    %c0_4 = arith.constant 0 : index
    %2 = vector.load %arg4[%c0_3, %c0_4] : memref<1x32xf32, #tpu.memory_space<vmem>>, vector<1x32xf32>
    %c0_5 = arith.constant 0 : index
    %c0_6 = arith.constant 0 : index
    %3 = vector.load %arg2[%c0_5, %c0_6] : memref<64x128xf32, #tpu.memory_space<vmem>>, vector<64x64xf32>
    %cst = arith.constant dense<0.000000e+00> : vector<64x64xf32>
    %4 = tpu.matmul %0, %3, %cst {dimension_numbers = #tpu.dot_dimension_numbers<[1], [0], [0], [1], [0, 0, 1, 1], [], []>} : vector<64x64xf32>, vector<64x64xf32>, vector<64x64xf32> -> vector<64x64xf32>
    %5 = vector.extract_strided_slice %4 {offsets = [0, 0], sizes = [64, 32], strides = [1, 1]} : vector<64x64xf32> to vector<64x32xf32>
    %cst_7 = arith.constant dense<0.000000e+00> : vector<64xf32>
    %6 = vector.multi_reduction <add>, %5, %cst_7 [1] : vector<64x32xf32> to vector<64xf32>
    %7 = vector.shape_cast %6 : vector<64xf32> to vector<64x1xf32>
    %cst_8 = arith.constant 3.200000e+01 : f32
    %8 = vector.broadcast %cst_8 : f32 to vector<64x1xf32>
    %9 = arith.divf %7, %8 : vector<64x1xf32>
    %10 = vector.broadcast %9 : vector<64x1xf32> to vector<64x32xf32>
    %11 = arith.subf %5, %10 : vector<64x32xf32>
    %12 = arith.mulf %11, %11 : vector<64x32xf32>
    %cst_9 = arith.constant dense<0.000000e+00> : vector<64xf32>
    %13 = vector.multi_reduction <add>, %12, %cst_9 [1] : vector<64x32xf32> to vector<64xf32>
    %14 = vector.shape_cast %13 : vector<64xf32> to vector<64x1xf32>
    %cst_10 = arith.constant 3.200000e+01 : f32
    %15 = vector.broadcast %cst_10 : f32 to vector<64x1xf32>
    %16 = arith.divf %14, %15 : vector<64x1xf32>
    %cst_11 = arith.constant 9.99999974E-6 : f32
    %17 = vector.broadcast %cst_11 : f32 to vector<64x1xf32>
    %18 = arith.addf %16, %17 : vector<64x1xf32>
    %19 = math.rsqrt %18 : vector<64x1xf32>
    %20 = vector.broadcast %1 : vector<1x32xf32> to vector<64x32xf32>
    %21 = vector.broadcast %19 : vector<64x1xf32> to vector<64x32xf32>
    %22 = arith.mulf %20, %21 : vector<64x32xf32>
    %23 = arith.mulf %5, %22 : vector<64x32xf32>
    %24 = vector.broadcast %9 : vector<64x1xf32> to vector<64x32xf32>
    %25 = arith.mulf %24, %22 : vector<64x32xf32>
    %26 = vector.broadcast %2 : vector<1x32xf32> to vector<64x32xf32>
    %27 = arith.subf %26, %25 : vector<64x32xf32>
    %28 = arith.addf %23, %27 : vector<64x32xf32>
    %29 = vector.shape_cast %28 : vector<64x32xf32> to vector<8x8x32xf32>
    %c0_12 = arith.constant 0 : index
    %c0_13 = arith.constant 0 : index
    %c0_14 = arith.constant 0 : index
    %c0_15 = arith.constant 0 : index
    %30 = vector.load %arg5[%c0_12, %c0_13, %c0_14, %c0_15] : memref<8x2x8x64xf32, #tpu.memory_space<vmem>>, vector<8x1x8x32xf32>
    %31 = vector.shape_cast %30 : vector<8x1x8x32xf32> to vector<8x8x32xf32>
    %32 = vector.shape_cast %29 : vector<8x8x32xf32> to vector<8x1x8x32xf32>
    tpu.vector_store %arg5[%c0_12, %c0_13, %c0_14, %c0_15], %32 {strides = array<i32>} : memref<8x2x8x64xf32, #tpu.memory_space<vmem>>, vector<8x1x8x32xf32>,
    %33 = vector.extract_strided_slice %4 {offsets = [0, 32], sizes = [64, 32], strides = [1, 1]} : vector<64x64xf32> to vector<64x32xf32>
    %cst_16 = arith.constant dense<0.000000e+00> : vector<64xf32>
    %34 = vector.multi_reduction <add>, %33, %cst_16 [1] : vector<64x32xf32> to vector<64xf32>
    %35 = vector.shape_cast %34 : vector<64xf32> to vector<64x1xf32>
    %cst_17 = arith.constant 3.200000e+01 : f32
    %36 = vector.broadcast %cst_17 : f32 to vector<64x1xf32>
    %37 = arith.divf %35, %36 : vector<64x1xf32>
    %38 = vector.broadcast %37 : vector<64x1xf32> to vector<64x32xf32>
    %39 = arith.subf %33, %38 : vector<64x32xf32>
    %40 = arith.mulf %39, %39 : vector<64x32xf32>
    %cst_18 = arith.constant dense<0.000000e+00> : vector<64xf32>
    %41 = vector.multi_reduction <add>, %40, %cst_18 [1] : vector<64x32xf32> to vector<64xf32>
    %42 = vector.shape_cast %41 : vector<64xf32> to vector<64x1xf32>
    %cst_19 = arith.constant 3.200000e+01 : f32
    %43 = vector.broadcast %cst_19 : f32 to vector<64x1xf32>
    %44 = arith.divf %42, %43 : vector<64x1xf32>
    %cst_20 = arith.constant 9.99999974E-6 : f32
    %45 = vector.broadcast %cst_20 : f32 to vector<64x1xf32>
    %46 = arith.addf %44, %45 : vector<64x1xf32>
    %47 = math.rsqrt %46 : vector<64x1xf32>
    %48 = vector.broadcast %1 : vector<1x32xf32> to vector<64x32xf32>
    %49 = vector.broadcast %47 : vector<64x1xf32> to vector<64x32xf32>
    %50 = arith.mulf %48, %49 : vector<64x32xf32>
    %51 = arith.mulf %33, %50 : vector<64x32xf32>
    %52 = vector.broadcast %37 : vector<64x1xf32> to vector<64x32xf32>
    %53 = arith.mulf %52, %50 : vector<64x32xf32>
    %54 = vector.broadcast %2 : vector<1x32xf32> to vector<64x32xf32>
    %55 = arith.subf %54, %53 : vector<64x32xf32>
    %56 = arith.addf %51, %55 : vector<64x32xf32>
    %57 = vector.shape_cast %56 : vector<64x32xf32> to vector<8x8x32xf32>
    %c0_21 = arith.constant 0 : index
    %c0_22 = arith.constant 0 : index
    %c0_23 = arith.constant 0 : index
    %c32 = arith.constant 32 : index
    %58 = vector.load %arg5[%c0_21, %c0_22, %c0_23, %c32] : memref<8x2x8x64xf32, #tpu.memory_space<vmem>>, vector<8x1x8x32xf32>
    %59 = vector.shape_cast %58 : vector<8x1x8x32xf32> to vector<8x8x32xf32>
    %60 = vector.shape_cast %57 : vector<8x8x32xf32> to vector<8x1x8x32xf32>
    tpu.vector_store %arg5[%c0_21, %c0_22, %c0_23, %c32], %60 {strides = array<i32>} : memref<8x2x8x64xf32, #tpu.memory_space<vmem>>, vector<8x1x8x32xf32>,
    %c0_24 = arith.constant 0 : index
    %c64 = arith.constant 64 : index
    %61 = vector.load %arg2[%c0_24, %c64] : memref<64x128xf32, #tpu.memory_space<vmem>>, vector<64x64xf32>
    %cst_25 = arith.constant dense<0.000000e+00> : vector<64x64xf32>
    %62 = tpu.matmul %0, %61, %cst_25 {dimension_numbers = #tpu.dot_dimension_numbers<[1], [0], [0], [1], [0, 0, 1, 1], [], []>} : vector<64x64xf32>, vector<64x64xf32>, vector<64x64xf32> -> vector<64x64xf32>
    %63 = vector.extract_strided_slice %62 {offsets = [0, 0], sizes = [64, 32], strides = [1, 1]} : vector<64x64xf32> to vector<64x32xf32>
    %cst_26 = arith.constant dense<0.000000e+00> : vector<64xf32>
    %64 = vector.multi_reduction <add>, %63, %cst_26 [1] : vector<64x32xf32> to vector<64xf32>
    %65 = vector.shape_cast %64 : vector<64xf32> to vector<64x1xf32>
    %cst_27 = arith.constant 3.200000e+01 : f32
    %66 = vector.broadcast %cst_27 : f32 to vector<64x1xf32>
    %67 = arith.divf %65, %66 : vector<64x1xf32>
    %68 = vector.broadcast %67 : vector<64x1xf32> to vector<64x32xf32>
    %69 = arith.subf %63, %68 : vector<64x32xf32>
    %70 = arith.mulf %69, %69 : vector<64x32xf32>
    %cst_28 = arith.constant dense<0.000000e+00> : vector<64xf32>
    %71 = vector.multi_reduction <add>, %70, %cst_28 [1] : vector<64x32xf32> to vector<64xf32>
    %72 = vector.shape_cast %71 : vector<64xf32> to vector<64x1xf32>
    %cst_29 = arith.constant 3.200000e+01 : f32
    %73 = vector.broadcast %cst_29 : f32 to vector<64x1xf32>
    %74 = arith.divf %72, %73 : vector<64x1xf32>
    %cst_30 = arith.constant 9.99999974E-6 : f32
    %75 = vector.broadcast %cst_30 : f32 to vector<64x1xf32>
    %76 = arith.addf %74, %75 : vector<64x1xf32>
    %77 = math.rsqrt %76 : vector<64x1xf32>
    %78 = vector.broadcast %1 : vector<1x32xf32> to vector<64x32xf32>
    %79 = vector.broadcast %77 : vector<64x1xf32> to vector<64x32xf32>
    %80 = arith.mulf %78, %79 : vector<64x32xf32>
    %81 = arith.mulf %63, %80 : vector<64x32xf32>
    %82 = vector.broadcast %67 : vector<64x1xf32> to vector<64x32xf32>
    %83 = arith.mulf %82, %80 : vector<64x32xf32>
    %84 = vector.broadcast %2 : vector<1x32xf32> to vector<64x32xf32>
    %85 = arith.subf %84, %83 : vector<64x32xf32>
    %86 = arith.addf %81, %85 : vector<64x32xf32>
    %87 = vector.shape_cast %86 : vector<64x32xf32> to vector<8x8x32xf32>
    %c0_31 = arith.constant 0 : index
    %c1 = arith.constant 1 : index
    %c0_32 = arith.constant 0 : index
    %c0_33 = arith.constant 0 : index
    %88 = vector.load %arg5[%c0_31, %c1, %c0_32, %c0_33] : memref<8x2x8x64xf32, #tpu.memory_space<vmem>>, vector<8x1x8x32xf32>
    %89 = vector.shape_cast %88 : vector<8x1x8x32xf32> to vector<8x8x32xf32>
    %90 = vector.shape_cast %87 : vector<8x8x32xf32> to vector<8x1x8x32xf32>
    tpu.vector_store %arg5[%c0_31, %c1, %c0_32, %c0_33], %90 {strides = array<i32>} : memref<8x2x8x64xf32, #tpu.memory_space<vmem>>, vector<8x1x8x32xf32>,
    %91 = vector.extract_strided_slice %62 {offsets = [0, 32], sizes = [64, 32], strides = [1, 1]} : vector<64x64xf32> to vector<64x32xf32>
    %cst_34 = arith.constant dense<0.000000e+00> : vector<64xf32>
    %92 = vector.multi_reduction <add>, %91, %cst_34 [1] : vector<64x32xf32> to vector<64xf32>
    %93 = vector.shape_cast %92 : vector<64xf32> to vector<64x1xf32>
    %cst_35 = arith.constant 3.200000e+01 : f32
    %94 = vector.broadcast %cst_35 : f32 to vector<64x1xf32>
    %95 = arith.divf %93, %94 : vector<64x1xf32>
    %96 = vector.broadcast %95 : vector<64x1xf32> to vector<64x32xf32>
    %97 = arith.subf %91, %96 : vector<64x32xf32>
    %98 = arith.mulf %97, %97 : vector<64x32xf32>
    %cst_36 = arith.constant dense<0.000000e+00> : vector<64xf32>
    %99 = vector.multi_reduction <add>, %98, %cst_36 [1] : vector<64x32xf32> to vector<64xf32>
    %100 = vector.shape_cast %99 : vector<64xf32> to vector<64x1xf32>
    %cst_37 = arith.constant 3.200000e+01 : f32
    %101 = vector.broadcast %cst_37 : f32 to vector<64x1xf32>
    %102 = arith.divf %100, %101 : vector<64x1xf32>
    %cst_38 = arith.constant 9.99999974E-6 : f32
    %103 = vector.broadcast %cst_38 : f32 to vector<64x1xf32>
    %104 = arith.addf %102, %103 : vector<64x1xf32>
    %105 = math.rsqrt %104 : vector<64x1xf32>
    %106 = vector.broadcast %1 : vector<1x32xf32> to vector<64x32xf32>
    %107 = vector.broadcast %105 : vector<64x1xf32> to vector<64x32xf32>
    %108 = arith.mulf %106, %107 : vector<64x32xf32>
    %109 = arith.mulf %91, %108 : vector<64x32xf32>
    %110 = vector.broadcast %95 : vector<64x1xf32> to vector<64x32xf32>
    %111 = arith.mulf %110, %108 : vector<64x32xf32>
    %112 = vector.broadcast %2 : vector<1x32xf32> to vector<64x32xf32>
    %113 = arith.subf %112, %111 : vector<64x32xf32>
    %114 = arith.addf %109, %113 : vector<64x32xf32>
    %115 = vector.shape_cast %114 : vector<64x32xf32> to vector<8x8x32xf32>
    %c0_39 = arith.constant 0 : index
    %c1_40 = arith.constant 1 : index
    %c0_41 = arith.constant 0 : index
    %c32_42 = arith.constant 32 : index
    %116 = vector.load %arg5[%c0_39, %c1_40, %c0_41, %c32_42] : memref<8x2x8x64xf32, #tpu.memory_space<vmem>>, vector<8x1x8x32xf32>
    %117 = vector.shape_cast %116 : vector<8x1x8x32xf32> to vector<8x8x32xf32>
    %118 = vector.shape_cast %115 : vector<8x8x32xf32> to vector<8x1x8x32xf32>
    tpu.vector_store %arg5[%c0_39, %c1_40, %c0_41, %c32_42], %118 {strides = array<i32>} : memref<8x2x8x64xf32, #tpu.memory_space<vmem>>, vector<8x1x8x32xf32>,
    return
  }
  func.func @transform_0(%arg0: i32) -> (i32, i32) {
    %c0_i32 = arith.constant 0 : i32
    %c0_i32_0 = arith.constant 0 : i32
    return %arg0, %c0_i32 : i32, i32
  }
  func.func @transform_1(%arg0: i32) -> (i32, i32) {
    %c0_i32 = arith.constant 0 : i32
    %c0_i32_0 = arith.constant 0 : i32
    %c0_i32_1 = arith.constant 0 : i32
    return %c0_i32, %c0_i32_0 : i32, i32
  }
  func.func @transform_2(%arg0: i32) -> (i32, i32) {
    %c0_i32 = arith.constant 0 : i32
    %c0_i32_0 = arith.constant 0 : i32
    %c0_i32_1 = arith.constant 0 : i32
    return %c0_i32, %c0_i32_0 : i32, i32
  }
  func.func @transform_3(%arg0: i32) -> (i32, i32) {
    %c0_i32 = arith.constant 0 : i32
    %c0_i32_0 = arith.constant 0 : i32
    %c0_i32_1 = arith.constant 0 : i32
    return %c0_i32, %c0_i32_0 : i32, i32
  }
  func.func @transform_4(%arg0: i32) -> (i32, i32, i32, i32) {
    %c0_i32 = arith.constant 0 : i32
    %c0_i32_0 = arith.constant 0 : i32
    %c0_i32_1 = arith.constant 0 : i32
    %c0_i32_2 = arith.constant 0 : i32
    return %arg0, %c0_i32, %c0_i32_0, %c0_i32_1 : i32, i32, i32, i32
  }
}

module attributes {stable_mosaic.version = 11 : i64} {
  func.func @_patch_expand_kernel(%arg0: i32, %arg1: memref<64x64xf32, #tpu.memory_space<vmem>>, %arg2: memref<64x128xf32, #tpu.memory_space<vmem>>, %arg3: memref<1x32xf32, #tpu.memory_space<vmem>>, %arg4: memref<1x32xf32, #tpu.memory_space<vmem>>, %arg5: memref<8x2x8x64xf32, #tpu.memory_space<vmem>>) attributes {dimension_semantics = [#tpu.dimension_semantics<parallel>], iteration_bounds = array<i64: 2>, scalar_prefetch = 0 : i64, scratch_operands = 0 : i64, tpu.core_type = #tpu.core_type<tc>, window_params = [{transform_indices = @transform_0, window_bounds = array<i64: 64, 64>}, {pipeline_mode = #tpu.pipeline_mode<synchronous>, transform_indices = @transform_1, window_bounds = array<i64: 64, 128>}, {pipeline_mode = #tpu.pipeline_mode<synchronous>, transform_indices = @transform_2, window_bounds = array<i64: 1, 32>}, {pipeline_mode = #tpu.pipeline_mode<synchronous>, transform_indices = @transform_3, window_bounds = array<i64: 1, 32>}, {transform_indices = @transform_4, window_bounds = array<i64: 8, 2, 8, 64>}]} {
    %c0 = arith.constant 0 : index
    %c0_0 = arith.constant 0 : index
    %0 = vector.load %arg1[%c0, %c0_0] : memref<64x64xf32, #tpu.memory_space<vmem>>, vector<64x64xf32>
    %c0_1 = arith.constant 0 : index
    %c0_2 = arith.constant 0 : index
    %1 = vector.load %arg3[%c0_1, %c0_2] : memref<1x32xf32, #tpu.memory_space<vmem>>, vector<1x32xf32>
    %c0_3 = arith.constant 0 : index
    %c0_4 = arith.constant 0 : index
    %2 = vector.load %arg4[%c0_3, %c0_4] : memref<1x32xf32, #tpu.memory_space<vmem>>, vector<1x32xf32>
    %c0_5 = arith.constant 0 : index
    %c0_6 = arith.constant 0 : index
    %3 = vector.load %arg2[%c0_5, %c0_6] : memref<64x128xf32, #tpu.memory_space<vmem>>, vector<64x64xf32>
    %cst = arith.constant dense<0.000000e+00> : vector<64x64xf32>
    %4 = tpu.matmul %0, %3, %cst {dimension_numbers = #tpu.dot_dimension_numbers<[1], [0], [0], [1], [0, 0, 1, 1], [], []>} : vector<64x64xf32>, vector<64x64xf32>, vector<64x64xf32> -> vector<64x64xf32>
    %5 = vector.extract_strided_slice %4 {offsets = [0, 0], sizes = [64, 32], strides = [1, 1]} : vector<64x64xf32> to vector<64x32xf32>
    %cst_7 = arith.constant dense<0.000000e+00> : vector<64xf32>
    %6 = vector.multi_reduction <add>, %5, %cst_7 [1] : vector<64x32xf32> to vector<64xf32>
    %7 = vector.shape_cast %6 : vector<64xf32> to vector<64x1xf32>
    %cst_8 = arith.constant 3.200000e+01 : f32
    %8 = vector.broadcast %cst_8 : f32 to vector<64x1xf32>
    %9 = arith.divf %7, %8 : vector<64x1xf32>
    %10 = vector.broadcast %9 : vector<64x1xf32> to vector<64x32xf32>
    %11 = arith.subf %5, %10 : vector<64x32xf32>
    %12 = arith.mulf %11, %11 : vector<64x32xf32>
    %cst_9 = arith.constant dense<0.000000e+00> : vector<64xf32>
    %13 = vector.multi_reduction <add>, %12, %cst_9 [1] : vector<64x32xf32> to vector<64xf32>
    %14 = vector.shape_cast %13 : vector<64xf32> to vector<64x1xf32>
    %cst_10 = arith.constant 3.200000e+01 : f32
    %15 = vector.broadcast %cst_10 : f32 to vector<64x1xf32>
    %16 = arith.divf %14, %15 : vector<64x1xf32>
    %cst_11 = arith.constant 9.99999974E-6 : f32
    %17 = vector.broadcast %cst_11 : f32 to vector<64x1xf32>
    %18 = arith.addf %16, %17 : vector<64x1xf32>
    %19 = math.rsqrt %18 : vector<64x1xf32>
    %20 = vector.broadcast %1 : vector<1x32xf32> to vector<64x32xf32>
    %21 = vector.broadcast %19 : vector<64x1xf32> to vector<64x32xf32>
    %22 = arith.mulf %20, %21 : vector<64x32xf32>
    %23 = arith.mulf %5, %22 : vector<64x32xf32>
    %24 = vector.broadcast %9 : vector<64x1xf32> to vector<64x32xf32>
    %25 = arith.mulf %24, %22 : vector<64x32xf32>
    %26 = vector.broadcast %2 : vector<1x32xf32> to vector<64x32xf32>
    %27 = arith.subf %26, %25 : vector<64x32xf32>
    %28 = arith.addf %23, %27 : vector<64x32xf32>
    %29 = vector.shape_cast %28 : vector<64x32xf32> to vector<8x8x32xf32>
    %c0_12 = arith.constant 0 : index
    %c0_13 = arith.constant 0 : index
    %c0_14 = arith.constant 0 : index
    %c0_15 = arith.constant 0 : index
    %30 = vector.load %arg5[%c0_12, %c0_13, %c0_14, %c0_15] : memref<8x2x8x64xf32, #tpu.memory_space<vmem>>, vector<8x1x8x32xf32>
    %31 = vector.shape_cast %30 : vector<8x1x8x32xf32> to vector<8x8x32xf32>
    %32 = vector.shape_cast %29 : vector<8x8x32xf32> to vector<8x1x8x32xf32>
    tpu.vector_store %arg5[%c0_12, %c0_13, %c0_14, %c0_15], %32 {strides = array<i32>} : memref<8x2x8x64xf32, #tpu.memory_space<vmem>>, vector<8x1x8x32xf32>,
    %33 = vector.extract_strided_slice %4 {offsets = [0, 32], sizes = [64, 32], strides = [1, 1]} : vector<64x64xf32> to vector<64x32xf32>
    %cst_16 = arith.constant dense<0.000000e+00> : vector<64xf32>
    %34 = vector.multi_reduction <add>, %33, %cst_16 [1] : vector<64x32xf32> to vector<64xf32>
    %35 = vector.shape_cast %34 : vector<64xf32> to vector<64x1xf32>
    %cst_17 = arith.constant 3.200000e+01 : f32
    %36 = vector.broadcast %cst_17 : f32 to vector<64x1xf32>
    %37 = arith.divf %35, %36 : vector<64x1xf32>
    %38 = vector.broadcast %37 : vector<64x1xf32> to vector<64x32xf32>
    %39 = arith.subf %33, %38 : vector<64x32xf32>
    %40 = arith.mulf %39, %39 : vector<64x32xf32>
    %cst_18 = arith.constant dense<0.000000e+00> : vector<64xf32>
    %41 = vector.multi_reduction <add>, %40, %cst_18 [1] : vector<64x32xf32> to vector<64xf32>
    %42 = vector.shape_cast %41 : vector<64xf32> to vector<64x1xf32>
    %cst_19 = arith.constant 3.200000e+01 : f32
    %43 = vector.broadcast %cst_19 : f32 to vector<64x1xf32>
    %44 = arith.divf %42, %43 : vector<64x1xf32>
    %cst_20 = arith.constant 9.99999974E-6 : f32
    %45 = vector.broadcast %cst_20 : f32 to vector<64x1xf32>
    %46 = arith.addf %44, %45 : vector<64x1xf32>
    %47 = math.rsqrt %46 : vector<64x1xf32>
    %48 = vector.broadcast %1 : vector<1x32xf32> to vector<64x32xf32>
    %49 = vector.broadcast %47 : vector<64x1xf32> to vector<64x32xf32>
    %50 = arith.mulf %48, %49 : vector<64x32xf32>
    %51 = arith.mulf %33, %50 : vector<64x32xf32>
    %52 = vector.broadcast %37 : vector<64x1xf32> to vector<64x32xf32>
    %53 = arith.mulf %52, %50 : vector<64x32xf32>
    %54 = vector.broadcast %2 : vector<1x32xf32> to vector<64x32xf32>
    %55 = arith.subf %54, %53 : vector<64x32xf32>
    %56 = arith.addf %51, %55 : vector<64x32xf32>
    %57 = vector.shape_cast %56 : vector<64x32xf32> to vector<8x8x32xf32>
    %c0_21 = arith.constant 0 : index
    %c0_22 = arith.constant 0 : index
    %c0_23 = arith.constant 0 : index
    %c32 = arith.constant 32 : index
    %58 = vector.load %arg5[%c0_21, %c0_22, %c0_23, %c32] : memref<8x2x8x64xf32, #tpu.memory_space<vmem>>, vector<8x1x8x32xf32>
    %59 = vector.shape_cast %58 : vector<8x1x8x32xf32> to vector<8x8x32xf32>
    %60 = vector.shape_cast %57 : vector<8x8x32xf32> to vector<8x1x8x32xf32>
    tpu.vector_store %arg5[%c0_21, %c0_22, %c0_23, %c32], %60 {strides = array<i32>} : memref<8x2x8x64xf32, #tpu.memory_space<vmem>>, vector<8x1x8x32xf32>,
    %c0_24 = arith.constant 0 : index
    %c64 = arith.constant 64 : index
    %61 = vector.load %arg2[%c0_24, %c64] : memref<64x128xf32, #tpu.memory_space<vmem>>, vector<64x64xf32>
    %cst_25 = arith.constant dense<0.000000e+00> : vector<64x64xf32>
    %62 = tpu.matmul %0, %61, %cst_25 {dimension_numbers = #tpu.dot_dimension_numbers<[1], [0], [0], [1], [0, 0, 1, 1], [], []>} : vector<64x64xf32>, vector<64x64xf32>, vector<64x64xf32> -> vector<64x64xf32>
    %63 = vector.extract_strided_slice %62 {offsets = [0, 0], sizes = [64, 32], strides = [1, 1]} : vector<64x64xf32> to vector<64x32xf32>
    %cst_26 = arith.constant dense<0.000000e+00> : vector<64xf32>
    %64 = vector.multi_reduction <add>, %63, %cst_26 [1] : vector<64x32xf32> to vector<64xf32>
    %65 = vector.shape_cast %64 : vector<64xf32> to vector<64x1xf32>
    %cst_27 = arith.constant 3.200000e+01 : f32
    %66 = vector.broadcast %cst_27 : f32 to vector<64x1xf32>
    %67 = arith.divf %65, %66 : vector<64x1xf32>
    %68 = vector.broadcast %67 : vector<64x1xf32> to vector<64x32xf32>
    %69 = arith.subf %63, %68 : vector<64x32xf32>
    %70 = arith.mulf %69, %69 : vector<64x32xf32>
    %cst_28 = arith.constant dense<0.000000e+00> : vector<64xf32>
    %71 = vector.multi_reduction <add>, %70, %cst_28 [1] : vector<64x32xf32> to vector<64xf32>
    %72 = vector.shape_cast %71 : vector<64xf32> to vector<64x1xf32>
    %cst_29 = arith.constant 3.200000e+01 : f32
    %73 = vector.broadcast %cst_29 : f32 to vector<64x1xf32>
    %74 = arith.divf %72, %73 : vector<64x1xf32>
    %cst_30 = arith.constant 9.99999974E-6 : f32
    %75 = vector.broadcast %cst_30 : f32 to vector<64x1xf32>
    %76 = arith.addf %74, %75 : vector<64x1xf32>
    %77 = math.rsqrt %76 : vector<64x1xf32>
    %78 = vector.broadcast %1 : vector<1x32xf32> to vector<64x32xf32>
    %79 = vector.broadcast %77 : vector<64x1xf32> to vector<64x32xf32>
    %80 = arith.mulf %78, %79 : vector<64x32xf32>
    %81 = arith.mulf %63, %80 : vector<64x32xf32>
    %82 = vector.broadcast %67 : vector<64x1xf32> to vector<64x32xf32>
    %83 = arith.mulf %82, %80 : vector<64x32xf32>
    %84 = vector.broadcast %2 : vector<1x32xf32> to vector<64x32xf32>
    %85 = arith.subf %84, %83 : vector<64x32xf32>
    %86 = arith.addf %81, %85 : vector<64x32xf32>
    %87 = vector.shape_cast %86 : vector<64x32xf32> to vector<8x8x32xf32>
    %c0_31 = arith.constant 0 : index
    %c1 = arith.constant 1 : index
    %c0_32 = arith.constant 0 : index
    %c0_33 = arith.constant 0 : index
    %88 = vector.load %arg5[%c0_31, %c1, %c0_32, %c0_33] : memref<8x2x8x64xf32, #tpu.memory_space<vmem>>, vector<8x1x8x32xf32>
    %89 = vector.shape_cast %88 : vector<8x1x8x32xf32> to vector<8x8x32xf32>
    %90 = vector.shape_cast %87 : vector<8x8x32xf32> to vector<8x1x8x32xf32>
    tpu.vector_store %arg5[%c0_31, %c1, %c0_32, %c0_33], %90 {strides = array<i32>} : memref<8x2x8x64xf32, #tpu.memory_space<vmem>>, vector<8x1x8x32xf32>,
    %91 = vector.extract_strided_slice %62 {offsets = [0, 32], sizes = [64, 32], strides = [1, 1]} : vector<64x64xf32> to vector<64x32xf32>
    %cst_34 = arith.constant dense<0.000000e+00> : vector<64xf32>
    %92 = vector.multi_reduction <add>, %91, %cst_34 [1] : vector<64x32xf32> to vector<64xf32>
    %93 = vector.shape_cast %92 : vector<64xf32> to vector<64x1xf32>
    %cst_35 = arith.constant 3.200000e+01 : f32
    %94 = vector.broadcast %cst_35 : f32 to vector<64x1xf32>
    %95 = arith.divf %93, %94 : vector<64x1xf32>
    %96 = vector.broadcast %95 : vector<64x1xf32> to vector<64x32xf32>
    %97 = arith.subf %91, %96 : vector<64x32xf32>
    %98 = arith.mulf %97, %97 : vector<64x32xf32>
    %cst_36 = arith.constant dense<0.000000e+00> : vector<64xf32>
    %99 = vector.multi_reduction <add>, %98, %cst_36 [1] : vector<64x32xf32> to vector<64xf32>
    %100 = vector.shape_cast %99 : vector<64xf32> to vector<64x1xf32>
    %cst_37 = arith.constant 3.200000e+01 : f32
    %101 = vector.broadcast %cst_37 : f32 to vector<64x1xf32>
    %102 = arith.divf %100, %101 : vector<64x1xf32>
    %cst_38 = arith.constant 9.99999974E-6 : f32
    %103 = vector.broadcast %cst_38 : f32 to vector<64x1xf32>
    %104 = arith.addf %102, %103 : vector<64x1xf32>
    %105 = math.rsqrt %104 : vector<64x1xf32>
    %106 = vector.broadcast %1 : vector<1x32xf32> to vector<64x32xf32>
    %107 = vector.broadcast %105 : vector<64x1xf32> to vector<64x32xf32>
    %108 = arith.mulf %106, %107 : vector<64x32xf32>
    %109 = arith.mulf %91, %108 : vector<64x32xf32>
    %110 = vector.broadcast %95 : vector<64x1xf32> to vector<64x32xf32>
    %111 = arith.mulf %110, %108 : vector<64x32xf32>
    %112 = vector.broadcast %2 : vector<1x32xf32> to vector<64x32xf32>
    %113 = arith.subf %112, %111 : vector<64x32xf32>
    %114 = arith.addf %109, %113 : vector<64x32xf32>
    %115 = vector.shape_cast %114 : vector<64x32xf32> to vector<8x8x32xf32>
    %c0_39 = arith.constant 0 : index
    %c1_40 = arith.constant 1 : index
    %c0_41 = arith.constant 0 : index
    %c32_42 = arith.constant 32 : index
    %116 = vector.load %arg5[%c0_39, %c1_40, %c0_41, %c32_42] : memref<8x2x8x64xf32, #tpu.memory_space<vmem>>, vector<8x1x8x32xf32>
    %117 = vector.shape_cast %116 : vector<8x1x8x32xf32> to vector<8x8x32xf32>
    %118 = vector.shape_cast %115 : vector<8x8x32xf32> to vector<8x1x8x32xf32>
    tpu.vector_store %arg5[%c0_39, %c1_40, %c0_41, %c32_42], %118 {strides = array<i32>} : memref<8x2x8x64xf32, #tpu.memory_space<vmem>>, vector<8x1x8x32xf32>,
    return
  }
  func.func @transform_0(%arg0: i32) -> (i32, i32) {
    %c0_i32 = arith.constant 0 : i32
    %c0_i32_0 = arith.constant 0 : i32
    return %arg0, %c0_i32 : i32, i32
  }
  func.func @transform_1(%arg0: i32) -> (i32, i32) {
    %c0_i32 = arith.constant 0 : i32
    %c0_i32_0 = arith.constant 0 : i32
    %c0_i32_1 = arith.constant 0 : i32
    return %c0_i32, %c0_i32_0 : i32, i32
  }
  func.func @transform_2(%arg0: i32) -> (i32, i32) {
    %c0_i32 = arith.constant 0 : i32
    %c0_i32_0 = arith.constant 0 : i32
    %c0_i32_1 = arith.constant 0 : i32
    return %c0_i32, %c0_i32_0 : i32, i32
  }
  func.func @transform_3(%arg0: i32) -> (i32, i32) {
    %c0_i32 = arith.constant 0 : i32
    %c0_i32_0 = arith.constant 0 : i32
    %c0_i32_1 = arith.constant 0 : i32
    return %c0_i32, %c0_i32_0 : i32, i32
  }
  func.func @transform_4(%arg0: i32) -> (i32, i32, i32, i32) {
    %c0_i32 = arith.constant 0 : i32
    %c0_i32_0 = arith.constant 0 : i32
    %c0_i32_1 = arith.constant 0 : i32
    %c0_i32_2 = arith.constant 0 : i32
    return %arg0, %c0_i32, %c0_i32_0, %c0_i32_1 : i32, i32, i32, i32
  }
}

</mosaic_0001>

<bundles_post_ra>
// kernel: tpu_custom_call.1
= control target key start
LH: loop header
LB: loop body
LE: loop exit
PB: predicated region body
PF: predicated region fallthrough
CT: control target
= control target key end

     0   :  { %9 = vsyncpa [#allocation3], 0  ;;  %s2489_s0 = inlined_call_operand.vmem [shape: f32[128,64], index: 0, kind: input, shape index: {}]   ;;  %s2490_s1 = inlined_call_operand.vmem [shape: f32[64,128], index: 1, kind: input, shape index: {}]   ;;  %s2491_s2 = inlined_call_operand.vmem [shape: f32[1,32], index: 2, kind: input, shape index: {}]   ;;  %s2492_s3 = inlined_call_operand.vmem [shape: f32[1,32], index: 3, kind: input, shape index: {}]   ;;  %s2493_s4 = inlined_call_operand.hbm [shape: f32[16,2,8,64], index: 4, kind: output, shape index: {}]  }
   0x1   :  { %11 = vsyncpa [#allocation3 + $0x1], 0  ;;  %s1809_s15 = smov 0   ;;  %s1811_s16 = smov 0  }
   0x2   :  { %s1813_s17 = smov 0   ;;  %s1815_s18 = smov 0  }
   0x3 LB: > { %s1830_s19 = sadd.s32 4294967295, %s1776_s18   ;;  %s1417_s20 = sadd.s32 4294967294, %s1776_s18   ;;  %s1776_s18 = sphi %s1815_s18, %s2499_s18   ;;  %s1772_s17 = sphi %s1813_s17, %s2498_s17   ;;  %s1768_s16 = sphi %s1811_s16, %s2497_s16   ;;  %s1764_s15 = sphi %s1809_s15, %s2496_s15  }
   0x4   : > { %s1834_s21 = sadd.s32 1, %s1776_s18   ;;  %s113_s22 = sadd.s32 1, %s1772_s17 }
   0x5   : > { %s110_s23 = ssub.s32 %s1776_s18, %s1834_s21  ;;  %p123_p0 = scmp.ne.s32.totalorder %s1772_s17, %s1768_s16 }
   0x6   : > { %p111_p1 = scmp.eq.s32.totalorder %s110_s23, 0  ;;  %p124_p2 = scmp.eq.s32.totalorder %s1830_s19, 1 }
   0x7   : > { %p129_p3 = scmp.ne.s32.totalorder %s1768_s16, %s1764_s15  ;;  %p130_p4 = scmp.eq.s32.totalorder %s1417_s20, 1 }
   0x8   : > { %s1845_s24 = scalar_select %p111_p1, %s1772_s17, %s113_s22  }
   0x9   : > { %p1847_p5 = por %p124_p2, %p123_p0  ;;  %p1851_p6 = por %p130_p4, %p129_p3 }
   0xa   : > { %p1420_p7 = scmp.ge.s32.totalorder %s1776_s18, 1  ;;  %p166_p8 = scmp.lt.s32.totalorder %s1776_s18, 3 }
   0xc   : > { %p167_p9 = pnand %p1420_p7, %p166_p8 }
   0xd   : > { %v209_v0 = vld [vmem:[%s2490_s1] sm:$0xff] (!%p167_p9)  ;;  %v210_v1 = vld [vmem:[%s2490_s1 + $0x8] sm:$0xff] (!%p167_p9)  ;;  %v211_v2 = vld [vmem:[%s2490_s1 + $0x10] sm:$0xff] (!%p167_p9)  ;;  %s1422_s7 = sshll.u32 (!%p167_p9), %s1830_s19, 3  ;;  %s1778_s14 = smov (!%p167_p9), 64   ;;  %vm217_vm0 = vcmask (!%p167_p9), 523264  }
   0xe   : > { %170 = sbr.rel (%p167_p9) target bundleno = 1144 (0x478), region = 36  ;;  %v1554_v3 = vpack.c.bf16 (!%p167_p9), %v210_v1, %v209_v0  ;;  %v1630_v4 = vpack.i.bf16 (!%p167_p9), %v210_v1, %v209_v0  ;;  %v212_v5 = vld [vmem:[%s2490_s1 + $0x18] sm:$0xff] (!%p167_p9)  ;;  %v213_v6 = vld [vmem:[%s2490_s1 + $0x20] sm:$0xff] (!%p167_p9)  ;;  %v214_v7 = vld [vmem:[%s2490_s1 + $0x28] sm:$0xff] (!%p167_p9)  ;;  %p193_p10 = scmp.lt.s32.totalorder (!%p167_p9), %s1422_s7, 15  ;;  %vm347_vm1 = vcmask (!%p167_p9), 261120  }
   0xf   : > { %v1558_v8 = vpack.c.bf16 (!%p167_p9), %v212_v5, %v211_v2  ;;  %v1640_v9 = vpack.i.bf16 (!%p167_p9), %v214_v7, %v213_v6  ;;  %v1635_v10 = vpack.i.bf16 (!%p167_p9), %v212_v5, %v211_v2  ;;  %v215_v11 = vld [vmem:[%s2490_s1 + $0x30] sm:$0xff] (!%p167_p9)  ;;  %v216_v12 = vld [vmem:[%s2490_s1 + $0x38] sm:$0xff] (!%p167_p9)  ;;  %v1562_v14 = vpack.c.bf16 (!%p167_p9), %v214_v7, %v213_v6  ;;  %s1779_s6 = smov (!%p167_p9), 96   ;;  %s189_s9 = sand.u32 (!%p167_p9), 1, %s1768_s16  }
  0x10   : > { %1555 = vmatprep.subr.bf16.mxu0 (!%p167_p9), %v1554_v3  ;;  %1631 = vrot.lane.b32.xlu0 (!%p167_p9), %v1630_v4, %s1778_s14  ;;  %v1645_v13 = vpack.i.bf16 (!%p167_p9), %v216_v12, %v215_v11  ;;  %v1566_v16 = vpack.c.bf16 (!%p167_p9), %v216_v12, %v215_v11  ;;  %s1421_s12 = sshll.u32 (!%p167_p9), %s189_s9, 7  ;;  %vm769_vm2 = vcmask (!%p167_p9), 523520   ;;  %s1465_s20 = sshll.u32 (!%p167_p9), %s1830_s19, 11 }
  0x11   : > { %1557 = vmatpush3.bf16.msra.mxu0 (!%p167_p9), %v1554_v3  ;;  %1641 = vrot.lane.b32.xlu1 (!%p167_p9), %v1640_v9, %s1778_s14  ;;  %s2115_s13 = scalar_lea.vmem (!%p167_p9), [#allocation2], %s1421_s12  ;;  %s2448_s19 = scalar_lea.sflag (!%p167_p9), [#allocation3], %s189_s9 }
  0x12   : > { %1559 = vmatprep.subr.bf16.mxu0 (!%p167_p9), %v1558_v8  ;;  %s1355_s22 = sshll.u32 (!%p167_p9), %s2115_s13, 4  ;;  %s1781_s30 = smov (!%p167_p9), [#allocation2]   ;;  %s2440_s22 = int_to_ptr.vmem [resolvable:$true] %s1355_s22 }
  0x13   : > { %s1714_s29 = scalar_lea.vmem (!%p167_p9), %s2440_s22, 2048 }
  0x14   : > { %1636 = vrot.lane.b32.xlu0 (!%p167_p9), %v1635_v10, %s1778_s14  ;;  %p1715_p11 = scmp.ne.s32.totalorder (!%p167_p9), %s2440_s22, %s1714_s29 }
  0x15   : > { %s2501_s7 = smov (!%p193_p10, %s1422_s7), 15  ;;  %1561 = vmatpush3.bf16.msra.mxu0 %v1558_v8  ;;  %1646 = vrot.lane.b32.xlu1 %v1645_v13, %s1778_s14  ;;  %s1780_s14 = smov 32  }
  0x16   : > { %s1423_s28 = sshll.u32 %s2501_s7, 3  ;;  %1563 = vmatprep.subr.bf16.mxu0 %v1562_v14  ;;  %p1716_p12 = pnand %p1715_p11, %p1847_p5 }
  0x17   : > { %s196_s5 = scalar_lea.vmem %s2489_s0, %s1423_s28  ;;  %s2438_s28 = scalar_lea.hbm %s2493_s4, %s1465_s20 }
  0x18   : > { %v199_v15 = vld [vmem:[%s196_s5] sm:$0xff]  ;;  %v200_v17 = vld [vmem:[%s196_s5 + $0x8] sm:$0xff]  ;;  %v201_v18 = vld [vmem:[%s196_s5 + $0x10] sm:$0xff]  ;;  %p1717_p13 = pneg %p1716_p12 }
  0x19   : > { %1514 = vmatprep.mubr.msk.f32.mxu0 %vm217_vm0, %v199_v15  ;;  %1542 = vmatprep.mubr.msk.f32.mxu1 %vm217_vm0, %v199_v15  ;;  %v202_v19 = vld [vmem:[%s196_s5 + $0x18] sm:$0xff]  ;;  %v203_v20 = vld [vmem:[%s196_s5 + $0x20] sm:$0xff]  ;;  %v204_v21 = vld [vmem:[%s196_s5 + $0x28] sm:$0xff] }
  0x1a   : > { %1565 = vmatpush3.bf16.msra.mxu0 %v1562_v14  ;;  %v205_v22 = vld [vmem:[%s196_s5 + $0x30] sm:$0xff]  ;;  %v206_v23 = vld [vmem:[%s196_s5 + $0x38] sm:$0xff]  ;;  %s1718_s5 = sshll.u32 %s1781_s30, 4  ;;  %s1719_s5 = int_to_ptr.vmem [resolvable:$false] %s1718_s5 }
  0x1b   : > { %1567 = vmatprep.subr.bf16.mxu0 %v1566_v16  ;;  %p1721_p0 = scmp.lt.s32.totalorder %s2440_s22, %s1719_s5 }
  0x1e   : > { %1569 = vmatpush3.bf16.msra.mxu0 %v1566_v16 }
  0x21   : > { %1515 = vmatmul.mubr.msk.f32.vlgmr.msra.gmra.mrb[0].mxu0 %vm217_vm0, %v200_v17 }
  0x22   : > { %1517 = vmatprep.mubr.msk.f32.mxu0 %vm217_vm0, %v201_v18 }
  0x25   : > { %1518 = vmatmul.mubr.msk.f32.gmra.mrb[2].mxu0 %vm217_vm0, %v202_v19 }
  0x26   : > { %1520 = vmatprep.mubr.msk.f32.mxu0 %vm217_vm0, %v203_v20 }
  0x29   : > { %1521 = vmatmul.mubr.msk.f32.gmra.mrb[4].mxu0 %vm217_vm0, %v204_v21 }
  0x2a   : > { %1523 = vmatprep.mubr.msk.f32.mxu0 %vm217_vm0, %v205_v22 }
  0x2d   : > { %1524 = vmatmul.mubr.msk.f32.gmra.mrb[6].mxu0 %vm217_vm0, %v206_v23 }
  0x82   : > { %v1632_v24 = vpop.permute.xlu0 %1631 }
  0x83   : > { %v1634_v25 = vunpack.i.h.bf16 %v1632_v24  ;;  %v1633_v26 = vunpack.i.l.bf16 %v1632_v24  ;;  %v1642_v27 = vpop.permute.xlu1 %1641 }
  0x84   : > { %v1644_v29 = vunpack.i.h.bf16 %v1642_v27  ;;  %v1643_v30 = vunpack.i.l.bf16 %v1642_v27 }
  0x85   : > { %v1570_v28 = vpack.c.bf16 %v1634_v25, %v1633_v26 }
  0x86   : > { %v1637_v31 = vpop.permute.xlu0 %1636  ;;  %v1578_v38 = vpack.c.bf16 %v1644_v29, %v1643_v30 }
  0x87   : > { %v1639_v32 = vunpack.i.h.bf16 %v1637_v31  ;;  %v1638_v33 = vunpack.i.l.bf16 %v1637_v31  ;;  %1571 = vmatprep.subr.bf16.mxu1 %v1570_v28  ;;  %v1647_v34 = vpop.permute.xlu1 %1646 }
  0x88   : > { %1573 = vmatpush3.bf16.msra.mxu1 %v1570_v28  ;;  %v1649_v36 = vunpack.i.h.bf16 %v1647_v34  ;;  %v1648_v37 = vunpack.i.l.bf16 %v1647_v34 }
  0x89   : > { %v1574_v35 = vpack.c.bf16 %v1639_v32, %v1638_v33 }
  0x8a   : > { %v1582_v39 = vpack.c.bf16 %v1649_v36, %v1648_v37 }
  0x8b   : > { %1575 = vmatprep.subr.bf16.mxu1 %v1574_v35 }
  0x8c   : > { %1577 = vmatpush3.bf16.msra.mxu1 %v1574_v35 }
  0x8d   : > { %1579 = vmatprep.subr.bf16.mxu1 %v1578_v38 }
  0x90   : > { %1581 = vmatpush3.bf16.msra.mxu1 %v1578_v38 }
  0x91   : > { %1583 = vmatprep.subr.bf16.mxu1 %v1582_v39 }
  0x94   : > { %1585 = vmatpush3.bf16.msra.mxu1 %v1582_v39 }
  0x97   : > { %1543 = vmatmul.mubr.msk.f32.vlgmr.msra.gmra.mrb[0].mxu1 %vm217_vm0, %v200_v17 }
  0x98   : > { %1545 = vmatprep.mubr.msk.f32.mxu1 %vm217_vm0, %v201_v18 }
  0x9b   : > { %1546 = vmatmul.mubr.msk.f32.gmra.mrb[2].mxu1 %vm217_vm0, %v202_v19 }
  0x9c   : > { %1548 = vmatprep.mubr.msk.f32.mxu1 %vm217_vm0, %v203_v20 }
  0x9f   : > { %1549 = vmatmul.mubr.msk.f32.gmra.mrb[4].mxu1 %vm217_vm0, %v204_v21 }
  0xa0   : > { %1551 = vmatprep.mubr.msk.f32.mxu1 %vm217_vm0, %v205_v22 }
  0xa3   : > { %1552 = vmatmul.mubr.msk.f32.gmra.mrb[6].mxu1 %vm217_vm0, %v206_v23 }
  0xf4   : > { %v1901_v40 = vpop.f32.mrb[0].mxu0 }
  0xf5   : > { %515 = vrot.lane.b32.xlu0 %v1901_v40, %s1779_s6  ;;  %v1905_v41 = vpop.f32.mrb[1].mxu0  ;;  %v351_v42 = vsel %vm347_vm1, %v1901_v40, 0.0 }
  0xf6   : > { %352 = vadd.xlane.f32.xlu1 %v351_v42  ;;  %v348_v49 = vsel %vm347_vm1, %v1905_v41, 0.0 }
  0xf8   : > { %v1909_v43 = vpop.f32.mrb[2].mxu0 }
  0xf9   : > { %v1911_v44 = vpop.f32.mrb[3].mxu0  ;;  %v357_v50 = vsel %vm347_vm1, %v1909_v43, 0.0 }
  0xfa   : > { %v354_v51 = vsel %vm347_vm1, %v1911_v44, 0.0 }
  0xfc   : > { %v1913_v45 = vpop.f32.mrb[4].mxu0 }
  0xfd   : > { %v1915_v46 = vpop.f32.mrb[5].mxu0  ;;  %v363_v52 = vsel %vm347_vm1, %v1913_v45, 0.0 }
  0xfe   : > { %v360_v53 = vsel %vm347_vm1, %v1915_v46, 0.0 }
 0x100   : > { %v1917_v47 = vpop.f32.mrb[6].mxu0 }
 0x101   : > { %v1919_v48 = vpop.f32.mrb[7].mxu0  ;;  %v369_v54 = vsel %vm347_vm1, %v1917_v47, 0.0 }
 0x102   : > { %v366_v55 = vsel %vm347_vm1, %v1919_v48, 0.0 }
 0x107   : > { %513 = vrot.lane.b32.xlu1 %v1905_v41, %s1779_s6 }
 0x10b   : > { %519 = vrot.lane.b32.xlu1 %v1909_v43, %s1779_s6 }
 0x10f   : > { %517 = vrot.lane.b32.xlu1 %v1911_v44, %s1779_s6 }
 0x113   : > { %523 = vrot.lane.b32.xlu1 %v1913_v45, %s1779_s6 }
 0x114   : > { %349 = vadd.xlane.f32.xlu0 %v348_v49 }
 0x118   : > { %358 = vadd.xlane.f32.xlu0 %v357_v50 }
 0x11c   : > { %355 = vadd.xlane.f32.xlu0 %v354_v51 }
 0x120   : > { %364 = vadd.xlane.f32.xlu0 %v363_v52 }
 0x136   : > { %521 = vrot.lane.b32.xlu0 %v1915_v46, %s1779_s6 }
 0x137   : > { %361 = vadd.xlane.f32.xlu1 %v360_v53 }
 0x148   : > { %527 = vrot.lane.b32.xlu1 %v1917_v47, %s1779_s6 }
 0x155   : > { %370 = vadd.xlane.f32.xlu0 %v369_v54 }
 0x167   : > { %v516_v1 = vpop.permute.xlu0 %515 }
 0x168   : > { %v540_v2 = vsel %vm347_vm1, %v516_v1, 0.0 }
 0x16a   : > { %v1949_v56 = vpop.f32.mrb[0].mxu1 }
 0x16b   : > { %525 = vrot.lane.b32.xlu0 %v1919_v48, %s1779_s6  ;;  %v1951_v57 = vpop.f32.mrb[1].mxu1 }
 0x16c   : > { %367 = vadd.xlane.f32.xlu1 %v366_v55 }
 0x16e   : > { %v1955_v58 = vpop.f32.mrb[2].mxu1 }
 0x16f   : > { %1076 = vrot.lane.b32.xlu0 %v1951_v57, %s1779_s6  ;;  %v1957_v59 = vpop.f32.mrb[3].mxu1 }
 0x172   : > { %v1959_v60 = vpop.f32.mrb[4].mxu1 }
 0x173   : > { %v1961_v61 = vpop.f32.mrb[5].mxu1 }
 0x176   : > { %v1963_v62 = vpop.f32.mrb[6].mxu1 }
 0x177   : > { %v1965_v63 = vpop.f32.mrb[7].mxu1 }
 0x17d   : > { %1078 = vrot.lane.b32.xlu1 %v1949_v56, %s1779_s6 }
 0x181   : > { %1082 = vrot.lane.b32.xlu1 %v1955_v58, %s1779_s6 }
 0x183   : > { %v353_v0 = vpop.xlane.xlu1 %352 }
 0x184   : > { %v2002_v31 = vmul.f32 0.03125, %v353_v0 }
 0x186   : > { %v382_v35 = vsub.f32 %v1901_v40, %v2002_v31 }
 0x187   : > { %v514_v3 = vpop.permute.xlu1 %513 }
 0x188   : > { %v537_v4 = vsel %vm347_vm1, %v514_v3, 0.0  ;;  %v390_v39 = vmul.f32 %v382_v35, %v382_v35 }
 0x18a   : > { %v400_v49 = vsel %vm347_vm1, %v390_v39, 0.0  ;;  %v932_v39 = vsel %vm347_vm1, %v1955_v58, 0.0 }
 0x18b   : > { %v520_v5 = vpop.permute.xlu1 %519 }
 0x18c   : > { %v546_v14 = vsel %vm347_vm1, %v520_v5, 0.0 }
 0x18e   : > { %541 = vadd.xlane.f32.xlu0 %v540_v2 }
 0x18f   : > { %v518_v6 = vpop.permute.xlu1 %517 }
 0x190   : > { %v543_v7 = vsel %vm347_vm1, %v518_v6, 0.0 }
 0x192   : > { %538 = vadd.xlane.f32.xlu0 %v537_v4 }
 0x193   : > { %v524_v10 = vpop.permute.xlu1 %523 }
 0x194   : > { %v552_v16 = vsel %vm347_vm1, %v524_v10, 0.0 }
 0x1a1   : > { %v350_v8 = vpop.xlane.xlu0 %349 }
 0x1a2   : > { %v1984_v13 = vmul.f32 0.03125, %v350_v8 }
 0x1a4   : > { %v381_v17 = vsub.f32 %v1905_v41, %v1984_v13 }
 0x1a5   : > { %544 = vadd.xlane.f32.xlu1 %v543_v7  ;;  %v359_v9 = vpop.xlane.xlu0 %358 }
 0x1a6   : > { %v1987_v15 = vmul.f32 0.03125, %v359_v9  ;;  %v389_v22 = vmul.f32 %v381_v17, %v381_v17 }
 0x1a8   : > { %1080 = vrot.lane.b32.xlu0 %v1957_v59, %s1779_s6  ;;  %v384_v23 = vsub.f32 %v1909_v43, %v1987_v15  ;;  %v397_v25 = vsel %vm347_vm1, %v389_v22, 0.0 }
 0x1a9   : > { %v356_v11 = vpop.xlane.xlu0 %355 }
 0x1aa   : > { %v392_v26 = vmul.f32 %v384_v23, %v384_v23  ;;  %v2005_v34 = vmul.f32 0.03125, %v356_v11 }
 0x1ac   : > { %1084 = vrot.lane.b32.xlu0 %v1961_v61, %s1779_s6  ;;  %v406_v29 = vsel %vm347_vm1, %v392_v26, 0.0  ;;  %v383_v42 = vsub.f32 %v1911_v44, %v2005_v34 }
 0x1ad   : > { %v365_v18 = vpop.xlane.xlu0 %364 }
 0x1ae   : > { %v1992_v20 = vmul.f32 0.03125, %v365_v18  ;;  %v391_v50 = vmul.f32 %v383_v42, %v383_v42  ;;  %v935_v42 = vsel %vm347_vm1, %v1961_v61, 0.0 }
 0x1b0   : > { %1088 = vrot.lane.b32.xlu0 %v1965_v63, %s1779_s6  ;;  %v386_v27 = vsub.f32 %v1913_v45, %v1992_v20  ;;  %v403_v52 = vsel %vm347_vm1, %v391_v50, 0.0  ;;  %v941_v50 = vsel %vm347_vm1, %v1965_v63, 0.0 }
 0x1b1   : > { %v522_v24 = vpop.permute.xlu0 %521 }
 0x1b2   : > { %v549_v28 = vsel %vm347_vm1, %v522_v24, 0.0  ;;  %v394_v30 = vmul.f32 %v386_v27, %v386_v27 }
 0x1b4   : > { %v412_v33 = vsel %vm347_vm1, %v394_v30, 0.0 }
 0x1b6   : > { %1086 = vrot.lane.b32.xlu1 %v1959_v60, %s1779_s6 }
 0x1ba   : > { %1090 = vrot.lane.b32.xlu1 %v1963_v62, %s1779_s6 }
 0x1c4   : > { %v362_v12 = vpop.xlane.xlu1 %361 }
 0x1c5   : > { %v2009_v37 = vmul.f32 0.03125, %v362_v12 }
 0x1c7   : > { %v385_v51 = vsub.f32 %v1915_v46, %v2009_v37 }
 0x1c8   : > { %v528_v19 = vpop.permute.xlu1 %527 }
 0x1c9   : > { %v558_v21 = vsel %vm347_vm1, %v528_v19, 0.0  ;;  %v393_v53 = vmul.f32 %v385_v51, %v385_v51  ;;  %v923_v19 = vsel %vm347_vm1, %v1951_v57, 0.0  ;;  %v944_v51 = vsel %vm347_vm1, %v1963_v62, 0.0 }
 0x1cb   : > { %v409_v54 = vsel %vm347_vm1, %v393_v53, 0.0 }
 0x1cf   : > { %547 = vadd.xlane.f32.xlu0 %v546_v14 }
 0x1d3   : > { %553 = vadd.xlane.f32.xlu0 %v552_v16 }
 0x1d7   : > { %559 = vadd.xlane.f32.xlu0 %v558_v21 }
 0x1db   : > { %398 = vadd.xlane.f32.xlu0 %v397_v25 }
 0x1de   : > { %550 = vadd.xlane.f32.xlu1 %v549_v28 }
 0x1df   : > { %407 = vadd.xlane.f32.xlu0 %v406_v29 }
 0x1e2   : > { %v371_v32 = vpop.xlane.xlu0 %370 }
 0x1e3   : > { %413 = vadd.xlane.f32.xlu0 %v412_v33  ;;  %v2032_v23 = vmul.f32 0.03125, %v371_v32 }
 0x1e5   : > { %v388_v26 = vsub.f32 %v1917_v47, %v2032_v23 }
 0x1e6   : > { %v526_v36 = vpop.permute.xlu0 %525 }
 0x1e7   : > { %v555_v38 = vsel %vm347_vm1, %v526_v36, 0.0  ;;  %v396_v30 = vmul.f32 %v388_v26, %v388_v26  ;;  %v926_v36 = vsel %vm347_vm1, %v1949_v56, 0.0 }
 0x1e8   : > { %556 = vadd.xlane.f32.xlu1 %v555_v38  ;;  %v929_v38 = vsel %vm347_vm1, %v1957_v59, 0.0 }
 0x1e9   : > { %v418_v32 = vsel %vm347_vm1, %v396_v30, 0.0 }
 0x1ea   : > { %v1077_v6 = vpop.permute.xlu0 %1076 }
 0x1eb   : > { %v1100_v9 = vsel %vm347_vm1, %v1077_v6, 0.0 }
 0x1ec   : > { %401 = vadd.xlane.f32.xlu1 %v400_v49  ;;  %v938_v49 = vsel %vm347_vm1, %v1959_v60, 0.0 }
 0x1f0   : > { %404 = vadd.xlane.f32.xlu1 %v403_v52 }
 0x1f4   : > { %410 = vadd.xlane.f32.xlu1 %v409_v54 }
 0x1f9   : > { %v368_v55 = vpop.xlane.xlu1 %367 }
 0x1fa   : > { %v2019_v0 = vmul.f32 0.03125, %v368_v55 }
 0x1fc   : > { %v387_v1 = vsub.f32 %v1919_v48, %v2019_v0 }
 0x1fd   : > { %v1079_v2 = vpop.permute.xlu1 %1078 }
 0x1fe   : > { %v1103_v3 = vsel %vm347_vm1, %v1079_v2, 0.0  ;;  %v395_v4 = vmul.f32 %v387_v1, %v387_v1 }
 0x1ff   : > { %1104 = vadd.xlane.f32.xlu0 %v1103_v3 }
 0x200   : > { %v415_v5 = vsel %vm347_vm1, %v395_v4, 0.0 }
 0x201   : > { %416 = vadd.xlane.f32.xlu1 %v415_v5  ;;  %v1083_v7 = vpop.permute.xlu1 %1082 }
 0x202   : > { %v1109_v8 = vsel %vm347_vm1, %v1083_v7, 0.0 }
 0x203   : > { %1110 = vadd.xlane.f32.xlu0 %v1109_v8 }
 0x205   : > { %1101 = vadd.xlane.f32.xlu1 %v1100_v9 }
 0x21b   : > { %v542_v10 = vpop.xlane.xlu0 %541 }
 0x21c   : > { %v2074_v9 = vmul.f32 0.03125, %v542_v10 }
 0x21f   : > { %v539_v11 = vpop.xlane.xlu0 %538 }
 0x220   : > { %v2037_v27 = vmul.f32 0.03125, %v539_v11 }
 0x222   : > { %v569_v33 = vsub.f32 %v1905_v41, %v2037_v27 }
 0x223   : > { %v1081_v12 = vpop.permute.xlu0 %1080 }
 0x224   : > { %v1106_v14 = vsel %vm347_vm1, %v1081_v12, 0.0  ;;  %v577_v35 = vmul.f32 %v569_v33, %v569_v33 }
 0x225   : > { %1107 = vadd.xlane.f32.xlu1 %v1106_v14 }
 0x227   : > { %v1085_v16 = vpop.permute.xlu0 %1084 }
 0x228   : > { %v1112_v17 = vsel %vm347_vm1, %v1085_v16, 0.0 }
 0x229   : > { %1113 = vadd.xlane.f32.xlu1 %v1112_v17 }
 0x22b   : > { %v1089_v18 = vpop.permute.xlu0 %1088 }
 0x22c   : > { %v1118_v21 = vsel %vm347_vm1, %v1089_v18, 0.0 }
 0x22d   : > { %924 = vadd.xlane.f32.xlu1 %v923_v19  ;;  %v570_v19 = vsub.f32 %v1901_v40, %v2074_v9 }
 0x231   : > { %1119 = vadd.xlane.f32.xlu1 %v1118_v21 }
 0x232   : > { %v545_v22 = vpop.xlane.xlu1 %544 }
 0x233   : > { %v2058_v53 = vmul.f32 0.03125, %v545_v22 }
 0x235   : > { %v571_v2 = vsub.f32 %v1911_v44, %v2058_v53 }
 0x236   : > { %v1087_v24 = vpop.permute.xlu1 %1086 }
 0x237   : > { %v1115_v25 = vsel %vm347_vm1, %v1087_v24, 0.0  ;;  %v579_v8 = vmul.f32 %v571_v2, %v571_v2 }
 0x238   : > { %1116 = vadd.xlane.f32.xlu0 %v1115_v25 }
 0x23a   : > { %v1091_v28 = vpop.permute.xlu1 %1090 }
 0x23b   : > { %v1121_v29 = vsel %vm347_vm1, %v1091_v28, 0.0 }
 0x23c   : > { %1122 = vadd.xlane.f32.xlu0 %v1121_v29  ;;  %v578_v29 = vmul.f32 %v570_v19, %v570_v19 }
 0x240   : > { %419 = vadd.xlane.f32.xlu0 %v418_v32 }
 0x242   : > { %593 = vrot.lane.b32.xlu1 %v577_v35, %s1779_s6  ;;  %v2090_v35 = vld [vmem:[%s2491_s2] ss:$0 sm:$0xff] }
 0x244   : > { %927 = vadd.xlane.f32.xlu0 %v926_v36 }
 0x248   : > { %930 = vadd.xlane.f32.xlu0 %v929_v38 }
 0x24c   : > { %933 = vadd.xlane.f32.xlu0 %v932_v39 }
 0x250   : > { %936 = vadd.xlane.f32.xlu0 %v935_v42 }
 0x254   : > { %939 = vadd.xlane.f32.xlu0 %v938_v49 }
 0x258   : > { %942 = vadd.xlane.f32.xlu0 %v941_v50  ;;  %v2102_v50 = vld [vmem:[%s2492_s3] ss:$0 sm:$0xff] }
 0x25c   : > { %v548_v52 = vpop.xlane.xlu0 %547  ;;  %945 = vadd.xlane.f32.xlu0 %v944_v51 }
 0x25d   : > { %v2060_v54 = vmul.f32 0.03125, %v548_v52 }
 0x25f   : > { %v572_v55 = vsub.f32 %v1909_v43, %v2060_v54 }
 0x260   : > { %v554_v1 = vpop.xlane.xlu0 %553 }
 0x261   : > { %v2066_v3 = vmul.f32 0.03125, %v554_v1  ;;  %v580_v4 = vmul.f32 %v572_v55, %v572_v55 }
 0x263   : > { %599 = vrot.lane.b32.xlu1 %v580_v4, %s1779_s6  ;;  %v574_v6 = vsub.f32 %v1913_v45, %v2066_v3 }
 0x264   : > { %v560_v5 = vpop.xlane.xlu0 %559 }
 0x265   : > { %v2071_v7 = vmul.f32 0.03125, %v560_v5  ;;  %v582_v12 = vmul.f32 %v574_v6, %v574_v6 }
 0x267   : > { %597 = vrot.lane.b32.xlu1 %v579_v8, %s1779_s6  ;;  %v576_v14 = vsub.f32 %v1917_v47, %v2071_v7 }
 0x268   : > { %v399_v11 = vpop.xlane.xlu0 %398 }
 0x269   : > { %v421_v16 = vmul.f32 0.03125, %v399_v11  ;;  %v584_v24 = vmul.f32 %v576_v14, %v576_v14 }
 0x26b   : > { %v429_v17 = vadd.f32 1e-05, %v421_v16  ;;  %603 = vrot.lane.b32.xlu1 %v582_v12, %s1779_s6  ;;  %v551_v18 = vpop.xlane.xlu1 %550 }
 0x26c   : > { %v2081_v21 = vmul.f32 0.03125, %v551_v18  ;;  %v408_v22 = vpop.xlane.xlu0 %407 }
 0x26d   : > { %1650 = vrsqrt.f32 %v429_v17  ;;  %v424_v10 = vmul.f32 0.03125, %v408_v22 }
 0x26e   : > { %v573_v26 = vsub.f32 %v1915_v46, %v2081_v21 }
 0x26f   : > { %v432_v25 = vadd.f32 1e-05, %v424_v10  ;;  %607 = vrot.lane.b32.xlu1 %v584_v24, %s1779_s6 }
 0x270   : > { %v414_v28 = vpop.xlane.xlu0 %413  ;;  %v581_v32 = vmul.f32 %v573_v26, %v573_v26 }
 0x271   : > { %1652 = vrsqrt.f32 %v432_v25  ;;  %v426_v30 = vmul.f32 0.03125, %v414_v28 }
 0x272   : > { %595 = vrot.lane.b32.xlu0 %v578_v29, %s1779_s6 }
 0x273   : > { %v434_v33 = vadd.f32 1e-05, %v426_v30 }
 0x275   : > { %1654 = vrsqrt.f32 %v434_v33  ;;  %v557_v36 = vpop.xlane.xlu1 %556 }
 0x276   : > { %v2092_v38 = vmul.f32 0.03125, %v557_v36  ;;  %601 = vrot.lane.b32.xlu0 %v581_v32, %s1779_s6 }
 0x277   : > { %v1651_v39 = vpop.eup %1650 }
 0x278   : > { %v451_v42 = vmul.f32 %v1651_v39, %v2090_v35  ;;  %v575_v49 = vsub.f32 %v1919_v48, %v2092_v38 }
 0x279   : > { %v402_v51 = vpop.xlane.xlu1 %401 }
 0x27a   : > { %v467_v52 = vmul.f32 %v451_v42, %v1984_v13  ;;  %v422_v55 = vmul.f32 0.03125, %v402_v51  ;;  %v583_v1 = vmul.f32 %v575_v49, %v575_v49  ;;  %v459_v4 = vmul.f32 %v451_v42, %v1905_v41 }
 0x27b   : > { %v1653_v2 = vpop.eup %1652 }
 0x27c   : > { %v481_v5 = vsub.f32 %v2102_v50, %v467_v52  ;;  %v454_v6 = vmul.f32 %v1653_v2, %v2090_v35  ;;  %v430_v8 = vadd.f32 1e-05, %v422_v55  ;;  %605 = vrot.lane.b32.xlu0 %v583_v1, %s1779_s6 }
 0x27d   : > { %v405_v11 = vpop.xlane.xlu1 %404 }
 0x27e   : > { %v489_v12 = vadd.f32 %v481_v5, %v459_v4  ;;  %v470_v14 = vmul.f32 %v454_v6, %v1987_v15  ;;  %1656 = vrsqrt.f32 %v430_v8  ;;  %v423_v16 = vmul.f32 0.03125, %v405_v11 }
 0x27f   : > { %v1655_v13 = vpop.eup %1654  ;;  %v462_v17 = vmul.f32 %v1909_v43, %v454_v6 }
 0x280   : > { %v484_v18 = vsub.f32 %v2102_v50, %v470_v14  ;;  %v456_v19 = vmul.f32 %v1655_v13, %v2090_v35  ;;  %497 = vst.msk [vmem:[%s2115_s13] sm:$0xff] %vm347_vm1, %v489_v12  ;;  %v431_v22 = vadd.f32 1e-05, %v423_v16 }
 0x281   : > { %v411_v24 = vpop.xlane.xlu1 %410 }
 0x282   : > { %v492_v10 = vadd.f32 %v484_v18, %v462_v17  ;;  %v472_v15 = vmul.f32 %v456_v19, %v1992_v20  ;;  %v425_v25 = vmul.f32 0.03125, %v411_v24  ;;  %1658 = vrsqrt.f32 %v431_v22 }
 0x283   : > { %v464_v26 = vmul.f32 %v1913_v45, %v456_v19 }
 0x284   : > { %v486_v28 = vsub.f32 %v2102_v50, %v472_v15  ;;  %v433_v29 = vadd.f32 1e-05, %v425_v25  ;;  %500 = vst.msk [vmem:[%s2115_s13 + $0x30] sm:$0xff] %vm347_vm1, %v492_v10 }
 0x286   : > { %v494_v30 = vadd.f32 %v486_v28, %v464_v26  ;;  %1660 = vrsqrt.f32 %v433_v29 }
 0x288   : > { %v1657_v33 = vpop.eup %1656  ;;  %502 = vst.msk [vmem:[%s2115_s13 + $0x50] sm:$0xff] %vm347_vm1, %v494_v30 }
 0x289   : > { %v452_v32 = vmul.f32 %v1657_v33, %v2090_v35 }
 0x28b   : > { %v468_v36 = vmul.f32 %v452_v32, %v2002_v31  ;;  %v460_v42 = vmul.f32 %v1901_v40, %v452_v32 }
 0x28c   : > { %v1105_v39 = vpop.xlane.xlu0 %1104  ;;  %v1659_v20 = vpop.eup %1658 }
 0x28d   : > { %v482_v49 = vsub.f32 %v2102_v50, %v468_v36  ;;  %v2130_v51 = vmul.f32 0.03125, %v1105_v39  ;;  %v453_v52 = vmul.f32 %v1659_v20, %v2090_v35 }
 0x28e   : > { %v417_v55 = vpop.xlane.xlu1 %416 }
 0x28f   : > { %v490_v1 = vadd.f32 %v482_v49, %v460_v42  ;;  %v1133_v2 = vsub.f32 %v1949_v56, %v2130_v51  ;;  %v427_v4 = vmul.f32 0.03125, %v417_v55  ;;  %v469_v31 = vmul.f32 %v453_v52, %v2005_v34 }
 0x290   : > { %v1661_v5 = vpop.eup %1660  ;;  %v1111_v12 = vpop.xlane.xlu0 %1110  ;;  %v461_v14 = vmul.f32 %v453_v52, %v1911_v44 }
 0x291   : > { %v455_v6 = vmul.f32 %v1661_v5, %v2090_v35  ;;  %v1141_v8 = vmul.f32 %v1133_v2, %v1133_v2  ;;  %v435_v11 = vadd.f32 1e-05, %v427_v4  ;;  %498 = vst.msk [vmem:[%s2115_s13 + $0x10] sm:$0xff] %vm347_vm1, %v490_v1  ;;  %v483_v13 = vsub.f32 %v2102_v50, %v469_v31 }
 0x292   : > { %v1102_v16 = vpop.xlane.xlu1 %1101  ;;  %v2143_v18 = vmul.f32 0.03125, %v1111_v12 }
 0x293   : > { %v471_v17 = vmul.f32 %v455_v6, %v2009_v37  ;;  %1662 = vrsqrt.f32 %v435_v11  ;;  %1158 = vrot.lane.b32.xlu1 %v1141_v8, %s1779_s6  ;;  %v491_v34 = vadd.f32 %v483_v13, %v461_v14  ;;  %v2145_v19 = vmul.f32 0.03125, %v1102_v16 }
 0x294   : > { %v463_v22 = vmul.f32 %v455_v6, %v1915_v46  ;;  %v1135_v37 = vsub.f32 %v1955_v58, %v2143_v18 }
 0x295   : > { %v485_v24 = vsub.f32 %v2102_v50, %v471_v17  ;;  %v1132_v10 = vsub.f32 %v1951_v57, %v2145_v19  ;;  %499 = vst.msk [vmem:[%s2115_s13 + $0x20] sm:$0xff] %vm347_vm1, %v491_v34 }
 0x296   : > { %v1143_v26 = vmul.f32 %v1135_v37, %v1135_v37 }
 0x297   : > { %v493_v15 = vadd.f32 %v485_v24, %v463_v22  ;;  %v1140_v25 = vmul.f32 %v1132_v10, %v1132_v10 }
 0x299   : > { %501 = vst.msk [vmem:[%s2115_s13 + $0x40] sm:$0xff] %vm347_vm1, %v493_v15  ;;  %1156 = vrot.lane.b32.xlu1 %v1140_v25, %s1779_s6 }
 0x29d   : > { %v1663_v28 = vpop.eup %1662  ;;  %1162 = vrot.lane.b32.xlu1 %v1143_v26, %s1779_s6 }
 0x29e   : > { %v457_v29 = vmul.f32 %v1663_v28, %v2090_v35 }
 0x2a0   : > { %v473_v30 = vmul.f32 %v457_v29, %v2019_v0  ;;  %v465_v33 = vmul.f32 %v457_v29, %v1919_v48 }
 0x2a2   : > { %v487_v32 = vsub.f32 %v2102_v50, %v473_v30 }
 0x2a4   : > { %v495_v36 = vadd.f32 %v487_v32, %v465_v33 }
 0x2a6   : > { %503 = vst.msk [vmem:[%s2115_s13 + $0x60] sm:$0xff] %vm347_vm1, %v495_v36 }
 0x2b2   : > { %v1108_v39 = vpop.xlane.xlu1 %1107 }
 0x2b3   : > { %v2165_v20 = vmul.f32 0.03125, %v1108_v39 }
 0x2b5   : > { %v1134_v42 = vsub.f32 %v1957_v59, %v2165_v20 }
 0x2b6   : > { %v1114_v52 = vpop.xlane.xlu1 %1113 }
 0x2b7   : > { %v1142_v49 = vmul.f32 %v1134_v42, %v1134_v42  ;;  %v2170_v0 = vmul.f32 0.03125, %v1114_v52 }
 0x2b9   : > { %1160 = vrot.lane.b32.xlu1 %v1142_v49, %s1779_s6  ;;  %v1136_v31 = vsub.f32 %v1961_v61, %v2170_v0 }
 0x2ba   : > { %v925_v55 = vpop.xlane.xlu1 %924 }
 0x2bb   : > { %v1144_v14 = vmul.f32 %v1136_v31, %v1136_v31 }
 0x2be   : > { %v1120_v11 = vpop.xlane.xlu1 %1119 }
 0x2bf   : > { %v2181_v13 = vmul.f32 0.03125, %v1120_v11  ;;  %v2206_v11 = vmul.f32 0.03125, %v925_v55 }
 0x2c1   : > { %v1138_v24 = vsub.f32 %v1965_v63, %v2181_v13 }
 0x2c2   : > { %v594_v52 = vpop.permute.xlu1 %593 }
 0x2c3   : > { %v1146_v37 = vmul.f32 %v1138_v24, %v1138_v24 }
 0x2c5   : > { %v1117_v1 = vpop.xlane.xlu0 %1116 }
 0x2c6   : > { %v2172_v2 = vmul.f32 0.03125, %v1117_v1 }
 0x2c8   : > { %v1137_v4 = vsub.f32 %v1959_v60, %v2172_v2 }
 0x2c9   : > { %v1123_v5 = vpop.xlane.xlu0 %1122 }
 0x2ca   : > { %v1145_v6 = vmul.f32 %v1137_v4, %v1137_v4  ;;  %v2178_v8 = vmul.f32 0.03125, %v1123_v5 }
 0x2cc   : > { %1166 = vrot.lane.b32.xlu1 %v1145_v6, %s1779_s6  ;;  %v1139_v16 = vsub.f32 %v1963_v62, %v2178_v8 }
 0x2cd   : > { %v420_v12 = vpop.xlane.xlu0 %419 }
 0x2ce   : > { %v428_v17 = vmul.f32 0.03125, %v420_v12  ;;  %v1147_v10 = vmul.f32 %v1139_v16, %v1139_v16 }
 0x2d0   : > { %v436_v34 = vadd.f32 1e-05, %v428_v17  ;;  %1164 = vrot.lane.b32.xlu1 %v1144_v14, %s1779_s6  ;;  %v955_v17 = vsub.f32 %v1951_v57, %v2206_v11 }
 0x2d1   : > { %v928_v22 = vpop.xlane.xlu0 %927 }
 0x2d2   : > { %1664 = vrsqrt.f32 %v436_v34  ;;  %v2204_v31 = vmul.f32 0.03125, %v928_v22 }
 0x2d4   : > { %1170 = vrot.lane.b32.xlu1 %v1147_v10, %s1779_s6  ;;  %v956_v14 = vsub.f32 %v1949_v56, %v2204_v31 }
 0x2d5   : > { %v931_v15 = vpop.xlane.xlu0 %930  ;;  %v600_v5 = vpop.permute.xlu1 %599 }
 0x2d6   : > { %v626_v12 = vsel %vm347_vm1, %v600_v5, 0.0  ;;  %v2213_v34 = vmul.f32 0.03125, %v931_v15  ;;  %v964_v55 = vmul.f32 %v956_v14, %v956_v14 }
 0x2d8   : > { %1168 = vrot.lane.b32.xlu1 %v1146_v37, %s1779_s6  ;;  %v957_v37 = vsub.f32 %v1957_v59, %v2213_v34  ;;  %s1720_s6 = scalar_lea.vmem %s1719_s5, 4096 }
 0x2d9   : > { %v2190_v25 = vpop.xlane.xlu0 %933  ;;  %v598_v6 = vpop.permute.xlu1 %597  ;;  %p1722_p1 = scmp.lt.s32.totalorder %s1720_s6, %s1714_s29 }
 0x2da   : > { %v623_v24 = vsel %vm347_vm1, %v598_v6, 0.0 }
 0x2db   : > { %p1723_p2 = por %p1722_p1, %p1721_p0 }
 0x2dc   : > { %v1665_v26 = vpop.eup %1664 }
 0x2dd   : > { %v458_v28 = vmul.f32 %v1665_v26, %v2090_v35  ;;  %v937_v29 = vpop.xlane.xlu0 %936  ;;  %v604_v22 = vpop.permute.xlu1 %603  ;;  %p1724_p3 = pnand %p1723_p2, %p1717_p13 }
 0x2de   : > { %v632_v26 = vsel %vm347_vm1, %v604_v22, 0.0  ;;  %v2229_v22 = vmul.f32 0.03125, %v937_v29 }
 0x2df   : > { %v474_v30 = vmul.f32 %v458_v28, %v2032_v23  ;;  %v466_v33 = vmul.f32 %v1917_v47, %v458_v28  ;;  %v617_v23 = vsel %vm347_vm1, %v594_v52, 0.0  ;;  %v963_v28 = vmul.f32 %v955_v17, %v955_v17 }
 0x2e1   : > { %v488_v32 = vsub.f32 %v2102_v50, %v474_v30  ;;  %v2196_v36 = vpop.xlane.xlu0 %939  ;;  %v974_v30 = vsel %vm347_vm1, %v964_v55, 0.0  ;;  %v971_v15 = vsel %vm347_vm1, %v963_v28, 0.0  ;;  %v608_v52 = vpop.permute.xlu1 %607 }
 0x2e2   : > { %v638_v5 = vsel %vm347_vm1, %v608_v52, 0.0 }
 0x2e3   : > { %v496_v39 = vadd.f32 %v488_v32, %v466_v33  ;;  %v965_v32 = vmul.f32 %v957_v37, %v957_v37  ;;  %v959_v37 = vsub.f32 %v1961_v61, %v2229_v22 }
 0x2e5   : > { %v943_v42 = vpop.xlane.xlu0 %942  ;;  %504 = vst.msk [vmem:[%s2115_s13 + $0x70] sm:$0xff] %vm347_vm1, %v496_v39 }
 0x2e9   : > { %v2200_v49 = vpop.xlane.xlu0 %945 }
 0x2ed   : > { %v596_v1 = vpop.permute.xlu0 %595 }
 0x2ee   : > { %v620_v4 = vsel %vm347_vm1, %v596_v1, 0.0  ;;  %v977_v1 = vsel %vm347_vm1, %v965_v32, 0.0  ;;  %v967_v32 = vmul.f32 %v959_v37, %v959_v37 }
 0x2ef   : > { %621 = vadd.xlane.f32.xlu0 %v620_v4 }
 0x2f1   : > { %v602_v16 = vpop.permute.xlu0 %601 }
 0x2f2   : > { %v629_v10 = vsel %vm347_vm1, %v602_v16, 0.0 }
 0x2f3   : > { %618 = vadd.xlane.f32.xlu0 %v617_v23 }
 0x2f5   : > { %v606_v33 = vpop.permute.xlu0 %605 }
 0x2f6   : > { %v635_v39 = vsel %vm347_vm1, %v606_v33, 0.0  ;;  %v2242_v33 = vmul.f32 0.03125, %v2196_v36 }
 0x2f7   : > { %627 = vadd.xlane.f32.xlu0 %v626_v12 }
 0x2fb   : > { %624 = vadd.xlane.f32.xlu0 %v623_v24 }
 0x2fc   : > { %630 = vadd.xlane.f32.xlu1 %v629_v10  ;;  %v2232_v10 = vmul.f32 0.03125, %v2190_v25 }
 0x2ff   : > { %633 = vadd.xlane.f32.xlu0 %v632_v26  ;;  %v2236_v26 = vmul.f32 0.03125, %v943_v42  ;;  %v960_v42 = vsub.f32 %v1959_v60, %v2242_v33 }
 0x300   : > { %975 = vadd.xlane.f32.xlu1 %v974_v30  ;;  %v958_v30 = vsub.f32 %v1955_v58, %v2232_v10 }
 0x301   : > { %v961_v25 = vsub.f32 %v1965_v63, %v2236_v26 }
 0x303   : > { %972 = vadd.xlane.f32.xlu0 %v971_v15 }
 0x304   : > { %636 = vadd.xlane.f32.xlu1 %v635_v39  ;;  %v966_v39 = vmul.f32 %v958_v30, %v958_v30 }
 0x305   : > { %v1159_v4 = vpop.permute.xlu1 %1158 }
 0x306   : > { %v1183_v12 = vsel %vm347_vm1, %v1159_v4, 0.0  ;;  %v983_v4 = vsel %vm347_vm1, %v967_v32, 0.0 }
 0x307   : > { %978 = vadd.xlane.f32.xlu0 %v977_v1  ;;  %v2250_v1 = vmul.f32 0.03125, %v2200_v49 }
 0x30b   : > { %639 = vadd.xlane.f32.xlu0 %v638_v5  ;;  %v1157_v23 = vpop.permute.xlu1 %1156  ;;  %v969_v5 = vmul.f32 %v961_v25, %v961_v25 }
 0x30c   : > { %v1180_v6 = vsel %vm347_vm1, %v1157_v23, 0.0  ;;  %v968_v23 = vmul.f32 %v960_v42, %v960_v42 }
 0x30d   : > { %1181 = vadd.xlane.f32.xlu1 %v1180_v6  ;;  %v962_v6 = vsub.f32 %v1963_v62, %v2250_v1 }
 0x30f   : > { %1184 = vadd.xlane.f32.xlu0 %v1183_v12  ;;  %v1163_v14 = vpop.permute.xlu1 %1162  ;;  %v989_v12 = vsel %vm347_vm1, %v969_v5, 0.0  ;;  %v970_v49 = vmul.f32 %v962_v6, %v962_v6 }
 0x310   : > { %v1189_v16 = vsel %vm347_vm1, %v1163_v14, 0.0  ;;  %v980_v14 = vsel %vm347_vm1, %v966_v39, 0.0 }
 0x313   : > { %1190 = vadd.xlane.f32.xlu0 %v1189_v16 }
 0x32b   : > { %v1161_v17 = vpop.permute.xlu1 %1160 }
 0x32c   : > { %v1186_v24 = vsel %vm347_vm1, %v1161_v17, 0.0  ;;  %v986_v17 = vsel %vm347_vm1, %v968_v23, 0.0 }
 0x32d   : > { %1187 = vadd.xlane.f32.xlu1 %v1186_v24 }
 0x33e   : > { %v1167_v55 = vpop.permute.xlu1 %1166 }
 0x33f   : > { %v1195_v28 = vsel %vm347_vm1, %v1167_v55, 0.0  ;;  %v992_v55 = vsel %vm347_vm1, %v970_v49, 0.0 }
 0x340   : > { %1196 = vadd.xlane.f32.xlu0 %v1195_v28 }
 0x342   : > { %v1165_v29 = vpop.permute.xlu1 %1164 }
 0x343   : > { %v1192_v15 = vsel %vm347_vm1, %v1165_v29, 0.0 }
 0x344   : > { %1193 = vadd.xlane.f32.xlu1 %v1192_v15 }
 0x346   : > { %v1171_v52 = vpop.permute.xlu1 %1170 }
 0x347   : > { %v1201_v36 = vsel %vm347_vm1, %v1171_v52, 0.0 }
 0x348   : > { %984 = vadd.xlane.f32.xlu1 %v983_v4  ;;  %1202 = vadd.xlane.f32.xlu0 %v1201_v36 }
 0x34a   : > { %v1169_v16 = vpop.permute.xlu1 %1168 }
 0x34b   : > { %v1198_v24 = vsel %vm347_vm1, %v1169_v16, 0.0 }
 0x34c   : > { %990 = vadd.xlane.f32.xlu1 %v989_v12  ;;  %981 = vadd.xlane.f32.xlu0 %v980_v14 }
 0x350   : > { %987 = vadd.xlane.f32.xlu0 %v986_v17  ;;  %1199 = vadd.xlane.f32.xlu1 %v1198_v24 }
 0x354   : > { %993 = vadd.xlane.f32.xlu0 %v992_v55 }
 0x37c   : > { %v622_v37 = vpop.xlane.xlu0 %621 }
 0x37d   : > { %v642_v28 = vmul.f32 0.03125, %v622_v37 }
 0x37f   : > { %v650_v30 = vadd.f32 1e-05, %v642_v28 }
 0x380   : > { %v619_v29 = vpop.xlane.xlu0 %618 }
 0x381   : > { %1666 = vrsqrt.f32 %v650_v30  ;;  %v641_v25 = vmul.f32 0.03125, %v619_v29 }
 0x383   : > { %v649_v15 = vadd.f32 1e-05, %v641_v25 }
 0x384   : > { %v628_v32 = vpop.xlane.xlu0 %627 }
 0x385   : > { %1668 = vrsqrt.f32 %v649_v15  ;;  %v644_v39 = vmul.f32 0.03125, %v628_v32 }
 0x387   : > { %v652_v42 = vadd.f32 1e-05, %v644_v39 }
 0x388   : > { %v625_v52 = vpop.xlane.xlu0 %624 }
 0x389   : > { %1670 = vrsqrt.f32 %v652_v42  ;;  %v643_v4 = vmul.f32 0.03125, %v625_v52  ;;  %v631_v36 = vpop.xlane.xlu1 %630 }
 0x38a   : > { %v645_v5 = vmul.f32 0.03125, %v631_v36 }
 0x38b   : > { %v1667_v23 = vpop.eup %1666  ;;  %v651_v6 = vadd.f32 1e-05, %v643_v4 }
 0x38c   : > { %v653_v12 = vadd.f32 1e-05, %v645_v5  ;;  %v634_v14 = vpop.xlane.xlu0 %633  ;;  %v666_v16 = vmul.f32 %v1667_v23, %v2090_v35 }
 0x38d   : > { %1672 = vrsqrt.f32 %v651_v6  ;;  %v976_v49 = vpop.xlane.xlu1 %975  ;;  %v646_v55 = vmul.f32 0.03125, %v634_v14 }
 0x38e   : > { %1674 = vrsqrt.f32 %v653_v12  ;;  %v996_v17 = vmul.f32 0.03125, %v976_v49  ;;  %683 = vrot.lane.b32.xlu0 %v666_v16, %s1780_s14  ;;  %v714_v5 = vmul.f32 %v666_v16, %v2074_v9 }
 0x38f   : > { %v1669_v24 = vpop.eup %1668  ;;  %v654_v39 = vadd.f32 1e-05, %v646_v55 }
 0x390   : > { %v1004_v37 = vadd.f32 1e-05, %v996_v17  ;;  %v973_v28 = vpop.xlane.xlu0 %972  ;;  %v665_v30 = vmul.f32 %v1669_v24, %v2090_v35  ;;  %v722_v17 = vsub.f32 %v2102_v50, %v714_v5 }
 0x391   : > { %v995_v29 = vmul.f32 0.03125, %v973_v28  ;;  %v637_v25 = vpop.xlane.xlu1 %636 }
 0x392   : > { %1676 = vrsqrt.f32 %v1004_v37  ;;  %v647_v15 = vmul.f32 0.03125, %v637_v25  ;;  %681 = vrot.lane.b32.xlu1 %v665_v30, %s1780_s14  ;;  %v713_v25 = vmul.f32 %v665_v30, %v2037_v27 }
 0x393   : > { %v1671_v32 = vpop.eup %1670  ;;  %v1003_v42 = vadd.f32 1e-05, %v995_v29 }
 0x394   : > { %v655_v52 = vadd.f32 1e-05, %v647_v15  ;;  %v979_v4 = vpop.xlane.xlu0 %978  ;;  %v668_v36 = vmul.f32 %v1671_v32, %v2090_v35  ;;  %v721_v30 = vsub.f32 %v2102_v50, %v713_v25 }
 0x395   : > { %1678 = vrsqrt.f32 %v1003_v42  ;;  %v997_v23 = vmul.f32 0.03125, %v979_v4 }
 0x396   : > { %1680 = vrsqrt.f32 %v655_v52  ;;  %687 = vrot.lane.b32.xlu1 %v668_v36, %s1780_s14 }
 0x397   : > { %v1673_v6 = vpop.eup %1672  ;;  %1682 = vrsqrt.f32 %v654_v39  ;;  %v1005_v12 = vadd.f32 1e-05, %v997_v23 }
 0x398   : > { %v1675_v14 = vpop.eup %1674  ;;  %v640_v49 = vpop.xlane.xlu0 %639  ;;  %v667_v24 = vmul.f32 %v1673_v6, %v2090_v35 }
 0x399   : > { %1684 = vrsqrt.f32 %v1005_v12  ;;  %v648_v55 = vmul.f32 0.03125, %v640_v49  ;;  %v669_v37 = vmul.f32 %v1675_v14, %v2090_v35 }
 0x39a   : > { %739 = vrot.lane.b32.xlu1 %v722_v17, %s1780_s14  ;;  %v715_v9 = vmul.f32 %v667_v24, %v2058_v53  ;;  %v1182_v28 = vpop.xlane.xlu1 %1181 }
 0x39b   : > { %v656_v16 = vadd.f32 1e-05, %v648_v55  ;;  %689 = vrot.lane.b32.xlu0 %v669_v37, %s1780_s14  ;;  %v1204_v15 = vmul.f32 0.03125, %v1182_v28  ;;  %v717_v12 = vmul.f32 %v669_v37, %v2081_v21  ;;  %v716_v21 = vmul.f32 %v668_v36, %v2060_v54 }
 0x39c   : > { %v1677_v29 = vpop.eup %1676  ;;  %v1185_v32 = vpop.xlane.xlu0 %1184  ;;  %v723_v39 = vsub.f32 %v2102_v50, %v715_v9 }
 0x39d   : > { %v1020_v42 = vmul.f32 %v1677_v29, %v2090_v35  ;;  %v1212_v52 = vadd.f32 1e-05, %v1204_v15  ;;  %1686 = vrsqrt.f32 %v656_v16  ;;  %v1205_v53 = vmul.f32 0.03125, %v1185_v32 }
 0x39e   : > { %685 = vrot.lane.b32.xlu1 %v667_v24, %s1780_s14 }
 0x39f   : > { %v1679_v4 = vpop.eup %1678  ;;  %v1036_v5 = vmul.f32 %v1020_v42, %v2204_v31  ;;  %741 = vrot.lane.b32.xlu0 %v723_v39, %s1780_s14  ;;  %1688 = vrsqrt.f32 %v1212_v52  ;;  %v1028_v49 = vmul.f32 %v1949_v56, %v1020_v42  ;;  %v1213_v28 = vadd.f32 1e-05, %v1205_v53 }
 0x3a0   : > { %v1681_v23 = vpop.eup %1680  ;;  %v1019_v6 = vmul.f32 %v1679_v4, %v2090_v35  ;;  %v1191_v27 = vpop.xlane.xlu0 %1190  ;;  %v724_v4 = vsub.f32 %v2102_v50, %v716_v21 }
 0x3a1   : > { %v1683_v14 = vpop.eup %1682  ;;  %v1044_v17 = vsub.f32 %v2102_v50, %v1036_v5  ;;  %v1207_v24 = vmul.f32 0.03125, %v1191_v27  ;;  %v671_v31 = vmul.f32 %v1681_v23, %v2090_v35 }
 0x3a2   : > { %v1035_v55 = vmul.f32 %v1019_v6, %v2206_v11  ;;  %737 = vrot.lane.b32.xlu1 %v721_v30, %s1780_s14  ;;  %v1027_v37 = vmul.f32 %v1019_v6, %v1951_v57  ;;  %v670_v32 = vmul.f32 %v1683_v14, %v2090_v35  ;;  %v725_v11 = vsub.f32 %v2102_v50, %v717_v12 }
 0x3a3   : > { %v1685_v9 = vpop.eup %1684  ;;  %v1052_v16 = vadd.f32 %v1044_v17, %v1028_v49  ;;  %v1215_v29 = vadd.f32 1e-05, %v1207_v24  ;;  %693 = vrot.lane.b32.xlu0 %v671_v31, %s1780_s14  ;;  %v719_v39 = vmul.f32 %v671_v31, %v2092_v38 }
 0x3a4   : > { %v1043_v25 = vsub.f32 %v2102_v50, %v1035_v55  ;;  %v1021_v15 = vmul.f32 %v1685_v9, %v2090_v35  ;;  %v718_v6 = vmul.f32 %v670_v32, %v2066_v3 }
 0x3a5   : > { %1690 = vrsqrt.f32 %v1215_v29  ;;  %1443 = vst.msk [vmem:[%s2115_s13 + $0x18] sm:$0xff] %vm347_vm1, %v1052_v16  ;;  %v727_v5 = vsub.f32 %v2102_v50, %v719_v39 }
 0x3a6   : > { %v1051_v42 = vadd.f32 %v1043_v25, %v1027_v37  ;;  %v1037_v52 = vmul.f32 %v1021_v15, %v2213_v34  ;;  %691 = vrot.lane.b32.xlu1 %v670_v32, %s1780_s14  ;;  %1692 = vrsqrt.f32 %v1213_v28  ;;  %v1029_v54 = vmul.f32 %v1021_v15, %v1957_v59 }
 0x3a7   : > { %745 = vrot.lane.b32.xlu0 %v725_v11, %s1780_s14  ;;  %v1687_v38 = vpop.eup %1686  ;;  %v726_v12 = vsub.f32 %v2102_v50, %v718_v6 }
 0x3a8   : > { %v1045_v36 = vsub.f32 %v2102_v50, %v1037_v52  ;;  %1442 = vst.msk [vmem:[%s2115_s13 + $0x8] sm:$0xff] %vm347_vm1, %v1051_v42  ;;  %v672_v34 = vmul.f32 %v1687_v38, %v2090_v35 }
 0x3a9   : > { %v1689_v53 = vpop.eup %1688 }
 0x3aa   : > { %v1053_v23 = vadd.f32 %v1045_v36, %v1029_v54  ;;  %743 = vrot.lane.b32.xlu1 %v724_v4, %s1780_s14  ;;  %v1228_v27 = vmul.f32 %v1689_v53, %v2090_v35  ;;  %v720_v49 = vmul.f32 %v672_v34, %v2071_v7 }
 0x3ab   : > { %749 = vrot.lane.b32.xlu0 %v727_v5, %s1780_s14 }
 0x3ac   : > { %1444 = vst.msk [vmem:[%s2115_s13 + $0x28] sm:$0xff] %vm347_vm1, %v1053_v23  ;;  %v1276_v24 = vmul.f32 %v1228_v27, %v2145_v19  ;;  %v728_v3 = vsub.f32 %v2102_v50, %v720_v49 }
 0x3ae   : > { %695 = vrot.lane.b32.xlu1 %v672_v34, %s1780_s14  ;;  %v1284_v55 = vsub.f32 %v2102_v50, %v1276_v24 }
 0x3af   : > { %v1691_v30 = vpop.eup %1690  ;;  %1244 = vrot.lane.b32.xlu0 %v1228_v27, %s1780_s14 }
 0x3b0   : > { %v1231_v14 = vmul.f32 %v1691_v30, %v2090_v35  ;;  %v1693_v17 = vpop.eup %1692 }
 0x3b1   : > { %v1229_v31 = vmul.f32 %v1693_v17, %v2090_v35 }
 0x3b2   : > { %747 = vrot.lane.b32.xlu1 %v726_v12, %s1780_s14  ;;  %v1279_v37 = vmul.f32 %v1231_v14, %v2143_v18 }
 0x3b3   : > { %1250 = vrot.lane.b32.xlu0 %v1231_v14, %s1780_s14  ;;  %v1277_v9 = vmul.f32 %v1229_v31, %v2130_v51 }
 0x3b4   : > { %v1287_v51 = vsub.f32 %v2102_v50, %v1279_v37 }
 0x3b5   : > { %v1285_v16 = vsub.f32 %v2102_v50, %v1277_v9 }
 0x3b6   : > { %751 = vrot.lane.b32.xlu1 %v728_v3, %s1780_s14 }
 0x3b7   : > { %1300 = vrot.lane.b32.xlu0 %v1284_v55, %s1780_s14 }
 0x3ba   : > { %1246 = vrot.lane.b32.xlu1 %v1229_v31, %s1780_s14  ;;  %v1188_v7 = vpop.xlane.xlu1 %1187 }
 0x3bb   : > { %v1206_v19 = vmul.f32 0.03125, %v1188_v7 }
 0x3bd   : > { %v1214_v28 = vadd.f32 1e-05, %v1206_v19 }
 0x3be   : > { %1302 = vrot.lane.b32.xlu1 %v1285_v16, %s1780_s14 }
 0x3bf   : > { %1694 = vrsqrt.f32 %v1214_v28 }
 0x3c9   : > { %v1695_v29 = vpop.eup %1694 }
 0x3ca   : > { %v1230_v21 = vmul.f32 %v1695_v29, %v2090_v35 }
 0x3cc   : > { %1248 = vrot.lane.b32.xlu1 %v1230_v21, %s1780_s14  ;;  %v1278_v17 = vmul.f32 %v1230_v21, %v2165_v20 }
 0x3cd   : > { %v1197_v25 = vpop.xlane.xlu0 %1196 }
 0x3ce   : > { %v1209_v15 = vmul.f32 0.03125, %v1197_v25  ;;  %v1286_v19 = vsub.f32 %v2102_v50, %v1278_v17 }
 0x3d0   : > { %v1217_v32 = vadd.f32 1e-05, %v1209_v15  ;;  %1306 = vrot.lane.b32.xlu1 %v1287_v51, %s1780_s14 }
 0x3d1   : > { %v1194_v11 = vpop.xlane.xlu1 %1193 }
 0x3d2   : > { %1696 = vrsqrt.f32 %v1217_v32  ;;  %v1208_v39 = vmul.f32 0.03125, %v1194_v11 }
 0x3d4   : > { %v1216_v42 = vadd.f32 1e-05, %v1208_v39 }
 0x3d5   : > { %v1203_v52 = vpop.xlane.xlu0 %1202  ;;  %v985_v54 = vpop.xlane.xlu1 %984 }
 0x3d6   : > { %1698 = vrsqrt.f32 %v1216_v42  ;;  %v1211_v36 = vmul.f32 0.03125, %v1203_v52  ;;  %v999_v4 = vmul.f32 0.03125, %v985_v54 }
 0x3d8   : > { %v1219_v38 = vadd.f32 1e-05, %v1211_v36  ;;  %v1007_v18 = vadd.f32 1e-05, %v999_v4 }
 0x3d9   : > { %v982_v5 = vpop.xlane.xlu0 %981  ;;  %v991_v53 = vpop.xlane.xlu1 %990 }
 0x3da   : > { %1700 = vrsqrt.f32 %v1219_v38  ;;  %v998_v23 = vmul.f32 0.03125, %v982_v5  ;;  %v1001_v34 = vmul.f32 0.03125, %v991_v53 }
 0x3db   : > { %1702 = vrsqrt.f32 %v1007_v18 }
 0x3dc   : > { %v1697_v6 = vpop.eup %1696  ;;  %v1006_v27 = vadd.f32 1e-05, %v998_v23  ;;  %v1009_v30 = vadd.f32 1e-05, %v1001_v34 }
 0x3dd   : > { %v988_v12 = vpop.xlane.xlu0 %987  ;;  %v1200_v14 = vpop.xlane.xlu1 %1199  ;;  %v1233_v49 = vmul.f32 %v1697_v6, %v2090_v35 }
 0x3de   : > { %1704 = vrsqrt.f32 %v1006_v27  ;;  %v1000_v24 = vmul.f32 0.03125, %v988_v12  ;;  %v1210_v3 = vmul.f32 0.03125, %v1200_v14 }
 0x3df   : > { %1706 = vrsqrt.f32 %v1009_v30  ;;  %1254 = vrot.lane.b32.xlu0 %v1233_v49, %s1780_s14  ;;  %v1281_v28 = vmul.f32 %v1233_v49, %v2172_v2 }
 0x3e0   : > { %v1699_v31 = vpop.eup %1698  ;;  %v1008_v55 = vadd.f32 1e-05, %v1000_v24  ;;  %v1218_v9 = vadd.f32 1e-05, %v1210_v3 }
 0x3e1   : > { %v994_v7 = vpop.xlane.xlu0 %993  ;;  %v1232_v16 = vmul.f32 %v1699_v31, %v2090_v35  ;;  %v1289_v15 = vsub.f32 %v2102_v50, %v1281_v28 }
 0x3e2   : > { %1708 = vrsqrt.f32 %v1008_v55  ;;  %v1002_v29 = vmul.f32 0.03125, %v994_v7 }
 0x3e3   : > { %1710 = vrsqrt.f32 %v1218_v9  ;;  %1304 = vrot.lane.b32.xlu0 %v1286_v19, %s1780_s14  ;;  %1252 = vrot.lane.b32.xlu1 %v1232_v16, %s1780_s14  ;;  %v1280_v51 = vmul.f32 %v1232_v16, %v2170_v0 }
 0x3e4   : > { %v1701_v20 = vpop.eup %1700  ;;  %v1010_v21 = vadd.f32 1e-05, %v1002_v29 }
 0x3e5   : > { %v1703_v37 = vpop.eup %1702  ;;  %v1235_v25 = vmul.f32 %v1701_v20, %v2090_v35  ;;  %v1288_v52 = vsub.f32 %v2102_v50, %v1280_v51 }
 0x3e6   : > { %v1023_v32 = vmul.f32 %v1703_v37, %v2090_v35  ;;  %1712 = vrsqrt.f32 %v1010_v21 }
 0x3e7   : > { %1258 = vrot.lane.b32.xlu0 %v1235_v25, %s1780_s14  ;;  %1310 = vrot.lane.b32.xlu1 %v1289_v15, %s1780_s14  ;;  %v1283_v30 = vmul.f32 %v1235_v25, %v2178_v8 }
 0x3e8   : > { %v1705_v2 = vpop.eup %1704  ;;  %v1039_v11 = vmul.f32 %v1023_v32, %v2229_v22  ;;  %v1031_v54 = vmul.f32 %v1023_v32, %v1961_v61 }
 0x3e9   : > { %v1707_v39 = vpop.eup %1706  ;;  %v1022_v42 = vmul.f32 %v1705_v2, %v2090_v35  ;;  %v1291_v8 = vsub.f32 %v2102_v50, %v1283_v30 }
 0x3ea   : > { %v1047_v0 = vsub.f32 %v2102_v50, %v1039_v11  ;;  %v1025_v36 = vmul.f32 %v1707_v39, %v2090_v35 }
 0x3eb   : > { %v1038_v4 = vmul.f32 %v1022_v42, %v2232_v10  ;;  %1308 = vrot.lane.b32.xlu0 %v1288_v52, %s1780_s14  ;;  %v1030_v53 = vmul.f32 %v1955_v58, %v1022_v42 }
 0x3ec   : > { %v1709_v38 = vpop.eup %1708  ;;  %v1055_v18 = vadd.f32 %v1047_v0, %v1031_v54  ;;  %v1041_v22 = vmul.f32 %v1025_v36, %v2236_v26  ;;  %v1033_v6 = vmul.f32 %v1025_v36, %v1965_v63 }
 0x3ed   : > { %v1711_v5 = vpop.eup %1710  ;;  %v1046_v23 = vsub.f32 %v2102_v50, %v1038_v4  ;;  %v1024_v34 = vmul.f32 %v1709_v38, %v2090_v35 }
 0x3ee   : > { %v1049_v27 = vsub.f32 %v2102_v50, %v1041_v22  ;;  %v1234_v10 = vmul.f32 %v1711_v5, %v2090_v35  ;;  %1446 = vst.msk [vmem:[%s2115_s13 + $0x48] sm:$0xff] %vm347_vm1, %v1055_v18 }
 0x3ef   : > { %v1054_v26 = vadd.f32 %v1046_v23, %v1030_v53  ;;  %v1040_v12 = vmul.f32 %v1024_v34, %v2242_v33  ;;  %v1032_v24 = vmul.f32 %v1959_v60, %v1024_v34 }
 0x3f0   : > { %v1713_v14 = vpop.eup %1712  ;;  %v1057_v49 = vadd.f32 %v1049_v27, %v1033_v6  ;;  %1256 = vrot.lane.b32.xlu1 %v1234_v10, %s1780_s14  ;;  %v1282_v17 = vmul.f32 %v1234_v10, %v2181_v13 }
 0x3f1   : > { %v1048_v3 = vsub.f32 %v2102_v50, %v1040_v12  ;;  %v1026_v31 = vmul.f32 %v1713_v14, %v2090_v35  ;;  %1445 = vst.msk [vmem:[%s2115_s13 + $0x38] sm:$0xff] %vm347_vm1, %v1054_v26 }
 0x3f2   : > { %v1290_v33 = vsub.f32 %v2102_v50, %v1282_v17  ;;  %1448 = vst.msk [vmem:[%s2115_s13 + $0x68] sm:$0xff] %vm347_vm1, %v1057_v49 }
 0x3f3   : > { %v1056_v55 = vadd.f32 %v1048_v3, %v1032_v24  ;;  %v1042_v9 = vmul.f32 %v1026_v31, %v2250_v1  ;;  %v1034_v13 = vmul.f32 %v1963_v62, %v1026_v31 }
 0x3f4   : > { %1314 = vrot.lane.b32.xlu1 %v1291_v8, %s1780_s14  ;;  %1312 = vrot.lane.b32.xlu0 %v1290_v33, %s1780_s14 }
 0x3f5   : > { %v1050_v35 = vsub.f32 %v2102_v50, %v1042_v9  ;;  %1447 = vst.msk [vmem:[%s2115_s13 + $0x58] sm:$0xff] %vm347_vm1, %v1056_v55 }
 0x3f7   : > { %v1058_v7 = vadd.f32 %v1050_v35, %v1034_v13 }
 0x3f9   : > { %1449 = vst.msk [vmem:[%s2115_s13 + $0x78] sm:$0xff] %vm347_vm1, %v1058_v7 }
 0x400   : > { %v684_v16 = vpop.permute.xlu0 %683 }
 0x401   : > { %v706_v1 = vmul.f32 %v1901_v40, %v684_v16 }
 0x404   : > { %v682_v19 = vpop.permute.xlu1 %681 }
 0x405   : > { %v705_v15 = vmul.f32 %v682_v19, %v1905_v41 }
 0x408   : > { %v688_v28 = vpop.permute.xlu1 %687 }
 0x40c   : > { %v740_v29 = vpop.permute.xlu1 %739 }
 0x40d   : > { %v762_v20 = vadd.f32 %v740_v29, %v706_v1  ;;  %v690_v21 = vpop.permute.xlu0 %689 }
 0x40e   : > { %v709_v11 = vmul.f32 %v690_v21, %v1915_v46 }
 0x40f   : > { %771 = vst.msk [vmem:[%s2115_s13 + $0x10] sm:$0xff] %vm769_vm2, %v762_v20 }
 0x410   : > { %v686_v37 = vpop.permute.xlu1 %685 }
 0x411   : > { %v707_v50 = vmul.f32 %v686_v37, %v1911_v44  ;;  %v742_v25 = vpop.permute.xlu0 %741  ;;  %v708_v44 = vmul.f32 %v1909_v43, %v688_v28 }
 0x413   : > { %v763_v51 = vadd.f32 %v742_v25, %v707_v50 }
 0x414   : > { %v738_v32 = vpop.permute.xlu1 %737 }
 0x415   : > { %772 = vst.msk [vmem:[%s2115_s13 + $0x20] sm:$0xff] %vm769_vm2, %v763_v51  ;;  %v761_v40 = vadd.f32 %v738_v32, %v705_v15  ;;  %v694_v2 = vpop.permute.xlu0 %693 }
 0x416   : > { %v711_v41 = vmul.f32 %v694_v2, %v1919_v48 }
 0x417   : > { %770 = vst.msk [vmem:[%s2115_s13] sm:$0xff] %vm769_vm2, %v761_v40 }
 0x418   : > { %v692_v39 = vpop.permute.xlu1 %691 }
 0x419   : > { %v746_v42 = vpop.permute.xlu0 %745  ;;  %v710_v18 = vmul.f32 %v1913_v45, %v692_v39 }
 0x41a   : > { %v765_v52 = vadd.f32 %v746_v42, %v709_v11 }
 0x41c   : > { %774 = vst.msk [vmem:[%s2115_s13 + $0x40] sm:$0xff] %vm769_vm2, %v765_v52  ;;  %v744_v54 = vpop.permute.xlu1 %743 }
 0x41d   : > { %v764_v0 = vadd.f32 %v744_v54, %v708_v44  ;;  %v750_v36 = vpop.permute.xlu0 %749 }
 0x41e   : > { %v767_v4 = vadd.f32 %v750_v36, %v711_v41 }
 0x41f   : > { %773 = vst.msk [vmem:[%s2115_s13 + $0x30] sm:$0xff] %vm769_vm2, %v764_v0 }
 0x420   : > { %776 = vst.msk [vmem:[%s2115_s13 + $0x60] sm:$0xff] %vm769_vm2, %v767_v4  ;;  %v696_v46 = vpop.permute.xlu1 %695 }
 0x421   : > { %v1245_v38 = vpop.permute.xlu0 %1244  ;;  %v712_v5 = vmul.f32 %v1917_v47, %v696_v46 }
 0x422   : > { %v1268_v53 = vmul.f32 %v1245_v38, %v1951_v57 }
 0x424   : > { %v748_v43 = vpop.permute.xlu1 %747 }
 0x425   : > { %v766_v22 = vadd.f32 %v748_v43, %v710_v18  ;;  %v1251_v48 = vpop.permute.xlu0 %1250 }
 0x426   : > { %v1271_v57 = vmul.f32 %v1955_v58, %v1251_v48 }
 0x427   : > { %775 = vst.msk [vmem:[%s2115_s13 + $0x50] sm:$0xff] %vm769_vm2, %v766_v22 }
 0x428   : > { %v752_v23 = vpop.permute.xlu1 %751 }
 0x429   : > { %v768_v34 = vadd.f32 %v752_v23, %v712_v5  ;;  %v1301_v6 = vpop.permute.xlu0 %1300 }
 0x42a   : > { %v1324_v27 = vadd.f32 %v1301_v6, %v1268_v53 }
 0x42b   : > { %777 = vst.msk [vmem:[%s2115_s13 + $0x70] sm:$0xff] %vm769_vm2, %v768_v34 }
 0x42c   : > { %1450 = vst.msk [vmem:[%s2115_s13 + $0x8] sm:$0xff] %vm769_vm2, %v1324_v27  ;;  %v1247_v45 = vpop.permute.xlu1 %1246 }
 0x42d   : > { %v1269_v10 = vmul.f32 %v1949_v56, %v1247_v45 }
 0x430   : > { %v1303_v30 = vpop.permute.xlu1 %1302 }
 0x431   : > { %v1325_v26 = vadd.f32 %v1303_v30, %v1269_v10 }
 0x433   : > { %1451 = vst.msk [vmem:[%s2115_s13 + $0x18] sm:$0xff] %vm769_vm2, %v1325_v26 }
 0x43e   : > { %v1249_v47 = vpop.permute.xlu1 %1248 }
 0x43f   : > { %v1270_v17 = vmul.f32 %v1249_v47, %v1957_v59 }
 0x442   : > { %v1307_v12 = vpop.permute.xlu1 %1306 }
 0x443   : > { %v1327_v14 = vadd.f32 %v1307_v12, %v1271_v57 }
 0x445   : > { %1453 = vst.msk [vmem:[%s2115_s13 + $0x38] sm:$0xff] %vm769_vm2, %v1327_v14 }
 0x451   : > { %v1255_v49 = vpop.permute.xlu0 %1254 }
 0x452   : > { %v1273_v31 = vmul.f32 %v1959_v60, %v1255_v49 }
 0x455   : > { %v1305_v24 = vpop.permute.xlu0 %1304  ;;  %v1253_v56 = vpop.permute.xlu1 %1252 }
 0x456   : > { %v1326_v3 = vadd.f32 %v1305_v24, %v1270_v17  ;;  %v1272_v55 = vmul.f32 %v1253_v56, %v1961_v61 }
 0x458   : > { %1452 = vst.msk [vmem:[%s2115_s13 + $0x28] sm:$0xff] %vm769_vm2, %v1326_v3 }
 0x459   : > { %v1259_v8 = vpop.permute.xlu0 %1258  ;;  %v1311_v33 = vpop.permute.xlu1 %1310 }
 0x45a   : > { %v1329_v58 = vadd.f32 %v1311_v33, %v1273_v31  ;;  %v1275_v60 = vmul.f32 %v1963_v62, %v1259_v8 }
 0x45c   : > { %1455 = vst.msk [vmem:[%s2115_s13 + $0x58] sm:$0xff] %vm769_vm2, %v1329_v58 }
 0x45d   : > { %v1309_v9 = vpop.permute.xlu0 %1308 }
 0x45e   : > { %v1328_v59 = vadd.f32 %v1309_v9, %v1272_v55 }
 0x460   : > { %1454 = vst.msk [vmem:[%s2115_s13 + $0x48] sm:$0xff] %vm769_vm2, %v1328_v59 }
 0x462   : > { %v1257_v13 = vpop.permute.xlu1 %1256 }
 0x463   : > { %v1274_v35 = vmul.f32 %v1257_v13, %v1965_v63 }
 0x466   : > { %v1313_v7 = vpop.permute.xlu0 %1312  ;;  %v1315_v19 = vpop.permute.xlu1 %1314 }
 0x467   : > { %v1330_v61 = vadd.f32 %v1313_v7, %v1274_v35  ;;  %v1331_v16 = vadd.f32 %v1315_v19, %v1275_v60 }
 0x469   : > { %1456 = vst.msk [vmem:[%s2115_s13 + $0x68] sm:$0xff] %vm769_vm2, %v1330_v61  ;;  %1457 = vst.msk [vmem:[%s2115_s13 + $0x78] sm:$0xff] %vm769_vm2, %v1331_v16 }
 0x46a   : > { %1727 = shalt.err (!%p1724_p3)
}
 0x46b   : > { %s1728_s7 = scalar_lea.hbm %s2438_s28, 2048  ;;  %s1732_s10 = scalar_lea.hbm %s2493_s4, 4096 }
 0x46c   : > { %p1729_p4 = scmp.ne.s32.totalorder %s2438_s28, %s1728_s7  ;;  %p1733_p9 = scmp.lt.u32.totalorder %s2438_s28, %s2493_s4 }
 0x46d   : > { %p1734_p10 = scmp.lt.u32.totalorder %s1732_s10, %s1728_s7  ;;  %p1736_p12 = scmp.lt.u32.totalorder %s1728_s7, %s2438_s28 }
 0x46e   : > { %p1730_p7 = pnand %p1729_p4, %p1847_p5 }
 0x46f   : > { %p1735_p11 = por %p1734_p10, %p1733_p9 }
 0x470   : > { %p1731_p8 = pneg %p1730_p7 }
 0x471   : > { %p1737_p13 = por %p1736_p12, %p1735_p11 }
 0x473   : > { %p1738_p0 = pnand %p1737_p13, %p1731_p8 }
 0x475   : > { %1741 = shalt.err (!%p1738_p0)
}
 0x476   : > { %s1782_s13 = smov 128   ;;  %s1783_s14 = smov 8  }
 0x477   : > { %1586 = dma.vmem_to_hbm [thread:$0]  (%p1847_p5), %s2440_s22, 2048, %s2438_s28, %s2448_s19, %s1782_s13, %s1782_s13, %s1783_s14  }
 0x478 PF: > { %p1592_p1 = scmp.ge.s32.totalorder %s1776_s18, 2  ;;  %s1370_s20 = sand.u32 1, %s1764_s15  }
 0x479   : > { %s1371_s23 = scalar_lea.sflag [#allocation3], %s1370_s20 }
 0x47a   : > { %p1589_p2 = pnand %p1592_p1, %p1851_p6 }
 0x47c   : > { %1759 = dma.done.wait (!%p1589_p2), %s1371_s23, 2048  }
 0x47d   : > { %1761 = vsyncadd (!%p1589_p2), %s1371_s23, 4294965248  ;;  %p14_p3 = scmp.ge.s32.totalorder %s1834_s21, 4   ;;  %s2496_s15 = smov %s1768_s16 }
 0x47e   : > { %s2497_s16 = smov %s1772_s17  ;;  %s2498_s17 = smov %s1845_s24 }
 0x47f   : > { %s2499_s18 = smov %s1834_s21  ;;  %16 = sbr.rel (!%p14_p3) target bundleno = 3 (0x3), region = 72 }
 0x486   :  { %1376 = vsyncpa [#allocation3], 1 }
 0x487   :  { %1378 = vsyncpa [#allocation3 + $0x1], 1 }

// kernel: tpu_custom_call.1
= control target key start
LH: loop header
LB: loop body
LE: loop exit
PB: predicated region body
PF: predicated region fallthrough
CT: control target
= control target key end

     0   :  { %9 = vsyncpa [#allocation3], 0  ;;  %s2489_s0 = inlined_call_operand.vmem [shape: f32[128,64], index: 0, kind: input, shape index: {}]   ;;  %s2490_s1 = inlined_call_operand.vmem [shape: f32[64,128], index: 1, kind: input, shape index: {}]   ;;  %s2491_s2 = inlined_call_operand.vmem [shape: f32[1,32], index: 2, kind: input, shape index: {}]   ;;  %s2492_s3 = inlined_call_operand.vmem [shape: f32[1,32], index: 3, kind: input, shape index: {}]   ;;  %s2493_s4 = inlined_call_operand.hbm [shape: f32[16,2,8,64], index: 4, kind: output, shape index: {}]  }
   0x1   :  { %11 = vsyncpa [#allocation3 + $0x1], 0  ;;  %s1809_s15 = smov 0   ;;  %s1811_s16 = smov 0  }
   0x2   :  { %s1813_s17 = smov 0   ;;  %s1815_s18 = smov 0  }
   0x3 LB: > { %s1830_s19 = sadd.s32 4294967295, %s1776_s18   ;;  %s1417_s20 = sadd.s32 4294967294, %s1776_s18   ;;  %s1776_s18 = sphi %s1815_s18, %s2499_s18   ;;  %s1772_s17 = sphi %s1813_s17, %s2498_s17   ;;  %s1768_s16 = sphi %s1811_s16, %s2497_s16   ;;  %s1764_s15 = sphi %s1809_s15, %s2496_s15  }
   0x4   : > { %s1834_s21 = sadd.s32 1, %s1776_s18   ;;  %s113_s22 = sadd.s32 1, %s1772_s17 }
   0x5   : > { %s110_s23 = ssub.s32 %s1776_s18, %s1834_s21  ;;  %p123_p0 = scmp.ne.s32.totalorder %s1772_s17, %s1768_s16 }
   0x6   : > { %p111_p1 = scmp.eq.s32.totalorder %s110_s23, 0  ;;  %p124_p2 = scmp.eq.s32.totalorder %s1830_s19, 1 }
   0x7   : > { %p129_p3 = scmp.ne.s32.totalorder %s1768_s16, %s1764_s15  ;;  %p130_p4 = scmp.eq.s32.totalorder %s1417_s20, 1 }
   0x8   : > { %s1845_s24 = scalar_select %p111_p1, %s1772_s17, %s113_s22  }
   0x9   : > { %p1847_p5 = por %p124_p2, %p123_p0  ;;  %p1851_p6 = por %p130_p4, %p129_p3 }
   0xa   : > { %p1420_p7 = scmp.ge.s32.totalorder %s1776_s18, 1  ;;  %p166_p8 = scmp.lt.s32.totalorder %s1776_s18, 3 }
   0xc   : > { %p167_p9 = pnand %p1420_p7, %p166_p8 }
   0xd   : > { %v209_v0 = vld [vmem:[%s2490_s1] sm:$0xff] (!%p167_p9)  ;;  %v210_v1 = vld [vmem:[%s2490_s1 + $0x8] sm:$0xff] (!%p167_p9)  ;;  %v211_v2 = vld [vmem:[%s2490_s1 + $0x10] sm:$0xff] (!%p167_p9)  ;;  %s1422_s7 = sshll.u32 (!%p167_p9), %s1830_s19, 3  ;;  %s1778_s14 = smov (!%p167_p9), 64   ;;  %vm217_vm0 = vcmask (!%p167_p9), 523264  }
   0xe   : > { %170 = sbr.rel (%p167_p9) target bundleno = 1144 (0x478), region = 36  ;;  %v1554_v3 = vpack.c.bf16 (!%p167_p9), %v210_v1, %v209_v0  ;;  %v1630_v4 = vpack.i.bf16 (!%p167_p9), %v210_v1, %v209_v0  ;;  %v212_v5 = vld [vmem:[%s2490_s1 + $0x18] sm:$0xff] (!%p167_p9)  ;;  %v213_v6 = vld [vmem:[%s2490_s1 + $0x20] sm:$0xff] (!%p167_p9)  ;;  %v214_v7 = vld [vmem:[%s2490_s1 + $0x28] sm:$0xff] (!%p167_p9)  ;;  %p193_p10 = scmp.lt.s32.totalorder (!%p167_p9), %s1422_s7, 15  ;;  %vm347_vm1 = vcmask (!%p167_p9), 261120  }
   0xf   : > { %v1558_v8 = vpack.c.bf16 (!%p167_p9), %v212_v5, %v211_v2  ;;  %v1640_v9 = vpack.i.bf16 (!%p167_p9), %v214_v7, %v213_v6  ;;  %v1635_v10 = vpack.i.bf16 (!%p167_p9), %v212_v5, %v211_v2  ;;  %v215_v11 = vld [vmem:[%s2490_s1 + $0x30] sm:$0xff] (!%p167_p9)  ;;  %v216_v12 = vld [vmem:[%s2490_s1 + $0x38] sm:$0xff] (!%p167_p9)  ;;  %v1562_v14 = vpack.c.bf16 (!%p167_p9), %v214_v7, %v213_v6  ;;  %s1779_s6 = smov (!%p167_p9), 96   ;;  %s189_s9 = sand.u32 (!%p167_p9), 1, %s1768_s16  }
  0x10   : > { %1555 = vmatprep.subr.bf16.mxu0 (!%p167_p9), %v1554_v3  ;;  %1631 = vrot.lane.b32.xlu0 (!%p167_p9), %v1630_v4, %s1778_s14  ;;  %v1645_v13 = vpack.i.bf16 (!%p167_p9), %v216_v12, %v215_v11  ;;  %v1566_v16 = vpack.c.bf16 (!%p167_p9), %v216_v12, %v215_v11  ;;  %s1421_s12 = sshll.u32 (!%p167_p9), %s189_s9, 7  ;;  %vm769_vm2 = vcmask (!%p167_p9), 523520   ;;  %s1465_s20 = sshll.u32 (!%p167_p9), %s1830_s19, 11 }
  0x11   : > { %1557 = vmatpush3.bf16.msra.mxu0 (!%p167_p9), %v1554_v3  ;;  %1641 = vrot.lane.b32.xlu1 (!%p167_p9), %v1640_v9, %s1778_s14  ;;  %s2115_s13 = scalar_lea.vmem (!%p167_p9), [#allocation2], %s1421_s12  ;;  %s2448_s19 = scalar_lea.sflag (!%p167_p9), [#allocation3], %s189_s9 }
  0x12   : > { %1559 = vmatprep.subr.bf16.mxu0 (!%p167_p9), %v1558_v8  ;;  %s1355_s22 = sshll.u32 (!%p167_p9), %s2115_s13, 4  ;;  %s1781_s30 = smov (!%p167_p9), [#allocation2]   ;;  %s2440_s22 = int_to_ptr.vmem [resolvable:$true] %s1355_s22 }
  0x13   : > { %s1714_s29 = scalar_lea.vmem (!%p167_p9), %s2440_s22, 2048 }
  0x14   : > { %1636 = vrot.lane.b32.xlu0 (!%p167_p9), %v1635_v10, %s1778_s14  ;;  %p1715_p11 = scmp.ne.s32.totalorder (!%p167_p9), %s2440_s22, %s1714_s29 }
  0x15   : > { %s2501_s7 = smov (!%p193_p10, %s1422_s7), 15  ;;  %1561 = vmatpush3.bf16.msra.mxu0 %v1558_v8  ;;  %1646 = vrot.lane.b32.xlu1 %v1645_v13, %s1778_s14  ;;  %s1780_s14 = smov 32  }
  0x16   : > { %s1423_s28 = sshll.u32 %s2501_s7, 3  ;;  %1563 = vmatprep.subr.bf16.mxu0 %v1562_v14  ;;  %p1716_p12 = pnand %p1715_p11, %p1847_p5 }
  0x17   : > { %s196_s5 = scalar_lea.vmem %s2489_s0, %s1423_s28  ;;  %s2438_s28 = scalar_lea.hbm %s2493_s4, %s1465_s20 }
  0x18   : > { %v199_v15 = vld [vmem:[%s196_s5] sm:$0xff]  ;;  %v200_v17 = vld [vmem:[%s196_s5 + $0x8] sm:$0xff]  ;;  %v201_v18 = vld [vmem:[%s196_s5 + $0x10] sm:$0xff]  ;;  %p1717_p13 = pneg %p1716_p12 }
  0x19   : > { %1514 = vmatprep.mubr.msk.f32.mxu0 %vm217_vm0, %v199_v15  ;;  %1542 = vmatprep.mubr.msk.f32.mxu1 %vm217_vm0, %v199_v15  ;;  %v202_v19 = vld [vmem:[%s196_s5 + $0x18] sm:$0xff]  ;;  %v203_v20 = vld [vmem:[%s196_s5 + $0x20] sm:$0xff]  ;;  %v204_v21 = vld [vmem:[%s196_s5 + $0x28] sm:$0xff] }
  0x1a   : > { %1565 = vmatpush3.bf16.msra.mxu0 %v1562_v14  ;;  %v205_v22 = vld [vmem:[%s196_s5 + $0x30] sm:$0xff]  ;;  %v206_v23 = vld [vmem:[%s196_s5 + $0x38] sm:$0xff]  ;;  %s1718_s5 = sshll.u32 %s1781_s30, 4  ;;  %s1719_s5 = int_to_ptr.vmem [resolvable:$false] %s1718_s5 }
  0x1b   : > { %1567 = vmatprep.subr.bf16.mxu0 %v1566_v16  ;;  %p1721_p0 = scmp.lt.s32.totalorder %s2440_s22, %s1719_s5 }
  0x1e   : > { %1569 = vmatpush3.bf16.msra.mxu0 %v1566_v16 }
  0x21   : > { %1515 = vmatmul.mubr.msk.f32.vlgmr.msra.gmra.mrb[0].mxu0 %vm217_vm0, %v200_v17 }
  0x22   : > { %1517 = vmatprep.mubr.msk.f32.mxu0 %vm217_vm0, %v201_v18 }
  0x25   : > { %1518 = vmatmul.mubr.msk.f32.gmra.mrb[2].mxu0 %vm217_vm0, %v202_v19 }
  0x26   : > { %1520 = vmatprep.mubr.msk.f32.mxu0 %vm217_vm0, %v203_v20 }
  0x29   : > { %1521 = vmatmul.mubr.msk.f32.gmra.mrb[4].mxu0 %vm217_vm0, %v204_v21 }
  0x2a   : > { %1523 = vmatprep.mubr.msk.f32.mxu0 %vm217_vm0, %v205_v22 }
  0x2d   : > { %1524 = vmatmul.mubr.msk.f32.gmra.mrb[6].mxu0 %vm217_vm0, %v206_v23 }
  0x82   : > { %v1632_v24 = vpop.permute.xlu0 %1631 }
  0x83   : > { %v1634_v25 = vunpack.i.h.bf16 %v1632_v24  ;;  %v1633_v26 = vunpack.i.l.bf16 %v1632_v24  ;;  %v1642_v27 = vpop.permute.xlu1 %1641 }
  0x84   : > { %v1644_v29 = vunpack.i.h.bf16 %v1642_v27  ;;  %v1643_v30 = vunpack.i.l.bf16 %v1642_v27 }
  0x85   : > { %v1570_v28 = vpack.c.bf16 %v1634_v25, %v1633_v26 }
  0x86   : > { %v1637_v31 = vpop.permute.xlu0 %1636  ;;  %v1578_v38 = vpack.c.bf16 %v1644_v29, %v1643_v30 }
  0x87   : > { %v1639_v32 = vunpack.i.h.bf16 %v1637_v31  ;;  %v1638_v33 = vunpack.i.l.bf16 %v1637_v31  ;;  %1571 = vmatprep.subr.bf16.mxu1 %v1570_v28  ;;  %v1647_v34 = vpop.permute.xlu1 %1646 }
  0x88   : > { %1573 = vmatpush3.bf16.msra.mxu1 %v1570_v28  ;;  %v1649_v36 = vunpack.i.h.bf16 %v1647_v34  ;;  %v1648_v37 = vunpack.i.l.bf16 %v1647_v34 }
  0x89   : > { %v1574_v35 = vpack.c.bf16 %v1639_v32, %v1638_v33 }
  0x8a   : > { %v1582_v39 = vpack.c.bf16 %v1649_v36, %v1648_v37 }
  0x8b   : > { %1575 = vmatprep.subr.bf16.mxu1 %v1574_v35 }
  0x8c   : > { %1577 = vmatpush3.bf16.msra.mxu1 %v1574_v35 }
  0x8d   : > { %1579 = vmatprep.subr.bf16.mxu1 %v1578_v38 }
  0x90   : > { %1581 = vmatpush3.bf16.msra.mxu1 %v1578_v38 }
  0x91   : > { %1583 = vmatprep.subr.bf16.mxu1 %v1582_v39 }
  0x94   : > { %1585 = vmatpush3.bf16.msra.mxu1 %v1582_v39 }
  0x97   : > { %1543 = vmatmul.mubr.msk.f32.vlgmr.msra.gmra.mrb[0].mxu1 %vm217_vm0, %v200_v17 }
  0x98   : > { %1545 = vmatprep.mubr.msk.f32.mxu1 %vm217_vm0, %v201_v18 }
  0x9b   : > { %1546 = vmatmul.mubr.msk.f32.gmra.mrb[2].mxu1 %vm217_vm0, %v202_v19 }
  0x9c   : > { %1548 = vmatprep.mubr.msk.f32.mxu1 %vm217_vm0, %v203_v20 }
  0x9f   : > { %1549 = vmatmul.mubr.msk.f32.gmra.mrb[4].mxu1 %vm217_vm0, %v204_v21 }
  0xa0   : > { %1551 = vmatprep.mubr.msk.f32.mxu1 %vm217_vm0, %v205_v22 }
  0xa3   : > { %1552 = vmatmul.mubr.msk.f32.gmra.mrb[6].mxu1 %vm217_vm0, %v206_v23 }
  0xf4   : > { %v1901_v40 = vpop.f32.mrb[0].mxu0 }
  0xf5   : > { %515 = vrot.lane.b32.xlu0 %v1901_v40, %s1779_s6  ;;  %v1905_v41 = vpop.f32.mrb[1].mxu0  ;;  %v351_v42 = vsel %vm347_vm1, %v1901_v40, 0.0 }
  0xf6   : > { %352 = vadd.xlane.f32.xlu1 %v351_v42  ;;  %v348_v49 = vsel %vm347_vm1, %v1905_v41, 0.0 }
  0xf8   : > { %v1909_v43 = vpop.f32.mrb[2].mxu0 }
  0xf9   : > { %v1911_v44 = vpop.f32.mrb[3].mxu0  ;;  %v357_v50 = vsel %vm347_vm1, %v1909_v43, 0.0 }
  0xfa   : > { %v354_v51 = vsel %vm347_vm1, %v1911_v44, 0.0 }
  0xfc   : > { %v1913_v45 = vpop.f32.mrb[4].mxu0 }
  0xfd   : > { %v1915_v46 = vpop.f32.mrb[5].mxu0  ;;  %v363_v52 = vsel %vm347_vm1, %v1913_v45, 0.0 }
  0xfe   : > { %v360_v53 = vsel %vm347_vm1, %v1915_v46, 0.0 }
 0x100   : > { %v1917_v47 = vpop.f32.mrb[6].mxu0 }
 0x101   : > { %v1919_v48 = vpop.f32.mrb[7].mxu0  ;;  %v369_v54 = vsel %vm347_vm1, %v1917_v47, 0.0 }
 0x102   : > { %v366_v55 = vsel %vm347_vm1, %v1919_v48, 0.0 }
 0x107   : > { %513 = vrot.lane.b32.xlu1 %v1905_v41, %s1779_s6 }
 0x10b   : > { %519 = vrot.lane.b32.xlu1 %v1909_v43, %s1779_s6 }
 0x10f   : > { %517 = vrot.lane.b32.xlu1 %v1911_v44, %s1779_s6 }
 0x113   : > { %523 = vrot.lane.b32.xlu1 %v1913_v45, %s1779_s6 }
 0x114   : > { %349 = vadd.xlane.f32.xlu0 %v348_v49 }
 0x118   : > { %358 = vadd.xlane.f32.xlu0 %v357_v50 }
 0x11c   : > { %355 = vadd.xlane.f32.xlu0 %v354_v51 }
 0x120   : > { %364 = vadd.xlane.f32.xlu0 %v363_v52 }
 0x136   : > { %521 = vrot.lane.b32.xlu0 %v1915_v46, %s1779_s6 }
 0x137   : > { %361 = vadd.xlane.f32.xlu1 %v360_v53 }
 0x148   : > { %527 = vrot.lane.b32.xlu1 %v1917_v47, %s1779_s6 }
 0x155   : > { %370 = vadd.xlane.f32.xlu0 %v369_v54 }
 0x167   : > { %v516_v1 = vpop.permute.xlu0 %515 }
 0x168   : > { %v540_v2 = vsel %vm347_vm1, %v516_v1, 0.0 }
 0x16a   : > { %v1949_v56 = vpop.f32.mrb[0].mxu1 }
 0x16b   : > { %525 = vrot.lane.b32.xlu0 %v1919_v48, %s1779_s6  ;;  %v1951_v57 = vpop.f32.mrb[1].mxu1 }
 0x16c   : > { %367 = vadd.xlane.f32.xlu1 %v366_v55 }
 0x16e   : > { %v1955_v58 = vpop.f32.mrb[2].mxu1 }
 0x16f   : > { %1076 = vrot.lane.b32.xlu0 %v1951_v57, %s1779_s6  ;;  %v1957_v59 = vpop.f32.mrb[3].mxu1 }
 0x172   : > { %v1959_v60 = vpop.f32.mrb[4].mxu1 }
 0x173   : > { %v1961_v61 = vpop.f32.mrb[5].mxu1 }
 0x176   : > { %v1963_v62 = vpop.f32.mrb[6].mxu1 }
 0x177   : > { %v1965_v63 = vpop.f32.mrb[7].mxu1 }
 0x17d   : > { %1078 = vrot.lane.b32.xlu1 %v1949_v56, %s1779_s6 }
 0x181   : > { %1082 = vrot.lane.b32.xlu1 %v1955_v58, %s1779_s6 }
 0x183   : > { %v353_v0 = vpop.xlane.xlu1 %352 }
 0x184   : > { %v2002_v31 = vmul.f32 0.03125, %v353_v0 }
 0x186   : > { %v382_v35 = vsub.f32 %v1901_v40, %v2002_v31 }
 0x187   : > { %v514_v3 = vpop.permute.xlu1 %513 }
 0x188   : > { %v537_v4 = vsel %vm347_vm1, %v514_v3, 0.0  ;;  %v390_v39 = vmul.f32 %v382_v35, %v382_v35 }
 0x18a   : > { %v400_v49 = vsel %vm347_vm1, %v390_v39, 0.0  ;;  %v932_v39 = vsel %vm347_vm1, %v1955_v58, 0.0 }
 0x18b   : > { %v520_v5 = vpop.permute.xlu1 %519 }
 0x18c   : > { %v546_v14 = vsel %vm347_vm1, %v520_v5, 0.0 }
 0x18e   : > { %541 = vadd.xlane.f32.xlu0 %v540_v2 }
 0x18f   : > { %v518_v6 = vpop.permute.xlu1 %517 }
 0x190   : > { %v543_v7 = vsel %vm347_vm1, %v518_v6, 0.0 }
 0x192   : > { %538 = vadd.xlane.f32.xlu0 %v537_v4 }
 0x193   : > { %v524_v10 = vpop.permute.xlu1 %523 }
 0x194   : > { %v552_v16 = vsel %vm347_vm1, %v524_v10, 0.0 }
 0x1a1   : > { %v350_v8 = vpop.xlane.xlu0 %349 }
 0x1a2   : > { %v1984_v13 = vmul.f32 0.03125, %v350_v8 }
 0x1a4   : > { %v381_v17 = vsub.f32 %v1905_v41, %v1984_v13 }
 0x1a5   : > { %544 = vadd.xlane.f32.xlu1 %v543_v7  ;;  %v359_v9 = vpop.xlane.xlu0 %358 }
 0x1a6   : > { %v1987_v15 = vmul.f32 0.03125, %v359_v9  ;;  %v389_v22 = vmul.f32 %v381_v17, %v381_v17 }
 0x1a8   : > { %1080 = vrot.lane.b32.xlu0 %v1957_v59, %s1779_s6  ;;  %v384_v23 = vsub.f32 %v1909_v43, %v1987_v15  ;;  %v397_v25 = vsel %vm347_vm1, %v389_v22, 0.0 }
 0x1a9   : > { %v356_v11 = vpop.xlane.xlu0 %355 }
 0x1aa   : > { %v392_v26 = vmul.f32 %v384_v23, %v384_v23  ;;  %v2005_v34 = vmul.f32 0.03125, %v356_v11 }
 0x1ac   : > { %1084 = vrot.lane.b32.xlu0 %v1961_v61, %s1779_s6  ;;  %v406_v29 = vsel %vm347_vm1, %v392_v26, 0.0  ;;  %v383_v42 = vsub.f32 %v1911_v44, %v2005_v34 }
 0x1ad   : > { %v365_v18 = vpop.xlane.xlu0 %364 }
 0x1ae   : > { %v1992_v20 = vmul.f32 0.03125, %v365_v18  ;;  %v391_v50 = vmul.f32 %v383_v42, %v383_v42  ;;  %v935_v42 = vsel %vm347_vm1, %v1961_v61, 0.0 }
 0x1b0   : > { %1088 = vrot.lane.b32.xlu0 %v1965_v63, %s1779_s6  ;;  %v386_v27 = vsub.f32 %v1913_v45, %v1992_v20  ;;  %v403_v52 = vsel %vm347_vm1, %v391_v50, 0.0  ;;  %v941_v50 = vsel %vm347_vm1, %v1965_v63, 0.0 }
 0x1b1   : > { %v522_v24 = vpop.permute.xlu0 %521 }
 0x1b2   : > { %v549_v28 = vsel %vm347_vm1, %v522_v24, 0.0  ;;  %v394_v30 = vmul.f32 %v386_v27, %v386_v27 }
 0x1b4   : > { %v412_v33 = vsel %vm347_vm1, %v394_v30, 0.0 }
 0x1b6   : > { %1086 = vrot.lane.b32.xlu1 %v1959_v60, %s1779_s6 }
 0x1ba   : > { %1090 = vrot.lane.b32.xlu1 %v1963_v62, %s1779_s6 }
 0x1c4   : > { %v362_v12 = vpop.xlane.xlu1 %361 }
 0x1c5   : > { %v2009_v37 = vmul.f32 0.03125, %v362_v12 }
 0x1c7   : > { %v385_v51 = vsub.f32 %v1915_v46, %v2009_v37 }
 0x1c8   : > { %v528_v19 = vpop.permute.xlu1 %527 }
 0x1c9   : > { %v558_v21 = vsel %vm347_vm1, %v528_v19, 0.0  ;;  %v393_v53 = vmul.f32 %v385_v51, %v385_v51  ;;  %v923_v19 = vsel %vm347_vm1, %v1951_v57, 0.0  ;;  %v944_v51 = vsel %vm347_vm1, %v1963_v62, 0.0 }
 0x1cb   : > { %v409_v54 = vsel %vm347_vm1, %v393_v53, 0.0 }
 0x1cf   : > { %547 = vadd.xlane.f32.xlu0 %v546_v14 }
 0x1d3   : > { %553 = vadd.xlane.f32.xlu0 %v552_v16 }
 0x1d7   : > { %559 = vadd.xlane.f32.xlu0 %v558_v21 }
 0x1db   : > { %398 = vadd.xlane.f32.xlu0 %v397_v25 }
 0x1de   : > { %550 = vadd.xlane.f32.xlu1 %v549_v28 }
 0x1df   : > { %407 = vadd.xlane.f32.xlu0 %v406_v29 }
 0x1e2   : > { %v371_v32 = vpop.xlane.xlu0 %370 }
 0x1e3   : > { %413 = vadd.xlane.f32.xlu0 %v412_v33  ;;  %v2032_v23 = vmul.f32 0.03125, %v371_v32 }
 0x1e5   : > { %v388_v26 = vsub.f32 %v1917_v47, %v2032_v23 }
 0x1e6   : > { %v526_v36 = vpop.permute.xlu0 %525 }
 0x1e7   : > { %v555_v38 = vsel %vm347_vm1, %v526_v36, 0.0  ;;  %v396_v30 = vmul.f32 %v388_v26, %v388_v26  ;;  %v926_v36 = vsel %vm347_vm1, %v1949_v56, 0.0 }
 0x1e8   : > { %556 = vadd.xlane.f32.xlu1 %v555_v38  ;;  %v929_v38 = vsel %vm347_vm1, %v1957_v59, 0.0 }
 0x1e9   : > { %v418_v32 = vsel %vm347_vm1, %v396_v30, 0.0 }
 0x1ea   : > { %v1077_v6 = vpop.permute.xlu0 %1076 }
 0x1eb   : > { %v1100_v9 = vsel %vm347_vm1, %v1077_v6, 0.0 }
 0x1ec   : > { %401 = vadd.xlane.f32.xlu1 %v400_v49  ;;  %v938_v49 = vsel %vm347_vm1, %v1959_v60, 0.0 }
 0x1f0   : > { %404 = vadd.xlane.f32.xlu1 %v403_v52 }
 0x1f4   : > { %410 = vadd.xlane.f32.xlu1 %v409_v54 }
 0x1f9   : > { %v368_v55 = vpop.xlane.xlu1 %367 }
 0x1fa   : > { %v2019_v0 = vmul.f32 0.03125, %v368_v55 }
 0x1fc   : > { %v387_v1 = vsub.f32 %v1919_v48, %v2019_v0 }
 0x1fd   : > { %v1079_v2 = vpop.permute.xlu1 %1078 }
 0x1fe   : > { %v1103_v3 = vsel %vm347_vm1, %v1079_v2, 0.0  ;;  %v395_v4 = vmul.f32 %v387_v1, %v387_v1 }
 0x1ff   : > { %1104 = vadd.xlane.f32.xlu0 %v1103_v3 }
 0x200   : > { %v415_v5 = vsel %vm347_vm1, %v395_v4, 0.0 }
 0x201   : > { %416 = vadd.xlane.f32.xlu1 %v415_v5  ;;  %v1083_v7 = vpop.permute.xlu1 %1082 }
 0x202   : > { %v1109_v8 = vsel %vm347_vm1, %v1083_v7, 0.0 }
 0x203   : > { %1110 = vadd.xlane.f32.xlu0 %v1109_v8 }
 0x205   : > { %1101 = vadd.xlane.f32.xlu1 %v1100_v9 }
 0x21b   : > { %v542_v10 = vpop.xlane.xlu0 %541 }
 0x21c   : > { %v2074_v9 = vmul.f32 0.03125, %v542_v10 }
 0x21f   : > { %v539_v11 = vpop.xlane.xlu0 %538 }
 0x220   : > { %v2037_v27 = vmul.f32 0.03125, %v539_v11 }
 0x222   : > { %v569_v33 = vsub.f32 %v1905_v41, %v2037_v27 }
 0x223   : > { %v1081_v12 = vpop.permute.xlu0 %1080 }
 0x224   : > { %v1106_v14 = vsel %vm347_vm1, %v1081_v12, 0.0  ;;  %v577_v35 = vmul.f32 %v569_v33, %v569_v33 }
 0x225   : > { %1107 = vadd.xlane.f32.xlu1 %v1106_v14 }
 0x227   : > { %v1085_v16 = vpop.permute.xlu0 %1084 }
 0x228   : > { %v1112_v17 = vsel %vm347_vm1, %v1085_v16, 0.0 }
 0x229   : > { %1113 = vadd.xlane.f32.xlu1 %v1112_v17 }
 0x22b   : > { %v1089_v18 = vpop.permute.xlu0 %1088 }
 0x22c   : > { %v1118_v21 = vsel %vm347_vm1, %v1089_v18, 0.0 }
 0x22d   : > { %924 = vadd.xlane.f32.xlu1 %v923_v19  ;;  %v570_v19 = vsub.f32 %v1901_v40, %v2074_v9 }
 0x231   : > { %1119 = vadd.xlane.f32.xlu1 %v1118_v21 }
 0x232   : > { %v545_v22 = vpop.xlane.xlu1 %544 }
 0x233   : > { %v2058_v53 = vmul.f32 0.03125, %v545_v22 }
 0x235   : > { %v571_v2 = vsub.f32 %v1911_v44, %v2058_v53 }
 0x236   : > { %v1087_v24 = vpop.permute.xlu1 %1086 }
 0x237   : > { %v1115_v25 = vsel %vm347_vm1, %v1087_v24, 0.0  ;;  %v579_v8 = vmul.f32 %v571_v2, %v571_v2 }
 0x238   : > { %1116 = vadd.xlane.f32.xlu0 %v1115_v25 }
 0x23a   : > { %v1091_v28 = vpop.permute.xlu1 %1090 }
 0x23b   : > { %v1121_v29 = vsel %vm347_vm1, %v1091_v28, 0.0 }
 0x23c   : > { %1122 = vadd.xlane.f32.xlu0 %v1121_v29  ;;  %v578_v29 = vmul.f32 %v570_v19, %v570_v19 }
 0x240   : > { %419 = vadd.xlane.f32.xlu0 %v418_v32 }
 0x242   : > { %593 = vrot.lane.b32.xlu1 %v577_v35, %s1779_s6  ;;  %v2090_v35 = vld [vmem:[%s2491_s2] ss:$0 sm:$0xff] }
 0x244   : > { %927 = vadd.xlane.f32.xlu0 %v926_v36 }
 0x248   : > { %930 = vadd.xlane.f32.xlu0 %v929_v38 }
 0x24c   : > { %933 = vadd.xlane.f32.xlu0 %v932_v39 }
 0x250   : > { %936 = vadd.xlane.f32.xlu0 %v935_v42 }
 0x254   : > { %939 = vadd.xlane.f32.xlu0 %v938_v49 }
 0x258   : > { %942 = vadd.xlane.f32.xlu0 %v941_v50  ;;  %v2102_v50 = vld [vmem:[%s2492_s3] ss:$0 sm:$0xff] }
 0x25c   : > { %v548_v52 = vpop.xlane.xlu0 %547  ;;  %945 = vadd.xlane.f32.xlu0 %v944_v51 }
 0x25d   : > { %v2060_v54 = vmul.f32 0.03125, %v548_v52 }
 0x25f   : > { %v572_v55 = vsub.f32 %v1909_v43, %v2060_v54 }
 0x260   : > { %v554_v1 = vpop.xlane.xlu0 %553 }
 0x261   : > { %v2066_v3 = vmul.f32 0.03125, %v554_v1  ;;  %v580_v4 = vmul.f32 %v572_v55, %v572_v55 }
 0x263   : > { %599 = vrot.lane.b32.xlu1 %v580_v4, %s1779_s6  ;;  %v574_v6 = vsub.f32 %v1913_v45, %v2066_v3 }
 0x264   : > { %v560_v5 = vpop.xlane.xlu0 %559 }
 0x265   : > { %v2071_v7 = vmul.f32 0.03125, %v560_v5  ;;  %v582_v12 = vmul.f32 %v574_v6, %v574_v6 }
 0x267   : > { %597 = vrot.lane.b32.xlu1 %v579_v8, %s1779_s6  ;;  %v576_v14 = vsub.f32 %v1917_v47, %v2071_v7 }
 0x268   : > { %v399_v11 = vpop.xlane.xlu0 %398 }
 0x269   : > { %v421_v16 = vmul.f32 0.03125, %v399_v11  ;;  %v584_v24 = vmul.f32 %v576_v14, %v576_v14 }
 0x26b   : > { %v429_v17 = vadd.f32 1e-05, %v421_v16  ;;  %603 = vrot.lane.b32.xlu1 %v582_v12, %s1779_s6  ;;  %v551_v18 = vpop.xlane.xlu1 %550 }
 0x26c   : > { %v2081_v21 = vmul.f32 0.03125, %v551_v18  ;;  %v408_v22 = vpop.xlane.xlu0 %407 }
 0x26d   : > { %1650 = vrsqrt.f32 %v429_v17  ;;  %v424_v10 = vmul.f32 0.03125, %v408_v22 }
 0x26e   : > { %v573_v26 = vsub.f32 %v1915_v46, %v2081_v21 }
 0x26f   : > { %v432_v25 = vadd.f32 1e-05, %v424_v10  ;;  %607 = vrot.lane.b32.xlu1 %v584_v24, %s1779_s6 }
 0x270   : > { %v414_v28 = vpop.xlane.xlu0 %413  ;;  %v581_v32 = vmul.f32 %v573_v26, %v573_v26 }
 0x271   : > { %1652 = vrsqrt.f32 %v432_v25  ;;  %v426_v30 = vmul.f32 0.03125, %v414_v28 }
 0x272   : > { %595 = vrot.lane.b32.xlu0 %v578_v29, %s1779_s6 }
 0x273   : > { %v434_v33 = vadd.f32 1e-05, %v426_v30 }
 0x275   : > { %1654 = vrsqrt.f32 %v434_v33  ;;  %v557_v36 = vpop.xlane.xlu1 %556 }
 0x276   : > { %v2092_v38 = vmul.f32 0.03125, %v557_v36  ;;  %601 = vrot.lane.b32.xlu0 %v581_v32, %s1779_s6 }
 0x277   : > { %v1651_v39 = vpop.eup %1650 }
 0x278   : > { %v451_v42 = vmul.f32 %v1651_v39, %v2090_v35  ;;  %v575_v49 = vsub.f32 %v1919_v48, %v2092_v38 }
 0x279   : > { %v402_v51 = vpop.xlane.xlu1 %401 }
 0x27a   : > { %v467_v52 = vmul.f32 %v451_v42, %v1984_v13  ;;  %v422_v55 = vmul.f32 0.03125, %v402_v51  ;;  %v583_v1 = vmul.f32 %v575_v49, %v575_v49  ;;  %v459_v4 = vmul.f32 %v451_v42, %v1905_v41 }
 0x27b   : > { %v1653_v2 = vpop.eup %1652 }
 0x27c   : > { %v481_v5 = vsub.f32 %v2102_v50, %v467_v52  ;;  %v454_v6 = vmul.f32 %v1653_v2, %v2090_v35  ;;  %v430_v8 = vadd.f32 1e-05, %v422_v55  ;;  %605 = vrot.lane.b32.xlu0 %v583_v1, %s1779_s6 }
 0x27d   : > { %v405_v11 = vpop.xlane.xlu1 %404 }
 0x27e   : > { %v489_v12 = vadd.f32 %v481_v5, %v459_v4  ;;  %v470_v14 = vmul.f32 %v454_v6, %v1987_v15  ;;  %1656 = vrsqrt.f32 %v430_v8  ;;  %v423_v16 = vmul.f32 0.03125, %v405_v11 }
 0x27f   : > { %v1655_v13 = vpop.eup %1654  ;;  %v462_v17 = vmul.f32 %v1909_v43, %v454_v6 }
 0x280   : > { %v484_v18 = vsub.f32 %v2102_v50, %v470_v14  ;;  %v456_v19 = vmul.f32 %v1655_v13, %v2090_v35  ;;  %497 = vst.msk [vmem:[%s2115_s13] sm:$0xff] %vm347_vm1, %v489_v12  ;;  %v431_v22 = vadd.f32 1e-05, %v423_v16 }
 0x281   : > { %v411_v24 = vpop.xlane.xlu1 %410 }
 0x282   : > { %v492_v10 = vadd.f32 %v484_v18, %v462_v17  ;;  %v472_v15 = vmul.f32 %v456_v19, %v1992_v20  ;;  %v425_v25 = vmul.f32 0.03125, %v411_v24  ;;  %1658 = vrsqrt.f32 %v431_v22 }
 0x283   : > { %v464_v26 = vmul.f32 %v1913_v45, %v456_v19 }
 0x284   : > { %v486_v28 = vsub.f32 %v2102_v50, %v472_v15  ;;  %v433_v29 = vadd.f32 1e-05, %v425_v25  ;;  %500 = vst.msk [vmem:[%s2115_s13 + $0x30] sm:$0xff] %vm347_vm1, %v492_v10 }
 0x286   : > { %v494_v30 = vadd.f32 %v486_v28, %v464_v26  ;;  %1660 = vrsqrt.f32 %v433_v29 }
 0x288   : > { %v1657_v33 = vpop.eup %1656  ;;  %502 = vst.msk [vmem:[%s2115_s13 + $0x50] sm:$0xff] %vm347_vm1, %v494_v30 }
 0x289   : > { %v452_v32 = vmul.f32 %v1657_v33, %v2090_v35 }
 0x28b   : > { %v468_v36 = vmul.f32 %v452_v32, %v2002_v31  ;;  %v460_v42 = vmul.f32 %v1901_v40, %v452_v32 }
 0x28c   : > { %v1105_v39 = vpop.xlane.xlu0 %1104  ;;  %v1659_v20 = vpop.eup %1658 }
 0x28d   : > { %v482_v49 = vsub.f32 %v2102_v50, %v468_v36  ;;  %v2130_v51 = vmul.f32 0.03125, %v1105_v39  ;;  %v453_v52 = vmul.f32 %v1659_v20, %v2090_v35 }
 0x28e   : > { %v417_v55 = vpop.xlane.xlu1 %416 }
 0x28f   : > { %v490_v1 = vadd.f32 %v482_v49, %v460_v42  ;;  %v1133_v2 = vsub.f32 %v1949_v56, %v2130_v51  ;;  %v427_v4 = vmul.f32 0.03125, %v417_v55  ;;  %v469_v31 = vmul.f32 %v453_v52, %v2005_v34 }
 0x290   : > { %v1661_v5 = vpop.eup %1660  ;;  %v1111_v12 = vpop.xlane.xlu0 %1110  ;;  %v461_v14 = vmul.f32 %v453_v52, %v1911_v44 }
 0x291   : > { %v455_v6 = vmul.f32 %v1661_v5, %v2090_v35  ;;  %v1141_v8 = vmul.f32 %v1133_v2, %v1133_v2  ;;  %v435_v11 = vadd.f32 1e-05, %v427_v4  ;;  %498 = vst.msk [vmem:[%s2115_s13 + $0x10] sm:$0xff] %vm347_vm1, %v490_v1  ;;  %v483_v13 = vsub.f32 %v2102_v50, %v469_v31 }
 0x292   : > { %v1102_v16 = vpop.xlane.xlu1 %1101  ;;  %v2143_v18 = vmul.f32 0.03125, %v1111_v12 }
 0x293   : > { %v471_v17 = vmul.f32 %v455_v6, %v2009_v37  ;;  %1662 = vrsqrt.f32 %v435_v11  ;;  %1158 = vrot.lane.b32.xlu1 %v1141_v8, %s1779_s6  ;;  %v491_v34 = vadd.f32 %v483_v13, %v461_v14  ;;  %v2145_v19 = vmul.f32 0.03125, %v1102_v16 }
 0x294   : > { %v463_v22 = vmul.f32 %v455_v6, %v1915_v46  ;;  %v1135_v37 = vsub.f32 %v1955_v58, %v2143_v18 }
 0x295   : > { %v485_v24 = vsub.f32 %v2102_v50, %v471_v17  ;;  %v1132_v10 = vsub.f32 %v1951_v57, %v2145_v19  ;;  %499 = vst.msk [vmem:[%s2115_s13 + $0x20] sm:$0xff] %vm347_vm1, %v491_v34 }
 0x296   : > { %v1143_v26 = vmul.f32 %v1135_v37, %v1135_v37 }
 0x297   : > { %v493_v15 = vadd.f32 %v485_v24, %v463_v22  ;;  %v1140_v25 = vmul.f32 %v1132_v10, %v1132_v10 }
 0x299   : > { %501 = vst.msk [vmem:[%s2115_s13 + $0x40] sm:$0xff] %vm347_vm1, %v493_v15  ;;  %1156 = vrot.lane.b32.xlu1 %v1140_v25, %s1779_s6 }
 0x29d   : > { %v1663_v28 = vpop.eup %1662  ;;  %1162 = vrot.lane.b32.xlu1 %v1143_v26, %s1779_s6 }
 0x29e   : > { %v457_v29 = vmul.f32 %v1663_v28, %v2090_v35 }
 0x2a0   : > { %v473_v30 = vmul.f32 %v457_v29, %v2019_v0  ;;  %v465_v33 = vmul.f32 %v457_v29, %v1919_v48 }
 0x2a2   : > { %v487_v32 = vsub.f32 %v2102_v50, %v473_v30 }
 0x2a4   : > { %v495_v36 = vadd.f32 %v487_v32, %v465_v33 }
 0x2a6   : > { %503 = vst.msk [vmem:[%s2115_s13 + $0x60] sm:$0xff] %vm347_vm1, %v495_v36 }
 0x2b2   : > { %v1108_v39 = vpop.xlane.xlu1 %1107 }
 0x2b3   : > { %v2165_v20 = vmul.f32 0.03125, %v1108_v39 }
 0x2b5   : > { %v1134_v42 = vsub.f32 %v1957_v59, %v2165_v20 }
 0x2b6   : > { %v1114_v52 = vpop.xlane.xlu1 %1113 }
 0x2b7   : > { %v1142_v49 = vmul.f32 %v1134_v42, %v1134_v42  ;;  %v2170_v0 = vmul.f32 0.03125, %v1114_v52 }
 0x2b9   : > { %1160 = vrot.lane.b32.xlu1 %v1142_v49, %s1779_s6  ;;  %v1136_v31 = vsub.f32 %v1961_v61, %v2170_v0 }
 0x2ba   : > { %v925_v55 = vpop.xlane.xlu1 %924 }
 0x2bb   : > { %v1144_v14 = vmul.f32 %v1136_v31, %v1136_v31 }
 0x2be   : > { %v1120_v11 = vpop.xlane.xlu1 %1119 }
 0x2bf   : > { %v2181_v13 = vmul.f32 0.03125, %v1120_v11  ;;  %v2206_v11 = vmul.f32 0.03125, %v925_v55 }
 0x2c1   : > { %v1138_v24 = vsub.f32 %v1965_v63, %v2181_v13 }
 0x2c2   : > { %v594_v52 = vpop.permute.xlu1 %593 }
 0x2c3   : > { %v1146_v37 = vmul.f32 %v1138_v24, %v1138_v24 }
 0x2c5   : > { %v1117_v1 = vpop.xlane.xlu0 %1116 }
 0x2c6   : > { %v2172_v2 = vmul.f32 0.03125, %v1117_v1 }
 0x2c8   : > { %v1137_v4 = vsub.f32 %v1959_v60, %v2172_v2 }
 0x2c9   : > { %v1123_v5 = vpop.xlane.xlu0 %1122 }
 0x2ca   : > { %v1145_v6 = vmul.f32 %v1137_v4, %v1137_v4  ;;  %v2178_v8 = vmul.f32 0.03125, %v1123_v5 }
 0x2cc   : > { %1166 = vrot.lane.b32.xlu1 %v1145_v6, %s1779_s6  ;;  %v1139_v16 = vsub.f32 %v1963_v62, %v2178_v8 }
 0x2cd   : > { %v420_v12 = vpop.xlane.xlu0 %419 }
 0x2ce   : > { %v428_v17 = vmul.f32 0.03125, %v420_v12  ;;  %v1147_v10 = vmul.f32 %v1139_v16, %v1139_v16 }
 0x2d0   : > { %v436_v34 = vadd.f32 1e-05, %v428_v17  ;;  %1164 = vrot.lane.b32.xlu1 %v1144_v14, %s1779_s6  ;;  %v955_v17 = vsub.f32 %v1951_v57, %v2206_v11 }
 0x2d1   : > { %v928_v22 = vpop.xlane.xlu0 %927 }
 0x2d2   : > { %1664 = vrsqrt.f32 %v436_v34  ;;  %v2204_v31 = vmul.f32 0.03125, %v928_v22 }
 0x2d4   : > { %1170 = vrot.lane.b32.xlu1 %v1147_v10, %s1779_s6  ;;  %v956_v14 = vsub.f32 %v1949_v56, %v2204_v31 }
 0x2d5   : > { %v931_v15 = vpop.xlane.xlu0 %930  ;;  %v600_v5 = vpop.permute.xlu1 %599 }
 0x2d6   : > { %v626_v12 = vsel %vm347_vm1, %v600_v5, 0.0  ;;  %v2213_v34 = vmul.f32 0.03125, %v931_v15  ;;  %v964_v55 = vmul.f32 %v956_v14, %v956_v14 }
 0x2d8   : > { %1168 = vrot.lane.b32.xlu1 %v1146_v37, %s1779_s6  ;;  %v957_v37 = vsub.f32 %v1957_v59, %v2213_v34  ;;  %s1720_s6 = scalar_lea.vmem %s1719_s5, 4096 }
 0x2d9   : > { %v2190_v25 = vpop.xlane.xlu0 %933  ;;  %v598_v6 = vpop.permute.xlu1 %597  ;;  %p1722_p1 = scmp.lt.s32.totalorder %s1720_s6, %s1714_s29 }
 0x2da   : > { %v623_v24 = vsel %vm347_vm1, %v598_v6, 0.0 }
 0x2db   : > { %p1723_p2 = por %p1722_p1, %p1721_p0 }
 0x2dc   : > { %v1665_v26 = vpop.eup %1664 }
 0x2dd   : > { %v458_v28 = vmul.f32 %v1665_v26, %v2090_v35  ;;  %v937_v29 = vpop.xlane.xlu0 %936  ;;  %v604_v22 = vpop.permute.xlu1 %603  ;;  %p1724_p3 = pnand %p1723_p2, %p1717_p13 }
 0x2de   : > { %v632_v26 = vsel %vm347_vm1, %v604_v22, 0.0  ;;  %v2229_v22 = vmul.f32 0.03125, %v937_v29 }
 0x2df   : > { %v474_v30 = vmul.f32 %v458_v28, %v2032_v23  ;;  %v466_v33 = vmul.f32 %v1917_v47, %v458_v28  ;;  %v617_v23 = vsel %vm347_vm1, %v594_v52, 0.0  ;;  %v963_v28 = vmul.f32 %v955_v17, %v955_v17 }
 0x2e1   : > { %v488_v32 = vsub.f32 %v2102_v50, %v474_v30  ;;  %v2196_v36 = vpop.xlane.xlu0 %939  ;;  %v974_v30 = vsel %vm347_vm1, %v964_v55, 0.0  ;;  %v971_v15 = vsel %vm347_vm1, %v963_v28, 0.0  ;;  %v608_v52 = vpop.permute.xlu1 %607 }
 0x2e2   : > { %v638_v5 = vsel %vm347_vm1, %v608_v52, 0.0 }
 0x2e3   : > { %v496_v39 = vadd.f32 %v488_v32, %v466_v33  ;;  %v965_v32 = vmul.f32 %v957_v37, %v957_v37  ;;  %v959_v37 = vsub.f32 %v1961_v61, %v2229_v22 }
 0x2e5   : > { %v943_v42 = vpop.xlane.xlu0 %942  ;;  %504 = vst.msk [vmem:[%s2115_s13 + $0x70] sm:$0xff] %vm347_vm1, %v496_v39 }
 0x2e9   : > { %v2200_v49 = vpop.xlane.xlu0 %945 }
 0x2ed   : > { %v596_v1 = vpop.permute.xlu0 %595 }
 0x2ee   : > { %v620_v4 = vsel %vm347_vm1, %v596_v1, 0.0  ;;  %v977_v1 = vsel %vm347_vm1, %v965_v32, 0.0  ;;  %v967_v32 = vmul.f32 %v959_v37, %v959_v37 }
 0x2ef   : > { %621 = vadd.xlane.f32.xlu0 %v620_v4 }
 0x2f1   : > { %v602_v16 = vpop.permute.xlu0 %601 }
 0x2f2   : > { %v629_v10 = vsel %vm347_vm1, %v602_v16, 0.0 }
 0x2f3   : > { %618 = vadd.xlane.f32.xlu0 %v617_v23 }
 0x2f5   : > { %v606_v33 = vpop.permute.xlu0 %605 }
 0x2f6   : > { %v635_v39 = vsel %vm347_vm1, %v606_v33, 0.0  ;;  %v2242_v33 = vmul.f32 0.03125, %v2196_v36 }
 0x2f7   : > { %627 = vadd.xlane.f32.xlu0 %v626_v12 }
 0x2fb   : > { %624 = vadd.xlane.f32.xlu0 %v623_v24 }
 0x2fc   : > { %630 = vadd.xlane.f32.xlu1 %v629_v10  ;;  %v2232_v10 = vmul.f32 0.03125, %v2190_v25 }
 0x2ff   : > { %633 = vadd.xlane.f32.xlu0 %v632_v26  ;;  %v2236_v26 = vmul.f32 0.03125, %v943_v42  ;;  %v960_v42 = vsub.f32 %v1959_v60, %v2242_v33 }
 0x300   : > { %975 = vadd.xlane.f32.xlu1 %v974_v30  ;;  %v958_v30 = vsub.f32 %v1955_v58, %v2232_v10 }
 0x301   : > { %v961_v25 = vsub.f32 %v1965_v63, %v2236_v26 }
 0x303   : > { %972 = vadd.xlane.f32.xlu0 %v971_v15 }
 0x304   : > { %636 = vadd.xlane.f32.xlu1 %v635_v39  ;;  %v966_v39 = vmul.f32 %v958_v30, %v958_v30 }
 0x305   : > { %v1159_v4 = vpop.permute.xlu1 %1158 }
 0x306   : > { %v1183_v12 = vsel %vm347_vm1, %v1159_v4, 0.0  ;;  %v983_v4 = vsel %vm347_vm1, %v967_v32, 0.0 }
 0x307   : > { %978 = vadd.xlane.f32.xlu0 %v977_v1  ;;  %v2250_v1 = vmul.f32 0.03125, %v2200_v49 }
 0x30b   : > { %639 = vadd.xlane.f32.xlu0 %v638_v5  ;;  %v1157_v23 = vpop.permute.xlu1 %1156  ;;  %v969_v5 = vmul.f32 %v961_v25, %v961_v25 }
 0x30c   : > { %v1180_v6 = vsel %vm347_vm1, %v1157_v23, 0.0  ;;  %v968_v23 = vmul.f32 %v960_v42, %v960_v42 }
 0x30d   : > { %1181 = vadd.xlane.f32.xlu1 %v1180_v6  ;;  %v962_v6 = vsub.f32 %v1963_v62, %v2250_v1 }
 0x30f   : > { %1184 = vadd.xlane.f32.xlu0 %v1183_v12  ;;  %v1163_v14 = vpop.permute.xlu1 %1162  ;;  %v989_v12 = vsel %vm347_vm1, %v969_v5, 0.0  ;;  %v970_v49 = vmul.f32 %v962_v6, %v962_v6 }
 0x310   : > { %v1189_v16 = vsel %vm347_vm1, %v1163_v14, 0.0  ;;  %v980_v14 = vsel %vm347_vm1, %v966_v39, 0.0 }
 0x313   : > { %1190 = vadd.xlane.f32.xlu0 %v1189_v16 }
 0x32b   : > { %v1161_v17 = vpop.permute.xlu1 %1160 }
 0x32c   : > { %v1186_v24 = vsel %vm347_vm1, %v1161_v17, 0.0  ;;  %v986_v17 = vsel %vm347_vm1, %v968_v23, 0.0 }
 0x32d   : > { %1187 = vadd.xlane.f32.xlu1 %v1186_v24 }
 0x33e   : > { %v1167_v55 = vpop.permute.xlu1 %1166 }
 0x33f   : > { %v1195_v28 = vsel %vm347_vm1, %v1167_v55, 0.0  ;;  %v992_v55 = vsel %vm347_vm1, %v970_v49, 0.0 }
 0x340   : > { %1196 = vadd.xlane.f32.xlu0 %v1195_v28 }
 0x342   : > { %v1165_v29 = vpop.permute.xlu1 %1164 }
 0x343   : > { %v1192_v15 = vsel %vm347_vm1, %v1165_v29, 0.0 }
 0x344   : > { %1193 = vadd.xlane.f32.xlu1 %v1192_v15 }
 0x346   : > { %v1171_v52 = vpop.permute.xlu1 %1170 }
 0x347   : > { %v1201_v36 = vsel %vm347_vm1, %v1171_v52, 0.0 }
 0x348   : > { %984 = vadd.xlane.f32.xlu1 %v983_v4  ;;  %1202 = vadd.xlane.f32.xlu0 %v1201_v36 }
 0x34a   : > { %v1169_v16 = vpop.permute.xlu1 %1168 }
 0x34b   : > { %v1198_v24 = vsel %vm347_vm1, %v1169_v16, 0.0 }
 0x34c   : > { %990 = vadd.xlane.f32.xlu1 %v989_v12  ;;  %981 = vadd.xlane.f32.xlu0 %v980_v14 }
 0x350   : > { %987 = vadd.xlane.f32.xlu0 %v986_v17  ;;  %1199 = vadd.xlane.f32.xlu1 %v1198_v24 }
 0x354   : > { %993 = vadd.xlane.f32.xlu0 %v992_v55 }
 0x37c   : > { %v622_v37 = vpop.xlane.xlu0 %621 }
 0x37d   : > { %v642_v28 = vmul.f32 0.03125, %v622_v37 }
 0x37f   : > { %v650_v30 = vadd.f32 1e-05, %v642_v28 }
 0x380   : > { %v619_v29 = vpop.xlane.xlu0 %618 }
 0x381   : > { %1666 = vrsqrt.f32 %v650_v30  ;;  %v641_v25 = vmul.f32 0.03125, %v619_v29 }
 0x383   : > { %v649_v15 = vadd.f32 1e-05, %v641_v25 }
 0x384   : > { %v628_v32 = vpop.xlane.xlu0 %627 }
 0x385   : > { %1668 = vrsqrt.f32 %v649_v15  ;;  %v644_v39 = vmul.f32 0.03125, %v628_v32 }
 0x387   : > { %v652_v42 = vadd.f32 1e-05, %v644_v39 }
 0x388   : > { %v625_v52 = vpop.xlane.xlu0 %624 }
 0x389   : > { %1670 = vrsqrt.f32 %v652_v42  ;;  %v643_v4 = vmul.f32 0.03125, %v625_v52  ;;  %v631_v36 = vpop.xlane.xlu1 %630 }
 0x38a   : > { %v645_v5 = vmul.f32 0.03125, %v631_v36 }
 0x38b   : > { %v1667_v23 = vpop.eup %1666  ;;  %v651_v6 = vadd.f32 1e-05, %v643_v4 }
 0x38c   : > { %v653_v12 = vadd.f32 1e-05, %v645_v5  ;;  %v634_v14 = vpop.xlane.xlu0 %633  ;;  %v666_v16 = vmul.f32 %v1667_v23, %v2090_v35 }
 0x38d   : > { %1672 = vrsqrt.f32 %v651_v6  ;;  %v976_v49 = vpop.xlane.xlu1 %975  ;;  %v646_v55 = vmul.f32 0.03125, %v634_v14 }
 0x38e   : > { %1674 = vrsqrt.f32 %v653_v12  ;;  %v996_v17 = vmul.f32 0.03125, %v976_v49  ;;  %683 = vrot.lane.b32.xlu0 %v666_v16, %s1780_s14  ;;  %v714_v5 = vmul.f32 %v666_v16, %v2074_v9 }
 0x38f   : > { %v1669_v24 = vpop.eup %1668  ;;  %v654_v39 = vadd.f32 1e-05, %v646_v55 }
 0x390   : > { %v1004_v37 = vadd.f32 1e-05, %v996_v17  ;;  %v973_v28 = vpop.xlane.xlu0 %972  ;;  %v665_v30 = vmul.f32 %v1669_v24, %v2090_v35  ;;  %v722_v17 = vsub.f32 %v2102_v50, %v714_v5 }
 0x391   : > { %v995_v29 = vmul.f32 0.03125, %v973_v28  ;;  %v637_v25 = vpop.xlane.xlu1 %636 }
 0x392   : > { %1676 = vrsqrt.f32 %v1004_v37  ;;  %v647_v15 = vmul.f32 0.03125, %v637_v25  ;;  %681 = vrot.lane.b32.xlu1 %v665_v30, %s1780_s14  ;;  %v713_v25 = vmul.f32 %v665_v30, %v2037_v27 }
 0x393   : > { %v1671_v32 = vpop.eup %1670  ;;  %v1003_v42 = vadd.f32 1e-05, %v995_v29 }
 0x394   : > { %v655_v52 = vadd.f32 1e-05, %v647_v15  ;;  %v979_v4 = vpop.xlane.xlu0 %978  ;;  %v668_v36 = vmul.f32 %v1671_v32, %v2090_v35  ;;  %v721_v30 = vsub.f32 %v2102_v50, %v713_v25 }
 0x395   : > { %1678 = vrsqrt.f32 %v1003_v42  ;;  %v997_v23 = vmul.f32 0.03125, %v979_v4 }
 0x396   : > { %1680 = vrsqrt.f32 %v655_v52  ;;  %687 = vrot.lane.b32.xlu1 %v668_v36, %s1780_s14 }
 0x397   : > { %v1673_v6 = vpop.eup %1672  ;;  %1682 = vrsqrt.f32 %v654_v39  ;;  %v1005_v12 = vadd.f32 1e-05, %v997_v23 }
 0x398   : > { %v1675_v14 = vpop.eup %1674  ;;  %v640_v49 = vpop.xlane.xlu0 %639  ;;  %v667_v24 = vmul.f32 %v1673_v6, %v2090_v35 }
 0x399   : > { %1684 = vrsqrt.f32 %v1005_v12  ;;  %v648_v55 = vmul.f32 0.03125, %v640_v49  ;;  %v669_v37 = vmul.f32 %v1675_v14, %v2090_v35 }
 0x39a   : > { %739 = vrot.lane.b32.xlu1 %v722_v17, %s1780_s14  ;;  %v715_v9 = vmul.f32 %v667_v24, %v2058_v53  ;;  %v1182_v28 = vpop.xlane.xlu1 %1181 }
 0x39b   : > { %v656_v16 = vadd.f32 1e-05, %v648_v55  ;;  %689 = vrot.lane.b32.xlu0 %v669_v37, %s1780_s14  ;;  %v1204_v15 = vmul.f32 0.03125, %v1182_v28  ;;  %v717_v12 = vmul.f32 %v669_v37, %v2081_v21  ;;  %v716_v21 = vmul.f32 %v668_v36, %v2060_v54 }
 0x39c   : > { %v1677_v29 = vpop.eup %1676  ;;  %v1185_v32 = vpop.xlane.xlu0 %1184  ;;  %v723_v39 = vsub.f32 %v2102_v50, %v715_v9 }
 0x39d   : > { %v1020_v42 = vmul.f32 %v1677_v29, %v2090_v35  ;;  %v1212_v52 = vadd.f32 1e-05, %v1204_v15  ;;  %1686 = vrsqrt.f32 %v656_v16  ;;  %v1205_v53 = vmul.f32 0.03125, %v1185_v32 }
 0x39e   : > { %685 = vrot.lane.b32.xlu1 %v667_v24, %s1780_s14 }
 0x39f   : > { %v1679_v4 = vpop.eup %1678  ;;  %v1036_v5 = vmul.f32 %v1020_v42, %v2204_v31  ;;  %741 = vrot.lane.b32.xlu0 %v723_v39, %s1780_s14  ;;  %1688 = vrsqrt.f32 %v1212_v52  ;;  %v1028_v49 = vmul.f32 %v1949_v56, %v1020_v42  ;;  %v1213_v28 = vadd.f32 1e-05, %v1205_v53 }
 0x3a0   : > { %v1681_v23 = vpop.eup %1680  ;;  %v1019_v6 = vmul.f32 %v1679_v4, %v2090_v35  ;;  %v1191_v27 = vpop.xlane.xlu0 %1190  ;;  %v724_v4 = vsub.f32 %v2102_v50, %v716_v21 }
 0x3a1   : > { %v1683_v14 = vpop.eup %1682  ;;  %v1044_v17 = vsub.f32 %v2102_v50, %v1036_v5  ;;  %v1207_v24 = vmul.f32 0.03125, %v1191_v27  ;;  %v671_v31 = vmul.f32 %v1681_v23, %v2090_v35 }
 0x3a2   : > { %v1035_v55 = vmul.f32 %v1019_v6, %v2206_v11  ;;  %737 = vrot.lane.b32.xlu1 %v721_v30, %s1780_s14  ;;  %v1027_v37 = vmul.f32 %v1019_v6, %v1951_v57  ;;  %v670_v32 = vmul.f32 %v1683_v14, %v2090_v35  ;;  %v725_v11 = vsub.f32 %v2102_v50, %v717_v12 }
 0x3a3   : > { %v1685_v9 = vpop.eup %1684  ;;  %v1052_v16 = vadd.f32 %v1044_v17, %v1028_v49  ;;  %v1215_v29 = vadd.f32 1e-05, %v1207_v24  ;;  %693 = vrot.lane.b32.xlu0 %v671_v31, %s1780_s14  ;;  %v719_v39 = vmul.f32 %v671_v31, %v2092_v38 }
 0x3a4   : > { %v1043_v25 = vsub.f32 %v2102_v50, %v1035_v55  ;;  %v1021_v15 = vmul.f32 %v1685_v9, %v2090_v35  ;;  %v718_v6 = vmul.f32 %v670_v32, %v2066_v3 }
 0x3a5   : > { %1690 = vrsqrt.f32 %v1215_v29  ;;  %1443 = vst.msk [vmem:[%s2115_s13 + $0x18] sm:$0xff] %vm347_vm1, %v1052_v16  ;;  %v727_v5 = vsub.f32 %v2102_v50, %v719_v39 }
 0x3a6   : > { %v1051_v42 = vadd.f32 %v1043_v25, %v1027_v37  ;;  %v1037_v52 = vmul.f32 %v1021_v15, %v2213_v34  ;;  %691 = vrot.lane.b32.xlu1 %v670_v32, %s1780_s14  ;;  %1692 = vrsqrt.f32 %v1213_v28  ;;  %v1029_v54 = vmul.f32 %v1021_v15, %v1957_v59 }
 0x3a7   : > { %745 = vrot.lane.b32.xlu0 %v725_v11, %s1780_s14  ;;  %v1687_v38 = vpop.eup %1686  ;;  %v726_v12 = vsub.f32 %v2102_v50, %v718_v6 }
 0x3a8   : > { %v1045_v36 = vsub.f32 %v2102_v50, %v1037_v52  ;;  %1442 = vst.msk [vmem:[%s2115_s13 + $0x8] sm:$0xff] %vm347_vm1, %v1051_v42  ;;  %v672_v34 = vmul.f32 %v1687_v38, %v2090_v35 }
 0x3a9   : > { %v1689_v53 = vpop.eup %1688 }
 0x3aa   : > { %v1053_v23 = vadd.f32 %v1045_v36, %v1029_v54  ;;  %743 = vrot.lane.b32.xlu1 %v724_v4, %s1780_s14  ;;  %v1228_v27 = vmul.f32 %v1689_v53, %v2090_v35  ;;  %v720_v49 = vmul.f32 %v672_v34, %v2071_v7 }
 0x3ab   : > { %749 = vrot.lane.b32.xlu0 %v727_v5, %s1780_s14 }
 0x3ac   : > { %1444 = vst.msk [vmem:[%s2115_s13 + $0x28] sm:$0xff] %vm347_vm1, %v1053_v23  ;;  %v1276_v24 = vmul.f32 %v1228_v27, %v2145_v19  ;;  %v728_v3 = vsub.f32 %v2102_v50, %v720_v49 }
 0x3ae   : > { %695 = vrot.lane.b32.xlu1 %v672_v34, %s1780_s14  ;;  %v1284_v55 = vsub.f32 %v2102_v50, %v1276_v24 }
 0x3af   : > { %v1691_v30 = vpop.eup %1690  ;;  %1244 = vrot.lane.b32.xlu0 %v1228_v27, %s1780_s14 }
 0x3b0   : > { %v1231_v14 = vmul.f32 %v1691_v30, %v2090_v35  ;;  %v1693_v17 = vpop.eup %1692 }
 0x3b1   : > { %v1229_v31 = vmul.f32 %v1693_v17, %v2090_v35 }
 0x3b2   : > { %747 = vrot.lane.b32.xlu1 %v726_v12, %s1780_s14  ;;  %v1279_v37 = vmul.f32 %v1231_v14, %v2143_v18 }
 0x3b3   : > { %1250 = vrot.lane.b32.xlu0 %v1231_v14, %s1780_s14  ;;  %v1277_v9 = vmul.f32 %v1229_v31, %v2130_v51 }
 0x3b4   : > { %v1287_v51 = vsub.f32 %v2102_v50, %v1279_v37 }
 0x3b5   : > { %v1285_v16 = vsub.f32 %v2102_v50, %v1277_v9 }
 0x3b6   : > { %751 = vrot.lane.b32.xlu1 %v728_v3, %s1780_s14 }
 0x3b7   : > { %1300 = vrot.lane.b32.xlu0 %v1284_v55, %s1780_s14 }
 0x3ba   : > { %1246 = vrot.lane.b32.xlu1 %v1229_v31, %s1780_s14  ;;  %v1188_v7 = vpop.xlane.xlu1 %1187 }
 0x3bb   : > { %v1206_v19 = vmul.f32 0.03125, %v1188_v7 }
 0x3bd   : > { %v1214_v28 = vadd.f32 1e-05, %v1206_v19 }
 0x3be   : > { %1302 = vrot.lane.b32.xlu1 %v1285_v16, %s1780_s14 }
 0x3bf   : > { %1694 = vrsqrt.f32 %v1214_v28 }
 0x3c9   : > { %v1695_v29 = vpop.eup %1694 }
 0x3ca   : > { %v1230_v21 = vmul.f32 %v1695_v29, %v2090_v35 }
 0x3cc   : > { %1248 = vrot.lane.b32.xlu1 %v1230_v21, %s1780_s14  ;;  %v1278_v17 = vmul.f32 %v1230_v21, %v2165_v20 }
 0x3cd   : > { %v1197_v25 = vpop.xlane.xlu0 %1196 }
 0x3ce   : > { %v1209_v15 = vmul.f32 0.03125, %v1197_v25  ;;  %v1286_v19 = vsub.f32 %v2102_v50, %v1278_v17 }
 0x3d0   : > { %v1217_v32 = vadd.f32 1e-05, %v1209_v15  ;;  %1306 = vrot.lane.b32.xlu1 %v1287_v51, %s1780_s14 }
 0x3d1   : > { %v1194_v11 = vpop.xlane.xlu1 %1193 }
 0x3d2   : > { %1696 = vrsqrt.f32 %v1217_v32  ;;  %v1208_v39 = vmul.f32 0.03125, %v1194_v11 }
 0x3d4   : > { %v1216_v42 = vadd.f32 1e-05, %v1208_v39 }
 0x3d5   : > { %v1203_v52 = vpop.xlane.xlu0 %1202  ;;  %v985_v54 = vpop.xlane.xlu1 %984 }
 0x3d6   : > { %1698 = vrsqrt.f32 %v1216_v42  ;;  %v1211_v36 = vmul.f32 0.03125, %v1203_v52  ;;  %v999_v4 = vmul.f32 0.03125, %v985_v54 }
 0x3d8   : > { %v1219_v38 = vadd.f32 1e-05, %v1211_v36  ;;  %v1007_v18 = vadd.f32 1e-05, %v999_v4 }
 0x3d9   : > { %v982_v5 = vpop.xlane.xlu0 %981  ;;  %v991_v53 = vpop.xlane.xlu1 %990 }
 0x3da   : > { %1700 = vrsqrt.f32 %v1219_v38  ;;  %v998_v23 = vmul.f32 0.03125, %v982_v5  ;;  %v1001_v34 = vmul.f32 0.03125, %v991_v53 }
 0x3db   : > { %1702 = vrsqrt.f32 %v1007_v18 }
 0x3dc   : > { %v1697_v6 = vpop.eup %1696  ;;  %v1006_v27 = vadd.f32 1e-05, %v998_v23  ;;  %v1009_v30 = vadd.f32 1e-05, %v1001_v34 }
 0x3dd   : > { %v988_v12 = vpop.xlane.xlu0 %987  ;;  %v1200_v14 = vpop.xlane.xlu1 %1199  ;;  %v1233_v49 = vmul.f32 %v1697_v6, %v2090_v35 }
 0x3de   : > { %1704 = vrsqrt.f32 %v1006_v27  ;;  %v1000_v24 = vmul.f32 0.03125, %v988_v12  ;;  %v1210_v3 = vmul.f32 0.03125, %v1200_v14 }
 0x3df   : > { %1706 = vrsqrt.f32 %v1009_v30  ;;  %1254 = vrot.lane.b32.xlu0 %v1233_v49, %s1780_s14  ;;  %v1281_v28 = vmul.f32 %v1233_v49, %v2172_v2 }
 0x3e0   : > { %v1699_v31 = vpop.eup %1698  ;;  %v1008_v55 = vadd.f32 1e-05, %v1000_v24  ;;  %v1218_v9 = vadd.f32 1e-05, %v1210_v3 }
 0x3e1   : > { %v994_v7 = vpop.xlane.xlu0 %993  ;;  %v1232_v16 = vmul.f32 %v1699_v31, %v2090_v35  ;;  %v1289_v15 = vsub.f32 %v2102_v50, %v1281_v28 }
 0x3e2   : > { %1708 = vrsqrt.f32 %v1008_v55  ;;  %v1002_v29 = vmul.f32 0.03125, %v994_v7 }
 0x3e3   : > { %1710 = vrsqrt.f32 %v1218_v9  ;;  %1304 = vrot.lane.b32.xlu0 %v1286_v19, %s1780_s14  ;;  %1252 = vrot.lane.b32.xlu1 %v1232_v16, %s1780_s14  ;;  %v1280_v51 = vmul.f32 %v1232_v16, %v2170_v0 }
 0x3e4   : > { %v1701_v20 = vpop.eup %1700  ;;  %v1010_v21 = vadd.f32 1e-05, %v1002_v29 }
 0x3e5   : > { %v1703_v37 = vpop.eup %1702  ;;  %v1235_v25 = vmul.f32 %v1701_v20, %v2090_v35  ;;  %v1288_v52 = vsub.f32 %v2102_v50, %v1280_v51 }
 0x3e6   : > { %v1023_v32 = vmul.f32 %v1703_v37, %v2090_v35  ;;  %1712 = vrsqrt.f32 %v1010_v21 }
 0x3e7   : > { %1258 = vrot.lane.b32.xlu0 %v1235_v25, %s1780_s14  ;;  %1310 = vrot.lane.b32.xlu1 %v1289_v15, %s1780_s14  ;;  %v1283_v30 = vmul.f32 %v1235_v25, %v2178_v8 }
 0x3e8   : > { %v1705_v2 = vpop.eup %1704  ;;  %v1039_v11 = vmul.f32 %v1023_v32, %v2229_v22  ;;  %v1031_v54 = vmul.f32 %v1023_v32, %v1961_v61 }
 0x3e9   : > { %v1707_v39 = vpop.eup %1706  ;;  %v1022_v42 = vmul.f32 %v1705_v2, %v2090_v35  ;;  %v1291_v8 = vsub.f32 %v2102_v50, %v1283_v30 }
 0x3ea   : > { %v1047_v0 = vsub.f32 %v2102_v50, %v1039_v11  ;;  %v1025_v36 = vmul.f32 %v1707_v39, %v2090_v35 }
 0x3eb   : > { %v1038_v4 = vmul.f32 %v1022_v42, %v2232_v10  ;;  %1308 = vrot.lane.b32.xlu0 %v1288_v52, %s1780_s14  ;;  %v1030_v53 = vmul.f32 %v1955_v58, %v1022_v42 }
 0x3ec   : > { %v1709_v38 = vpop.eup %1708  ;;  %v1055_v18 = vadd.f32 %v1047_v0, %v1031_v54  ;;  %v1041_v22 = vmul.f32 %v1025_v36, %v2236_v26  ;;  %v1033_v6 = vmul.f32 %v1025_v36, %v1965_v63 }
 0x3ed   : > { %v1711_v5 = vpop.eup %1710  ;;  %v1046_v23 = vsub.f32 %v2102_v50, %v1038_v4  ;;  %v1024_v34 = vmul.f32 %v1709_v38, %v2090_v35 }
 0x3ee   : > { %v1049_v27 = vsub.f32 %v2102_v50, %v1041_v22  ;;  %v1234_v10 = vmul.f32 %v1711_v5, %v2090_v35  ;;  %1446 = vst.msk [vmem:[%s2115_s13 + $0x48] sm:$0xff] %vm347_vm1, %v1055_v18 }
 0x3ef   : > { %v1054_v26 = vadd.f32 %v1046_v23, %v1030_v53  ;;  %v1040_v12 = vmul.f32 %v1024_v34, %v2242_v33  ;;  %v1032_v24 = vmul.f32 %v1959_v60, %v1024_v34 }
 0x3f0   : > { %v1713_v14 = vpop.eup %1712  ;;  %v1057_v49 = vadd.f32 %v1049_v27, %v1033_v6  ;;  %1256 = vrot.lane.b32.xlu1 %v1234_v10, %s1780_s14  ;;  %v1282_v17 = vmul.f32 %v1234_v10, %v2181_v13 }
 0x3f1   : > { %v1048_v3 = vsub.f32 %v2102_v50, %v1040_v12  ;;  %v1026_v31 = vmul.f32 %v1713_v14, %v2090_v35  ;;  %1445 = vst.msk [vmem:[%s2115_s13 + $0x38] sm:$0xff] %vm347_vm1, %v1054_v26 }
 0x3f2   : > { %v1290_v33 = vsub.f32 %v2102_v50, %v1282_v17  ;;  %1448 = vst.msk [vmem:[%s2115_s13 + $0x68] sm:$0xff] %vm347_vm1, %v1057_v49 }
 0x3f3   : > { %v1056_v55 = vadd.f32 %v1048_v3, %v1032_v24  ;;  %v1042_v9 = vmul.f32 %v1026_v31, %v2250_v1  ;;  %v1034_v13 = vmul.f32 %v1963_v62, %v1026_v31 }
 0x3f4   : > { %1314 = vrot.lane.b32.xlu1 %v1291_v8, %s1780_s14  ;;  %1312 = vrot.lane.b32.xlu0 %v1290_v33, %s1780_s14 }
 0x3f5   : > { %v1050_v35 = vsub.f32 %v2102_v50, %v1042_v9  ;;  %1447 = vst.msk [vmem:[%s2115_s13 + $0x58] sm:$0xff] %vm347_vm1, %v1056_v55 }
 0x3f7   : > { %v1058_v7 = vadd.f32 %v1050_v35, %v1034_v13 }
 0x3f9   : > { %1449 = vst.msk [vmem:[%s2115_s13 + $0x78] sm:$0xff] %vm347_vm1, %v1058_v7 }
 0x400   : > { %v684_v16 = vpop.permute.xlu0 %683 }
 0x401   : > { %v706_v1 = vmul.f32 %v1901_v40, %v684_v16 }
 0x404   : > { %v682_v19 = vpop.permute.xlu1 %681 }
 0x405   : > { %v705_v15 = vmul.f32 %v682_v19, %v1905_v41 }
 0x408   : > { %v688_v28 = vpop.permute.xlu1 %687 }
 0x40c   : > { %v740_v29 = vpop.permute.xlu1 %739 }
 0x40d   : > { %v762_v20 = vadd.f32 %v740_v29, %v706_v1  ;;  %v690_v21 = vpop.permute.xlu0 %689 }
 0x40e   : > { %v709_v11 = vmul.f32 %v690_v21, %v1915_v46 }
 0x40f   : > { %771 = vst.msk [vmem:[%s2115_s13 + $0x10] sm:$0xff] %vm769_vm2, %v762_v20 }
 0x410   : > { %v686_v37 = vpop.permute.xlu1 %685 }
 0x411   : > { %v707_v50 = vmul.f32 %v686_v37, %v1911_v44  ;;  %v742_v25 = vpop.permute.xlu0 %741  ;;  %v708_v44 = vmul.f32 %v1909_v43, %v688_v28 }
 0x413   : > { %v763_v51 = vadd.f32 %v742_v25, %v707_v50 }
 0x414   : > { %v738_v32 = vpop.permute.xlu1 %737 }
 0x415   : > { %772 = vst.msk [vmem:[%s2115_s13 + $0x20] sm:$0xff] %vm769_vm2, %v763_v51  ;;  %v761_v40 = vadd.f32 %v738_v32, %v705_v15  ;;  %v694_v2 = vpop.permute.xlu0 %693 }
 0x416   : > { %v711_v41 = vmul.f32 %v694_v2, %v1919_v48 }
 0x417   : > { %770 = vst.msk [vmem:[%s2115_s13] sm:$0xff] %vm769_vm2, %v761_v40 }
 0x418   : > { %v692_v39 = vpop.permute.xlu1 %691 }
 0x419   : > { %v746_v42 = vpop.permute.xlu0 %745  ;;  %v710_v18 = vmul.f32 %v1913_v45, %v692_v39 }
 0x41a   : > { %v765_v52 = vadd.f32 %v746_v42, %v709_v11 }
 0x41c   : > { %774 = vst.msk [vmem:[%s2115_s13 + $0x40] sm:$0xff] %vm769_vm2, %v765_v52  ;;  %v744_v54 = vpop.permute.xlu1 %743 }
 0x41d   : > { %v764_v0 = vadd.f32 %v744_v54, %v708_v44  ;;  %v750_v36 = vpop.permute.xlu0 %749 }
 0x41e   : > { %v767_v4 = vadd.f32 %v750_v36, %v711_v41 }
 0x41f   : > { %773 = vst.msk [vmem:[%s2115_s13 + $0x30] sm:$0xff] %vm769_vm2, %v764_v0 }
 0x420   : > { %776 = vst.msk [vmem:[%s2115_s13 + $0x60] sm:$0xff] %vm769_vm2, %v767_v4  ;;  %v696_v46 = vpop.permute.xlu1 %695 }
 0x421   : > { %v1245_v38 = vpop.permute.xlu0 %1244  ;;  %v712_v5 = vmul.f32 %v1917_v47, %v696_v46 }
 0x422   : > { %v1268_v53 = vmul.f32 %v1245_v38, %v1951_v57 }
 0x424   : > { %v748_v43 = vpop.permute.xlu1 %747 }
 0x425   : > { %v766_v22 = vadd.f32 %v748_v43, %v710_v18  ;;  %v1251_v48 = vpop.permute.xlu0 %1250 }
 0x426   : > { %v1271_v57 = vmul.f32 %v1955_v58, %v1251_v48 }
 0x427   : > { %775 = vst.msk [vmem:[%s2115_s13 + $0x50] sm:$0xff] %vm769_vm2, %v766_v22 }
 0x428   : > { %v752_v23 = vpop.permute.xlu1 %751 }
 0x429   : > { %v768_v34 = vadd.f32 %v752_v23, %v712_v5  ;;  %v1301_v6 = vpop.permute.xlu0 %1300 }
 0x42a   : > { %v1324_v27 = vadd.f32 %v1301_v6, %v1268_v53 }
 0x42b   : > { %777 = vst.msk [vmem:[%s2115_s13 + $0x70] sm:$0xff] %vm769_vm2, %v768_v34 }
 0x42c   : > { %1450 = vst.msk [vmem:[%s2115_s13 + $0x8] sm:$0xff] %vm769_vm2, %v1324_v27  ;;  %v1247_v45 = vpop.permute.xlu1 %1246 }
 0x42d   : > { %v1269_v10 = vmul.f32 %v1949_v56, %v1247_v45 }
 0x430   : > { %v1303_v30 = vpop.permute.xlu1 %1302 }
 0x431   : > { %v1325_v26 = vadd.f32 %v1303_v30, %v1269_v10 }
 0x433   : > { %1451 = vst.msk [vmem:[%s2115_s13 + $0x18] sm:$0xff] %vm769_vm2, %v1325_v26 }
 0x43e   : > { %v1249_v47 = vpop.permute.xlu1 %1248 }
 0x43f   : > { %v1270_v17 = vmul.f32 %v1249_v47, %v1957_v59 }
 0x442   : > { %v1307_v12 = vpop.permute.xlu1 %1306 }
 0x443   : > { %v1327_v14 = vadd.f32 %v1307_v12, %v1271_v57 }
 0x445   : > { %1453 = vst.msk [vmem:[%s2115_s13 + $0x38] sm:$0xff] %vm769_vm2, %v1327_v14 }
 0x451   : > { %v1255_v49 = vpop.permute.xlu0 %1254 }
 0x452   : > { %v1273_v31 = vmul.f32 %v1959_v60, %v1255_v49 }
 0x455   : > { %v1305_v24 = vpop.permute.xlu0 %1304  ;;  %v1253_v56 = vpop.permute.xlu1 %1252 }
 0x456   : > { %v1326_v3 = vadd.f32 %v1305_v24, %v1270_v17  ;;  %v1272_v55 = vmul.f32 %v1253_v56, %v1961_v61 }
 0x458   : > { %1452 = vst.msk [vmem:[%s2115_s13 + $0x28] sm:$0xff] %vm769_vm2, %v1326_v3 }
 0x459   : > { %v1259_v8 = vpop.permute.xlu0 %1258  ;;  %v1311_v33 = vpop.permute.xlu1 %1310 }
 0x45a   : > { %v1329_v58 = vadd.f32 %v1311_v33, %v1273_v31  ;;  %v1275_v60 = vmul.f32 %v1963_v62, %v1259_v8 }
 0x45c   : > { %1455 = vst.msk [vmem:[%s2115_s13 + $0x58] sm:$0xff] %vm769_vm2, %v1329_v58 }
 0x45d   : > { %v1309_v9 = vpop.permute.xlu0 %1308 }
 0x45e   : > { %v1328_v59 = vadd.f32 %v1309_v9, %v1272_v55 }
 0x460   : > { %1454 = vst.msk [vmem:[%s2115_s13 + $0x48] sm:$0xff] %vm769_vm2, %v1328_v59 }
 0x462   : > { %v1257_v13 = vpop.permute.xlu1 %1256 }
 0x463   : > { %v1274_v35 = vmul.f32 %v1257_v13, %v1965_v63 }
 0x466   : > { %v1313_v7 = vpop.permute.xlu0 %1312  ;;  %v1315_v19 = vpop.permute.xlu1 %1314 }
 0x467   : > { %v1330_v61 = vadd.f32 %v1313_v7, %v1274_v35  ;;  %v1331_v16 = vadd.f32 %v1315_v19, %v1275_v60 }
 0x469   : > { %1456 = vst.msk [vmem:[%s2115_s13 + $0x68] sm:$0xff] %vm769_vm2, %v1330_v61  ;;  %1457 = vst.msk [vmem:[%s2115_s13 + $0x78] sm:$0xff] %vm769_vm2, %v1331_v16 }
 0x46a   : > { %1727 = shalt.err (!%p1724_p3)
}
 0x46b   : > { %s1728_s7 = scalar_lea.hbm %s2438_s28, 2048  ;;  %s1732_s10 = scalar_lea.hbm %s2493_s4, 4096 }
 0x46c   : > { %p1729_p4 = scmp.ne.s32.totalorder %s2438_s28, %s1728_s7  ;;  %p1733_p9 = scmp.lt.u32.totalorder %s2438_s28, %s2493_s4 }
 0x46d   : > { %p1734_p10 = scmp.lt.u32.totalorder %s1732_s10, %s1728_s7  ;;  %p1736_p12 = scmp.lt.u32.totalorder %s1728_s7, %s2438_s28 }
 0x46e   : > { %p1730_p7 = pnand %p1729_p4, %p1847_p5 }
 0x46f   : > { %p1735_p11 = por %p1734_p10, %p1733_p9 }
 0x470   : > { %p1731_p8 = pneg %p1730_p7 }
 0x471   : > { %p1737_p13 = por %p1736_p12, %p1735_p11 }
 0x473   : > { %p1738_p0 = pnand %p1737_p13, %p1731_p8 }
 0x475   : > { %1741 = shalt.err (!%p1738_p0)
}
 0x476   : > { %s1782_s13 = smov 128   ;;  %s1783_s14 = smov 8  }
 0x477   : > { %1586 = dma.vmem_to_hbm [thread:$0]  (%p1847_p5), %s2440_s22, 2048, %s2438_s28, %s2448_s19, %s1782_s13, %s1782_s13, %s1783_s14  }
 0x478 PF: > { %p1592_p1 = scmp.ge.s32.totalorder %s1776_s18, 2  ;;  %s1370_s20 = sand.u32 1, %s1764_s15  }
 0x479   : > { %s1371_s23 = scalar_lea.sflag [#allocation3], %s1370_s20 }
 0x47a   : > { %p1589_p2 = pnand %p1592_p1, %p1851_p6 }
 0x47c   : > { %1759 = dma.done.wait (!%p1589_p2), %s1371_s23, 2048  }
 0x47d   : > { %1761 = vsyncadd (!%p1589_p2), %s1371_s23, 4294965248  ;;  %p14_p3 = scmp.ge.s32.totalorder %s1834_s21, 4   ;;  %s2496_s15 = smov %s1768_s16 }
 0x47e   : > { %s2497_s16 = smov %s1772_s17  ;;  %s2498_s17 = smov %s1845_s24 }
 0x47f   : > { %s2499_s18 = smov %s1834_s21  ;;  %16 = sbr.rel (!%p14_p3) target bundleno = 3 (0x3), region = 72 }
 0x486   :  { %1376 = vsyncpa [#allocation3], 1 }
 0x487   :  { %1378 = vsyncpa [#allocation3 + $0x1], 1 }

</bundles_post_ra>
